<compile_context>
chip_gen: v7x
topology: tpu7x:2x2x1
jax: 0.10.0
libtpu: 0.0.40
codegen_flags: <defaults>
</compile_context>

<pallas_src>
import functools

import jax
import jax.numpy as jnp
from jax import lax
from jax.experimental import pallas as pl
from jax.experimental.pallas import tpu as pltpu


def _round_up(v, m):
    return (v + m - 1) // m * m


def _bottleneck_kernel(xe_ref, res_ref, w1_ref, w2_ref, b2_ref, w3_ref, b3_ref,
                       o_ref, h1_scr, cols_scr, *, No, Wp, d, Cb_p):
    cdt = w1_ref.dtype  # matmul compute dtype (f32, or bf16 on v6e/v7x)

    # --- conv1 (1x1) + BN1 + ReLU over the zero-extended padded grid (one matmul).
    # The last input channel is an interior indicator carrying the BN1 shift, so all
    # padding rows come out exactly zero after ReLU (== the zero padding conv2 expects).
    xe = xe_ref[0].astype(cdt)                                        # (NE, Cin+1)
    h1 = jnp.dot(xe, w1_ref[...], preferred_element_type=jnp.float32)
    h1_scr[...] = jnp.maximum(h1, 0.0)

    # --- conv2 (3x3, dilation d): pack 9 statically shifted views of the conv1 output
    # into one (No, 9*Cb_p) slab and do a single fused matmul (K = 9*Cb_p) on the MXU.
    for ky in range(3):
        for kx in range(3):
            k = ky * 3 + kx
            s = d * (ky * Wp + kx)                # static slice start, always in-bounds
            cols_scr[:, k * Cb_p:(k + 1) * Cb_p] = (
                h1_scr[s:s + No, :].astype(cols_scr.dtype))
    h2 = jnp.dot(cols_scr[...], w2_ref[...], preferred_element_type=jnp.float32)
    h2 = jnp.maximum(h2 + b2_ref[...], 0.0)                           # BN2 shift + ReLU

    # --- conv3 (1x1) + BN3 + residual + ReLU (lane-dense store, 128-wide).
    out = jnp.dot(h2.astype(cdt), w3_ref[...], preferred_element_type=jnp.float32)
    out = jnp.maximum(out + b3_ref[...] + res_ref[0], 0.0)
    o_ref[0] = out.astype(o_ref.dtype)


def bottleneck_forward(x_nchw, params, residual=None, stride=1, dilation=1,
                       matmul_dtype=jnp.float32):
    if stride != 1:
        # TODO(synk): stride > 1 (strided 3x3 conv) not implemented in the fused kernel.
        raise NotImplementedError("stride != 1 not supported")
    N, Cin, H, W = x_nchw.shape
    d = dilation
    eps = 1e-5
    cb = params["conv1_w"].shape[0]          # bottle_planes
    cout = params["conv3_w"].shape[0]        # planes
    LANE = 128
    cb_p = _round_up(cb, LANE)
    co_p = _round_up(cout, LANE)
    Wp = W + 2 * d
    Np = (H + 2 * d) * Wp                    # rows of the spatially padded grid
    NE = Np + 2 * d                          # conv1 rows: +d zero rows on each end
    No = H * Wp                              # conv2/conv3/output rows (no top/bottom pad)

    def fold(bn):
        s = bn["gamma"] / jnp.sqrt(bn["var"] + eps)
        return s, bn["beta"] - bn["mean"] * s

    s1, t1 = fold(params["bn1"])
    s2, t2 = fold(params["bn2"])
    s3, t3 = fold(params["bn3"])

    # conv1 weight with BN1 scale folded in; the extra row carries the BN1 shift
    # (activated by the interior-indicator channel appended to the input).
    w1 = params["conv1_w"][:, :, 0, 0].T * s1[None, :]                # (Cin, cb)
    w1aug = jnp.zeros((Cin + 1, cb_p), jnp.float32)
    w1aug = w1aug.at[:Cin, :cb].set(w1).at[Cin, :cb].set(t1)

    # conv2 weight (BN2 scale folded), laid out for the single fused 9-tap matmul.
    w2 = params["conv2_w"]                                            # (cb, cb, 3, 3)
    w2f = jnp.zeros((9 * cb_p, cb_p), jnp.float32)
    for ky in range(3):
        for kx in range(3):
            k = ky * 3 + kx
            w2f = w2f.at[k * cb_p:k * cb_p + cb, :cb].set(
                w2[:, :, ky, kx].T * s2[None, :])
    b2 = jnp.zeros((1, cb_p), jnp.float32).at[0, :cb].set(t2)

    w3 = params["conv3_w"][:, :, 0, 0].T * s3[None, :]                # (cb, cout)
    w3f = jnp.zeros((cb_p, co_p), jnp.float32).at[:cb, :cout].set(w3)
    b3 = jnp.zeros((1, co_p), jnp.float32).at[0, :cout].set(t3)

    cdt = matmul_dtype
    w1aug, w2f, w3f = w1aug.astype(cdt), w2f.astype(cdt), w3f.astype(cdt)

    # Activations: NHWC (+ indicator channel), pad spatially by d, flatten the padded
    # grid, and add d zero rows on each end so every 3x3 tap is a static in-range slice.
    x = jnp.transpose(x_nchw, (0, 2, 3, 1)).astype(jnp.float32)       # (N, H, W, Cin)
    ind = jnp.ones((N, H, W, 1), jnp.float32)
    xa = jnp.pad(jnp.concatenate([x, ind], axis=-1),
                 ((0, 0), (d, d), (d, d), (0, 0)))
    xa = xa.reshape(N, Np, Cin + 1)
    xa = jnp.pad(xa, ((0, 0), (d, d), (0, 0)))                        # (N, NE, Cin+1)

    res = x if residual is None else \
        jnp.transpose(residual, (0, 2, 3, 1)).astype(jnp.float32)
    assert res.shape[-1] == cout, "residual channel count must equal planes"
    # Residual only needs left/right column padding (output rows already exclude the
    # vertical pad rows), plus channel padding up to the 128-lane output width.
    resp = jnp.pad(res, ((0, 0), (0, 0), (d, d), (0, co_p - cout)))
    resp = resp.reshape(N, No, co_p)                                  # (N, No, co_p)

    kernel = functools.partial(_bottleneck_kernel,
                               No=No, Wp=Wp, d=d, Cb_p=cb_p)
    out = pl.pallas_call(
        kernel,
        out_shape=jax.ShapeDtypeStruct((N, No, co_p), jnp.float32),
        grid_spec=pltpu.PrefetchScalarGridSpec(
            num_scalar_prefetch=0,
            grid=(N,),
            in_specs=[
                pl.BlockSpec((1, NE, Cin + 1), lambda n: (n, 0, 0)),   # x (+indicator)
                pl.BlockSpec((1, No, co_p), lambda n: (n, 0, 0)),      # residual
                pl.BlockSpec((Cin + 1, cb_p), lambda n: (0, 0)),       # w1 (BN folded)
                pl.BlockSpec((9 * cb_p, cb_p), lambda n: (0, 0)),      # w2 (BN folded)
                pl.BlockSpec((1, cb_p), lambda n: (0, 0)),             # BN2 shift
                pl.BlockSpec((cb_p, co_p), lambda n: (0, 0)),          # w3 (BN folded)
                pl.BlockSpec((1, co_p), lambda n: (0, 0)),             # BN3 shift
            ],
            out_specs=pl.BlockSpec((1, No, co_p), lambda n: (n, 0, 0)),
            scratch_shapes=[pltpu.VMEM((NE, cb_p), jnp.float32),         # conv1 output
                            pltpu.VMEM((No, 9 * cb_p), matmul_dtype)],   # packed taps
        ),
        compiler_params=pltpu.CompilerParams(
            dimension_semantics=("parallel",)),
    )(xa, resp, w1aug, w2f, b2, w3f, b3)

    out = out.reshape(N, H, Wp, co_p)[:, :, d:d + W, :cout]
    return jnp.transpose(out, (0, 3, 1, 2))                            # back to NCHW


def _ref_forward(x, params, dilation=1, eps=1e-5):
    """Pure-JAX reference of the PyTorch Bottleneck forward (inference-mode BN)."""
    dn = ("NCHW", "OIHW", "NCHW")
    d = dilation

    def bn(y, p):
        s = p["gamma"] / jnp.sqrt(p["var"] + eps)
        t = p["beta"] - p["mean"] * s
        return y * s[None, :, None, None] + t[None, :, None, None]

    y = lax.conv_general_dilated(x, params["conv1_w"], (1, 1), "VALID",
                                 dimension_numbers=dn)
    y = jax.nn.relu(bn(y, params["bn1"]))
    y = lax.conv_general_dilated(y, params["conv2_w"], (1, 1), [(d, d), (d, d)],
                                 rhs_dilation=(d, d), dimension_numbers=dn)
    y = jax.nn.relu(bn(y, params["bn2"]))
    y = lax.conv_general_dilated(y, params["conv3_w"], (1, 1), "VALID",
                                 dimension_numbers=dn)
    y = bn(y, params["bn3"])
    return jax.nn.relu(y + x)


def init_params(key, inplanes, planes):
    expansion = 2
    cb = planes // expansion
    ks = jax.random.split(key, 6)

    def conv_init(k, shape):
        fan_in = shape[1] * shape[2] * shape[3]
        bound = 1.0 / (fan_in ** 0.5)
        return jax.random.uniform(k, shape, jnp.float32, -bound, bound)

    def bn_init(k, c):
        k1, k2, k3, k4 = jax.random.split(k, 4)
        return dict(gamma=1.0 + 0.1 * jax.random.normal(k1, (c,), jnp.float32),
                    beta=0.1 * jax.random.normal(k2, (c,), jnp.float32),
                    mean=0.1 * jax.random.normal(k3, (c,), jnp.float32),
                    var=jnp.abs(jax.random.normal(k4, (c,), jnp.float32)) + 0.5)

    # TODO(synk): training-mode BatchNorm (batch statistics + running-stat update) not modeled.
    return dict(conv1_w=conv_init(ks[0], (cb, inplanes, 1, 1)),
                conv2_w=conv_init(ks[1], (cb, cb, 3, 3)),
                conv3_w=conv_init(ks[2], (planes, cb, 1, 1)),
                bn1=bn_init(ks[3], cb),
                bn2=bn_init(ks[4], cb),
                bn3=bn_init(ks[5], planes))


if __name__ == "__main__":
    key = jax.random.PRNGKey(0)
    kx, kp = jax.random.split(key)
    N, inplanes, H, W = 2, 8, 16, 16
    planes = inplanes          # residual = x requires inplanes == planes (stride 1)
    x = jax.random.normal(kx, (N, inplanes, H, W), jnp.float32)
    params = init_params(kp, inplanes, planes)

    out = bottleneck_forward(x, params)   # f32 matmuls; pass matmul_dtype=jnp.bfloat16 on v6e/v7x
    jax.block_until_ready(out)
    assert out.shape == (N, planes, H, W)
    assert bool(jnp.all(jnp.isfinite(out)))

    ref = _ref_forward(x, params)
    err = float(jnp.max(jnp.abs(out - ref)))
    assert err < 5e-2, f"mismatch vs reference: {err}"
    print("KERNEL_OK")
</pallas_src>

<mosaic_0001>
module attributes {stable_mosaic.version = 11 : i64} {
  func.func @_bottleneck_kernel(%arg0: i32, %arg1: memref<1x326x9xf32, #tpu.memory_space<vmem>>, %arg2: memref<1x288x128xf32, #tpu.memory_space<vmem>>, %arg3: memref<9x128xf32, #tpu.memory_space<vmem>>, %arg4: memref<1152x128xf32, #tpu.memory_space<vmem>>, %arg5: memref<1x128xf32, #tpu.memory_space<vmem>>, %arg6: memref<128x128xf32, #tpu.memory_space<vmem>>, %arg7: memref<1x128xf32, #tpu.memory_space<vmem>>, %arg8: memref<1x288x128xf32, #tpu.memory_space<vmem>>, %arg9: memref<326x128xf32, #tpu.memory_space<vmem>>, %arg10: memref<288x1152xf32, #tpu.memory_space<vmem>>) attributes {dimension_semantics = [#tpu.dimension_semantics<parallel>], iteration_bounds = array<i64: 2>, scalar_prefetch = 0 : i64, scratch_operands = 2 : i64, tpu.core_type = #tpu.core_type<tc>, window_params = [{transform_indices = @transform_0, window_bounds = array<i64: 1, 326, 9>}, {transform_indices = @transform_1, window_bounds = array<i64: 1, 288, 128>}, {pipeline_mode = #tpu.pipeline_mode<synchronous>, transform_indices = @transform_2, window_bounds = array<i64: 9, 128>}, {pipeline_mode = #tpu.pipeline_mode<synchronous>, transform_indices = @transform_3, window_bounds = array<i64: 1152, 128>}, {pipeline_mode = #tpu.pipeline_mode<synchronous>, transform_indices = @transform_4, window_bounds = array<i64: 1, 128>}, {pipeline_mode = #tpu.pipeline_mode<synchronous>, transform_indices = @transform_5, window_bounds = array<i64: 128, 128>}, {pipeline_mode = #tpu.pipeline_mode<synchronous>, transform_indices = @transform_6, window_bounds = array<i64: 1, 128>}, {transform_indices = @transform_7, window_bounds = array<i64: 1, 288, 128>}]} {
    %c0 = arith.constant 0 : index
    %c0_0 = arith.constant 0 : index
    %c0_1 = arith.constant 0 : index
    %0 = vector.load %arg1[%c0, %c0_0, %c0_1] : memref<1x326x9xf32, #tpu.memory_space<vmem>>, vector<1x326x9xf32>
    %1 = vector.shape_cast %0 : vector<1x326x9xf32> to vector<326x9xf32>
    %c0_2 = arith.constant 0 : index
    %c0_3 = arith.constant 0 : index
    %2 = vector.load %arg3[%c0_2, %c0_3] : memref<9x128xf32, #tpu.memory_space<vmem>>, vector<9x128xf32>
    %cst = arith.constant dense<0.000000e+00> : vector<326x128xf32>
    %3 = tpu.matmul %1, %2, %cst {dimension_numbers = #tpu.dot_dimension_numbers<[1], [0], [0], [1], [0, 0, 1, 1], [], []>} : vector<326x9xf32>, vector<9x128xf32>, vector<326x128xf32> -> vector<326x128xf32>
    %cst_4 = arith.constant 0.000000e+00 : f32
    %4 = vector.broadcast %cst_4 : f32 to vector<326x128xf32>
    %5 = arith.maximumf %3, %4 : vector<326x128xf32>
    %c0_5 = arith.constant 0 : index
    %c0_6 = arith.constant 0 : index
    %6 = vector.load %arg9[%c0_5, %c0_6] : memref<326x128xf32, #tpu.memory_space<vmem>>, vector<326x128xf32>
    tpu.vector_store %arg9[%c0_5, %c0_6], %5 {strides = array<i32>} : memref<326x128xf32, #tpu.memory_space<vmem>>, vector<326x128xf32>,
    %c0_7 = arith.constant 0 : index
    %c0_8 = arith.constant 0 : index
    %7 = vector.load %arg9[%c0_7, %c0_8] : memref<326x128xf32, #tpu.memory_space<vmem>>, vector<288x128xf32>
    %c0_9 = arith.constant 0 : index
    %c0_10 = arith.constant 0 : index
    %8 = vector.load %arg10[%c0_9, %c0_10] : memref<288x1152xf32, #tpu.memory_space<vmem>>, vector<288x128xf32>
    tpu.vector_store %arg10[%c0_9, %c0_10], %7 {strides = array<i32>} : memref<288x1152xf32, #tpu.memory_space<vmem>>, vector<288x128xf32>,
    %c1 = arith.constant 1 : index
    %c0_11 = arith.constant 0 : index
    %9 = vector.load %arg9[%c1, %c0_11] : memref<326x128xf32, #tpu.memory_space<vmem>>, vector<288x128xf32>
    %c0_12 = arith.constant 0 : index
    %c128 = arith.constant 128 : index
    %10 = vector.load %arg10[%c0_12, %c128] : memref<288x1152xf32, #tpu.memory_space<vmem>>, vector<288x128xf32>
    tpu.vector_store %arg10[%c0_12, %c128], %9 {strides = array<i32>} : memref<288x1152xf32, #tpu.memory_space<vmem>>, vector<288x128xf32>,
    %c2 = arith.constant 2 : index
    %c0_13 = arith.constant 0 : index
    %11 = vector.load %arg9[%c2, %c0_13] : memref<326x128xf32, #tpu.memory_space<vmem>>, vector<288x128xf32>
    %c0_14 = arith.constant 0 : index
    %c256 = arith.constant 256 : index
    %12 = vector.load %arg10[%c0_14, %c256] : memref<288x1152xf32, #tpu.memory_space<vmem>>, vector<288x128xf32>
    tpu.vector_store %arg10[%c0_14, %c256], %11 {strides = array<i32>} : memref<288x1152xf32, #tpu.memory_space<vmem>>, vector<288x128xf32>,
    %c18 = arith.constant 18 : index
    %c0_15 = arith.constant 0 : index
    %13 = vector.load %arg9[%c18, %c0_15] : memref<326x128xf32, #tpu.memory_space<vmem>>, vector<288x128xf32>
    %c0_16 = arith.constant 0 : index
    %c384 = arith.constant 384 : index
    %14 = vector.load %arg10[%c0_16, %c384] : memref<288x1152xf32, #tpu.memory_space<vmem>>, vector<288x128xf32>
    tpu.vector_store %arg10[%c0_16, %c384], %13 {strides = array<i32>} : memref<288x1152xf32, #tpu.memory_space<vmem>>, vector<288x128xf32>,
    %c19 = arith.constant 19 : index
    %c0_17 = arith.constant 0 : index
    %15 = vector.load %arg9[%c19, %c0_17] : memref<326x128xf32, #tpu.memory_space<vmem>>, vector<288x128xf32>
    %c0_18 = arith.constant 0 : index
    %c512 = arith.constant 512 : index
    %16 = vector.load %arg10[%c0_18, %c512] : memref<288x1152xf32, #tpu.memory_space<vmem>>, vector<288x128xf32>
    tpu.vector_store %arg10[%c0_18, %c512], %15 {strides = array<i32>} : memref<288x1152xf32, #tpu.memory_space<vmem>>, vector<288x128xf32>,
    %c20 = arith.constant 20 : index
    %c0_19 = arith.constant 0 : index
    %17 = vector.load %arg9[%c20, %c0_19] : memref<326x128xf32, #tpu.memory_space<vmem>>, vector<288x128xf32>
    %c0_20 = arith.constant 0 : index
    %c640 = arith.constant 640 : index
    %18 = vector.load %arg10[%c0_20, %c640] : memref<288x1152xf32, #tpu.memory_space<vmem>>, vector<288x128xf32>
    tpu.vector_store %arg10[%c0_20, %c640], %17 {strides = array<i32>} : memref<288x1152xf32, #tpu.memory_space<vmem>>, vector<288x128xf32>,
    %c36 = arith.constant 36 : index
    %c0_21 = arith.constant 0 : index
    %19 = vector.load %arg9[%c36, %c0_21] : memref<326x128xf32, #tpu.memory_space<vmem>>, vector<288x128xf32>
    %c0_22 = arith.constant 0 : index
    %c768 = arith.constant 768 : index
    %20 = vector.load %arg10[%c0_22, %c768] : memref<288x1152xf32, #tpu.memory_space<vmem>>, vector<288x128xf32>
    tpu.vector_store %arg10[%c0_22, %c768], %19 {strides = array<i32>} : memref<288x1152xf32, #tpu.memory_space<vmem>>, vector<288x128xf32>,
    %c37 = arith.constant 37 : index
    %c0_23 = arith.constant 0 : index
    %21 = vector.load %arg9[%c37, %c0_23] : memref<326x128xf32, #tpu.memory_space<vmem>>, vector<288x128xf32>
    %c0_24 = arith.constant 0 : index
    %c896 = arith.constant 896 : index
    %22 = vector.load %arg10[%c0_24, %c896] : memref<288x1152xf32, #tpu.memory_space<vmem>>, vector<288x128xf32>
    tpu.vector_store %arg10[%c0_24, %c896], %21 {strides = array<i32>} : memref<288x1152xf32, #tpu.memory_space<vmem>>, vector<288x128xf32>,
    %c38 = arith.constant 38 : index
    %c0_25 = arith.constant 0 : index
    %23 = vector.load %arg9[%c38, %c0_25] : memref<326x128xf32, #tpu.memory_space<vmem>>, vector<288x128xf32>
    %c0_26 = arith.constant 0 : index
    %c1024 = arith.constant 1024 : index
    %24 = vector.load %arg10[%c0_26, %c1024] : memref<288x1152xf32, #tpu.memory_space<vmem>>, vector<288x128xf32>
    tpu.vector_store %arg10[%c0_26, %c1024], %23 {strides = array<i32>} : memref<288x1152xf32, #tpu.memory_space<vmem>>, vector<288x128xf32>,
    %c0_27 = arith.constant 0 : index
    %c0_28 = arith.constant 0 : index
    %25 = vector.load %arg10[%c0_27, %c0_28] : memref<288x1152xf32, #tpu.memory_space<vmem>>, vector<288x1152xf32>
    %c0_29 = arith.constant 0 : index
    %c0_30 = arith.constant 0 : index
    %26 = vector.load %arg4[%c0_29, %c0_30] : memref<1152x128xf32, #tpu.memory_space<vmem>>, vector<1152x128xf32>
    %cst_31 = arith.constant dense<0.000000e+00> : vector<288x128xf32>
    %27 = tpu.matmul %25, %26, %cst_31 {dimension_numbers = #tpu.dot_dimension_numbers<[1], [0], [0], [1], [0, 0, 1, 1], [], []>} : vector<288x1152xf32>, vector<1152x128xf32>, vector<288x128xf32> -> vector<288x128xf32>
    %c0_32 = arith.constant 0 : index
    %c0_33 = arith.constant 0 : index
    %28 = vector.load %arg5[%c0_32, %c0_33] : memref<1x128xf32, #tpu.memory_space<vmem>>, vector<1x128xf32>
    %29 = vector.broadcast %28 : vector<1x128xf32> to vector<288x128xf32>
    %30 = arith.addf %27, %29 : vector<288x128xf32>
    %cst_34 = arith.constant 0.000000e+00 : f32
    %31 = vector.broadcast %cst_34 : f32 to vector<288x128xf32>
    %32 = arith.maximumf %30, %31 : vector<288x128xf32>
    %c0_35 = arith.constant 0 : index
    %c0_36 = arith.constant 0 : index
    %33 = vector.load %arg6[%c0_35, %c0_36] : memref<128x128xf32, #tpu.memory_space<vmem>>, vector<128x128xf32>
    %cst_37 = arith.constant dense<0.000000e+00> : vector<288x128xf32>
    %34 = tpu.matmul %32, %33, %cst_37 {dimension_numbers = #tpu.dot_dimension_numbers<[1], [0], [0], [1], [0, 0, 1, 1], [], []>} : vector<288x128xf32>, vector<128x128xf32>, vector<288x128xf32> -> vector<288x128xf32>
    %c0_38 = arith.constant 0 : index
    %c0_39 = arith.constant 0 : index
    %35 = vector.load %arg7[%c0_38, %c0_39] : memref<1x128xf32, #tpu.memory_space<vmem>>, vector<1x128xf32>
    %36 = vector.broadcast %35 : vector<1x128xf32> to vector<288x128xf32>
    %37 = arith.addf %34, %36 : vector<288x128xf32>
    %c0_40 = arith.constant 0 : index
    %c0_41 = arith.constant 0 : index
    %c0_42 = arith.constant 0 : index
    %38 = vector.load %arg2[%c0_40, %c0_41, %c0_42] : memref<1x288x128xf32, #tpu.memory_space<vmem>>, vector<1x288x128xf32>
    %39 = vector.shape_cast %38 : vector<1x288x128xf32> to vector<288x128xf32>
    %40 = arith.addf %37, %39 : vector<288x128xf32>
    %cst_43 = arith.constant 0.000000e+00 : f32
    %41 = vector.broadcast %cst_43 : f32 to vector<288x128xf32>
    %42 = arith.maximumf %40, %41 : vector<288x128xf32>
    %c0_44 = arith.constant 0 : index
    %c0_45 = arith.constant 0 : index
    %c0_46 = arith.constant 0 : index
    %43 = vector.load %arg8[%c0_44, %c0_45, %c0_46] : memref<1x288x128xf32, #tpu.memory_space<vmem>>, vector<1x288x128xf32>
    %44 = vector.shape_cast %43 : vector<1x288x128xf32> to vector<288x128xf32>
    %45 = vector.shape_cast %42 : vector<288x128xf32> to vector<1x288x128xf32>
    tpu.vector_store %arg8[%c0_44, %c0_45, %c0_46], %45 {strides = array<i32>} : memref<1x288x128xf32, #tpu.memory_space<vmem>>, vector<1x288x128xf32>,
    return
  }
  func.func @transform_0(%arg0: i32) -> (i32, i32, i32) {
    %c0_i32 = arith.constant 0 : i32
    %c0_i32_0 = arith.constant 0 : i32
    %c0_i32_1 = arith.constant 0 : i32
    return %arg0, %c0_i32, %c0_i32_0 : i32, i32, i32
  }
  func.func @transform_1(%arg0: i32) -> (i32, i32, i32) {
    %c0_i32 = arith.constant 0 : i32
    %c0_i32_0 = arith.constant 0 : i32
    %c0_i32_1 = arith.constant 0 : i32
    return %arg0, %c0_i32, %c0_i32_0 : i32, i32, i32
  }
  func.func @transform_2(%arg0: i32) -> (i32, i32) {
    %c0_i32 = arith.constant 0 : i32
    %c0_i32_0 = arith.constant 0 : i32
    %c0_i32_1 = arith.constant 0 : i32
    return %c0_i32, %c0_i32_0 : i32, i32
  }
  func.func @transform_3(%arg0: i32) -> (i32, i32) {
    %c0_i32 = arith.constant 0 : i32
    %c0_i32_0 = arith.constant 0 : i32
    %c0_i32_1 = arith.constant 0 : i32
    return %c0_i32, %c0_i32_0 : i32, i32
  }
  func.func @transform_4(%arg0: i32) -> (i32, i32) {
    %c0_i32 = arith.constant 0 : i32
    %c0_i32_0 = arith.constant 0 : i32
    %c0_i32_1 = arith.constant 0 : i32
    return %c0_i32, %c0_i32_0 : i32, i32
  }
  func.func @transform_5(%arg0: i32) -> (i32, i32) {
    %c0_i32 = arith.constant 0 : i32
    %c0_i32_0 = arith.constant 0 : i32
    %c0_i32_1 = arith.constant 0 : i32
    return %c0_i32, %c0_i32_0 : i32, i32
  }
  func.func @transform_6(%arg0: i32) -> (i32, i32) {
    %c0_i32 = arith.constant 0 : i32
    %c0_i32_0 = arith.constant 0 : i32
    %c0_i32_1 = arith.constant 0 : i32
    return %c0_i32, %c0_i32_0 : i32, i32
  }
  func.func @transform_7(%arg0: i32) -> (i32, i32, i32) {
    %c0_i32 = arith.constant 0 : i32
    %c0_i32_0 = arith.constant 0 : i32
    %c0_i32_1 = arith.constant 0 : i32
    return %arg0, %c0_i32, %c0_i32_0 : i32, i32, i32
  }
}

</mosaic_0001>

<bundles_post_ra>
// kernel: tpu_custom_call.1
= control target key start
LH: loop header
LB: loop body
LE: loop exit
PB: predicated region body
PF: predicated region fallthrough
CT: control target
= control target key end

     0   :  { %12 = vsyncpa [#allocation5], 0  ;;  %s6010_s0 = inlined_call_operand.vmem [shape: f32[2,326,9], index: 0, kind: input, shape index: {}]   ;;  %s6011_s1 = inlined_call_operand.vmem [shape: f32[2,288,128], index: 1, kind: input, shape index: {}]   ;;  %s6012_s2 = inlined_call_operand.hbm [shape: f32[9,128], index: 2, kind: input, shape index: {}]   ;;  %s6013_s3 = inlined_call_operand.hbm [shape: f32[1152,128], index: 3, kind: input, shape index: {}]   ;;  %s6014_s4 = inlined_call_operand.vmem [shape: f32[1,128], index: 4, kind: input, shape index: {}]   ;;  %s6015_s5 = inlined_call_operand.vmem [shape: f32[128,128], index: 5, kind: input, shape index: {}]   ;;  %s6016_s6 = inlined_call_operand.vmem [shape: f32[1,128], index: 6, kind: input, shape index: {}]   ;;  %s6017_s7 = inlined_call_operand.hbm [shape: f32[2,288,128], index: 7, kind: output, shape index: {}]  }
   0x1   :  { %13 = vsyncpa [#allocation8], 0 }
   0x2   :  { %14 = vsyncpa [#allocation6], 0 }
   0x3   :  { %16 = vsyncpa [#allocation6 + $0x1], 0  ;;  %s4986_s24 = smov 0   ;;  %s4988_s25 = smov 0  }
   0x4   :  { %s4990_s26 = smov 0   ;;  %s4992_s27 = smov 0  }
   0x5 LB: > { %s5007_s28 = sadd.s32 4294967295, %s4933_s27   ;;  %s3756_s29 = sadd.s32 4294967294, %s4933_s27   ;;  %s4933_s27 = sphi %s4992_s27, %s6079_s27   ;;  %s4929_s26 = sphi %s4990_s26, %s6078_s26   ;;  %s4925_s25 = sphi %s4988_s25, %s6077_s25   ;;  %s4921_s24 = sphi %s4986_s24, %s6076_s24  }
   0x6   : > { %s5011_s30 = sadd.s32 1, %s4933_s27   ;;  %s186_s8 = sadd.s32 1, %s4929_s26 }
   0x7   : > { %s183_s9 = ssub.s32 %s4933_s27, %s5011_s30  ;;  %p196_p0 = scmp.ne.s32.totalorder %s4929_s26, %s4925_s25 }
   0x8   : > { %p184_p1 = scmp.eq.s32.totalorder %s183_s9, 0  ;;  %p197_p2 = scmp.eq.s32.totalorder %s5007_s28, 1 }
   0x9   : > { %p202_p3 = scmp.ne.s32.totalorder %s4925_s25, %s4921_s24  ;;  %p203_p4 = scmp.eq.s32.totalorder %s3756_s29, 1 }
   0xa   : > { %s5022_s10 = scalar_select %p184_p1, %s4929_s26, %s186_s8  }
   0xb   : > { %p5024_p5 = por %p197_p2, %p196_p0  ;;  %p5028_p6 = por %p203_p4, %p202_p3 }
   0xc   : > { %6021 = sst [smem:[#allocation13_spill]] %s5022_s10  ;;  %p3757_p7 = scmp.ge.s32.totalorder %s4933_s27, 1 }
   0xd   : > { %s6022_s11 = scalar_select %p5024_p5, 1, 0 }
   0xe   : > { %s6023_s12 = scalar_select %p5028_p6, 1, 0 }
   0xf   : > { %p210_p8 = scmp.lt.s32.totalorder %s4933_s27, 3  ;;  %p6018_p9 = scmp.eq.s32.totalorder %s5007_s28, 0 }
  0x10   : > { %s4935_s14 = smov [#allocation4]   ;;  %s4936_s17 = smov [#allocation7]  }
  0x11   : > { %p5035_p10 = pnand %p3757_p7, %p210_p8  ;;  %s222_s15 = sshll.u32 %s4935_s14, 4  ;;  %s223_s15 = int_to_ptr.vmem [resolvable:$true] %s222_s15 }
  0x12   : > { %s235_s18 = sshll.u32 %s4936_s17, 4  ;;  %s4807_s21 = scalar_lea.hbm %s6012_s2, 256  ;;  %s5047_s18 = int_to_ptr.vmem [resolvable:$true] %s235_s18 }
  0x13   : > { %s6024_s13 = scalar_select %p5035_p10, 1, 0 }
  0x14   : > { %p4749_p11 = pneg %p5035_p10  ;;  %p4808_p13 = scmp.ne.s32.totalorder %s6012_s2, %s4807_s21 }
  0x15   : > { %p4814_p3 = scmp.lt.u32.totalorder %s4807_s21, %s6012_s2 }
  0x16   : > { %p5043_p12 = pnand %p6018_p9, %p4749_p11 }
  0x18   : > { %p4809_p0 = pneg %p5043_p12 }
  0x1a   : > { %p4810_p1 = pnand %p4809_p0, %p4808_p13 }
  0x1c   : > { %p4811_p2 = pneg %p4810_p1 }
  0x1e   : > { %p4816_p4 = pnand %p4814_p3, %p4811_p2 }
  0x20   : > { %4819 = shalt.err (!%p4816_p4)
}
  0x21   : > { %s4820_s9 = scalar_lea.vmem %s223_s15, 256  ;;  %p4828_p9 = scmp.lt.s32.totalorder %s223_s15, %s223_s15 }
  0x22   : > { %p4821_p7 = scmp.ne.s32.totalorder %s223_s15, %s4820_s9  ;;  %p4829_p6 = scmp.lt.s32.totalorder %s4820_s9, %s4820_s9 }
  0x24   : > { %p4823_p8 = pnand %p4821_p7, %p4809_p0  ;;  %p4830_p5 = por %p4829_p6, %p4828_p9 }
  0x26   : > { %p4824_p11 = pneg %p4823_p8 }
  0x28   : > { %p4831_p10 = pnand %p4830_p5, %p4824_p11 }
  0x2a   : > { %4834 = shalt.err (!%p4831_p10)
}
  0x2b   : > { %s4937_s14 = smov 128   ;;  %s4938_s17 = smov 8  }
  0x2c   : > { %4752 = dma.hbm_to_vmem [thread:$0]  (!%p5043_p12), %s6012_s2, 256, %s223_s15, [#allocation5], %s4937_s14, %s4937_s14, %s4938_s17  }
  0x2d   : > { %s4835_s23 = scalar_lea.hbm %s6013_s3, 18432 }
  0x2e   : > { %p4836_p13 = scmp.ne.s32.totalorder %s6013_s3, %s4835_s23  ;;  %p4842_p9 = scmp.lt.u32.totalorder %s4835_s23, %s6013_s3 }
  0x30   : > { %p4838_p5 = pnand %p4836_p13, %p4809_p0 }
  0x32   : > { %p4839_p6 = pneg %p4838_p5 }
  0x34   : > { %p4844_p10 = pnand %p4842_p9, %p4839_p6 }
  0x36   : > { %4847 = shalt.err (!%p4844_p10)
}
  0x37   : > { %s4848_s15 = scalar_lea.vmem %s5047_s18, 18432  ;;  %p4856_p4 = scmp.lt.s32.totalorder %s5047_s18, %s5047_s18 }
  0x38   : > { %p4849_p1 = scmp.ne.s32.totalorder %s5047_s18, %s4848_s15  ;;  %p4857_p7 = scmp.lt.s32.totalorder %s4848_s15, %s4848_s15 }
  0x3a   : > { %p4851_p2 = pnand %p4849_p1, %p4809_p0  ;;  %p4858_p8 = por %p4857_p7, %p4856_p4 }
  0x3c   : > { %p4852_p3 = pneg %p4851_p2 }
  0x3e   : > { %p4859_p11 = pnand %p4858_p8, %p4852_p3 }
  0x40   : > { %4862 = shalt.err (!%p4859_p11)
}
  0x41   : > { %4755 = dma.hbm_to_vmem [thread:$0]  (!%p5043_p12), %s6013_s3, 18432, %s5047_s18, [#allocation8], %s4937_s14, %s4937_s14, %s4938_s17  }
  0x42   : > { %p6026_p13 = scmp.ne.s32.totalorder %s6024_s13, 0 }
  0x44   : > { %276 = sbr.rel (%p6026_p13) target bundleno = 1206 (0x4b6), region = 48 }
  0x4b   : > { %p6027_p5 = scmp.eq.s32.totalorder %s5007_s28, 0 }
  0x4d   : > { %4908 = dma.done.wait (%p6027_p5), [#allocation5], 256   ;;  %p6028_p0 = pmov %p6027_p5 }
  0x4f   : > { %4910 = vsyncadd (%p6028_p0), [#allocation5], 4294967040  ;;  %p6029_p6 = pmov %p6028_p0 }
  0x50   : > { %p6030_p9 = pmov %p6028_p0 }
  0x51   : > { %4912 = dma.done.wait (%p6029_p6), [#allocation8], 18432  }
  0x52   : > { %4914 = vsyncadd (%p6030_p9), [#allocation8], 4294948864  ;;  %v4939_v0 = vmov 0.0|0.0   ;;  %p317_p12 = scmp.lt.s32.totalorder %s5007_s28, 1  ;;  %vm4940_vm0 = vmmov 0   ;;  %v4941_v1 = vmov 0.0  }
  0x53   : > { %4259 = vmatprep.subr.bf16.mxu0 %v4939_v0  ;;  %4311 = vmatprep.subr.bf16.mxu1 %v4939_v0  ;;  %vm494_vm1 = vcmask 1040384   ;;  %v368_v2 = vld [vmem:[#allocation4] sm:$0xff]  ;;  %v369_v3 = vld [vmem:[#allocation4 + $0x8] sm:$0x1]  ;;  %vm4942_vm2 = vmmov 1   ;;  %vm370_vm4 = vcmask 72704  }
  0x54   : > { %3964 = vmatprep.mubr.msk.f32.mxu0 %vm4940_vm0, %v4941_v1  ;;  %s5112_s13 = scalar_select %p317_p12, %s5007_s28, 1  ;;  %vm4261_vm3 = vmpackc.low %vm494_vm1, %vm4942_vm2  ;;  %v4260_v4 = vpack.c.bf16 %v369_v3, %v368_v2  ;;  %v1822_v14 = vld [vmem:[#allocation7] sm:$0xff]  ;;  %v1823_v15 = vld [vmem:[#allocation7 + $0x8] sm:$0xff] }
  0x55   : > { %v1824_v16 = vld [vmem:[#allocation7 + $0x10] sm:$0xff]  ;;  %v4264_v17 = vpack.c.bf16 %v1823_v15, %v1822_v14  ;;  %v1825_v18 = vld [vmem:[#allocation7 + $0x18] sm:$0xff]  ;;  %v1854_v19 = vld [vmem:[#allocation7 + $0x100] sm:$0xff]  ;;  %s314_s15 = sand.u32 1, %s4925_s25   ;;  %s4738_s20 = smul.u32 4608, %s5007_s28 }
  0x56   : > { %s4736_s16 = smul.u32 328, %s5112_s13  ;;  %4262 = vmatpush3.bf16.msk.msra.mxu0 %vm4261_vm3, %v4260_v4  ;;  %v1855_v20 = vld [vmem:[#allocation7 + $0x108] sm:$0xff]  ;;  %v1856_v22 = vld [vmem:[#allocation7 + $0x110] sm:$0xff]  ;;  %v4267_v23 = vpack.c.bf16 %v1825_v18, %v1824_v16  ;;  %v1857_v24 = vld [vmem:[#allocation7 + $0x118] sm:$0xff]  ;;  %s5969_s28 = scalar_lea.sflag [#allocation6], %s314_s15 }
  0x57   : > { %4263 = vmatprep.subr.bf16.mxu0 %v4939_v0  ;;  %v4312_v21 = vpack.c.bf16 %v1855_v20, %v1854_v19  ;;  %v1826_v25 = vld [vmem:[#allocation7 + $0x20] sm:$0xff]  ;;  %v1827_v26 = vld [vmem:[#allocation7 + $0x28] sm:$0xff]  ;;  %v4315_v28 = vpack.c.bf16 %v1857_v24, %v1856_v22  ;;  %v1828_v32 = vld [vmem:[#allocation7 + $0x30] sm:$0xff]  ;;  %s4737_s9 = smul.u32 288, %s5112_s13  ;;  %s5961_s29 = scalar_lea.hbm %s6017_s7, %s4738_s20 }
  0x58   : > { %s5118_s17 = scalar_lea.vmem %s6010_s0, %s4736_s16  ;;  %v1858_v29 = vld [vmem:[#allocation7 + $0x120] sm:$0xff]  ;;  %v1859_v30 = vld [vmem:[#allocation7 + $0x128] sm:$0xff]  ;;  %v4270_v31 = vpack.c.bf16 %v1827_v26, %v1826_v25  ;;  %v1829_v33 = vld [vmem:[#allocation7 + $0x38] sm:$0xff]  ;;  %p6073_p1 = scmp.ne.s32.totalorder %s6022_s11, 0 }
  0x59   : > { %v327_v5 = vld [vmem:[%s5118_s17] sm:$0xff]  ;;  %v328_v6 = vld [vmem:[%s5118_s17 + $0x8] sm:$0xff]  ;;  %v329_v7 = vld [vmem:[%s5118_s17 + $0x10] sm:$0xff]  ;;  %4313 = vmatpush1.bf16.msra.mxu1 %v4312_v21  ;;  %v4318_v35 = vpack.c.bf16 %v1859_v30, %v1858_v29  ;;  %v4273_v38 = vpack.c.bf16 %v1829_v33, %v1828_v32  ;;  %s5839_s16 = scalar_lea.vmem %s6011_s1, %s4737_s9  ;;  %s4943_s9 = smov [#allocation9]  }
  0x5a   : > { %3965 = vmatmul.mubr.msk.f32.vlgmr.msra.gmra.mrb[0].mxu0 %vm370_vm4, %v327_v5  ;;  %v330_v8 = vld [vmem:[%s5118_s17 + $0x18] sm:$0xff]  ;;  %v331_v9 = vld [vmem:[%s5118_s17 + $0x20] sm:$0xff]  ;;  %v332_v10 = vld [vmem:[%s5118_s17 + $0x28] sm:$0xff]  ;;  %4314 = vmatprep.subr.bf16.mxu1 %v4939_v0  ;;  %s4867_s10 = sshll.u32 %s4943_s9, 4  ;;  %s4868_s10 = int_to_ptr.vmem [resolvable:$false] %s4867_s10 }
  0x5b   : > { %3967 = vmatprep.mubr.msk.f32.mxu0 %vm4940_vm0, %v4941_v1  ;;  %v333_v11 = vld [vmem:[%s5118_s17 + $0x30] sm:$0xff]  ;;  %v334_v12 = vld [vmem:[%s5118_s17 + $0x38] sm:$0xff]  ;;  %v335_v13 = vld [vmem:[%s5118_s17 + $0x40] sm:$0xff]  ;;  %4265 = vmatpush1.bf16.msra.mxu0 %v4264_v17  ;;  %s4869_s19 = scalar_lea.vmem %s4868_s10, 9216 }
  0x5c   : > { %4266 = vmatprep.subr.bf16.mxu0 %v4939_v0  ;;  %v336_v27 = vld [vmem:[%s5118_s17 + $0x48] sm:$0xff]  ;;  %v337_v34 = vld [vmem:[%s5118_s17 + $0x50] sm:$0xff]  ;;  %v1830_v39 = vld [vmem:[#allocation7 + $0x40] sm:$0xff] }
  0x5d   : > { %4316 = vmatpush1.bf16.msra.mxu1 %v4315_v28  ;;  %v1860_v36 = vld [vmem:[#allocation7 + $0x130] sm:$0xff]  ;;  %v1861_v37 = vld [vmem:[#allocation7 + $0x138] sm:$0xff]  ;;  %v1831_v40 = vld [vmem:[#allocation7 + $0x48] sm:$0xff] }
  0x5e   : > { %3968 = vmatmul.mubr.msk.f32.gmra.mrb[2].mxu0 %vm370_vm4, %v328_v6  ;;  %4317 = vmatprep.subr.bf16.mxu1 %v4939_v0  ;;  %v338_v41 = vld [vmem:[%s5118_s17 + $0x58] sm:$0xff]  ;;  %v4321_v42 = vpack.c.bf16 %v1861_v37, %v1860_v36  ;;  %v1863_v44 = vld [vmem:[#allocation7 + $0x148] sm:$0xff]  ;;  %v4276_v45 = vpack.c.bf16 %v1831_v40, %v1830_v39  ;;  %v1832_v46 = vld [vmem:[#allocation7 + $0x50] sm:$0xff] }
  0x5f   : > { %3970 = vmatprep.mubr.msk.f32.mxu0 %vm4940_vm0, %v4941_v1  ;;  %4268 = vmatpush1.bf16.msra.mxu0 %v4267_v23  ;;  %v1862_v43 = vld [vmem:[#allocation7 + $0x140] sm:$0xff]  ;;  %v1833_v47 = vld [vmem:[#allocation7 + $0x58] sm:$0xff]  ;;  %v339_v48 = vld [vmem:[%s5118_s17 + $0x60] sm:$0xff] }
  0x60   : > { %4269 = vmatprep.subr.bf16.mxu0 %v4939_v0  ;;  %v4324_v49 = vpack.c.bf16 %v1863_v44, %v1862_v43  ;;  %v1864_v50 = vld [vmem:[#allocation7 + $0x150] sm:$0xff]  ;;  %v1865_v51 = vld [vmem:[#allocation7 + $0x158] sm:$0xff]  ;;  %v4279_v52 = vpack.c.bf16 %v1833_v47, %v1832_v46  ;;  %v1834_v53 = vld [vmem:[#allocation7 + $0x60] sm:$0xff] }
  0x61   : > { %4319 = vmatpush1.bf16.msra.mxu1 %v4318_v35  ;;  %v1835_v54 = vld [vmem:[#allocation7 + $0x68] sm:$0xff]  ;;  %v340_v55 = vld [vmem:[%s5118_s17 + $0x68] sm:$0xff]  ;;  %v4327_v56 = vpack.c.bf16 %v1865_v51, %v1864_v50  ;;  %v1866_v57 = vld [vmem:[#allocation7 + $0x160] sm:$0xff] }
  0x62   : > { %3971 = vmatmul.mubr.msk.f32.gmra.mrb[4].mxu0 %vm370_vm4, %v329_v7  ;;  %4320 = vmatprep.subr.bf16.mxu1 %v4939_v0  ;;  %v1867_v58 = vld [vmem:[#allocation7 + $0x168] sm:$0xff]  ;;  %v4282_v59 = vpack.c.bf16 %v1835_v54, %v1834_v53  ;;  %v1836_v60 = vld [vmem:[#allocation7 + $0x70] sm:$0xff]  ;;  %v1837_v61 = vld [vmem:[#allocation7 + $0x78] sm:$0xff] }
  0x63   : > { %3973 = vmatprep.mubr.msk.f32.mxu0 %vm4940_vm0, %v4941_v1  ;;  %4271 = vmatpush1.bf16.msra.mxu0 %v4270_v31  ;;  %v341_v62 = vld [vmem:[%s5118_s17 + $0x70] sm:$0xff]  ;;  %v4330_v63 = vpack.c.bf16 %v1867_v58, %v1866_v57  ;;  %v1868_v2 = vld [vmem:[#allocation7 + $0x170] sm:$0xff]  ;;  %v4285_v4 = vpack.c.bf16 %v1837_v61, %v1836_v60  ;;  %v1838_v5 = vld [vmem:[#allocation7 + $0x80] sm:$0xff] }
  0x64   : > { %4272 = vmatprep.subr.bf16.mxu0 %v4939_v0  ;;  %v1869_v3 = vld [vmem:[#allocation7 + $0x178] sm:$0xff]  ;;  %v1839_v6 = vld [vmem:[#allocation7 + $0x88] sm:$0xff]  ;;  %v342_v7 = vld [vmem:[%s5118_s17 + $0x78] sm:$0xff] }
  0x65   : > { %4322 = vmatpush1.bf16.msra.mxu1 %v4321_v42  ;;  %v343_v14 = vld [vmem:[%s5118_s17 + $0x80] sm:$0xff]  ;;  %v1872_v16 = vld [vmem:[#allocation7 + $0x190] sm:$0xff]  ;;  %v1873_v17 = vld [vmem:[#allocation7 + $0x198] sm:$0xff] }
  0x66   : > { %3974 = vmatmul.mubr.msk.f32.gmra.mrb[6].mxu0 %vm370_vm4, %v330_v8  ;;  %4323 = vmatprep.subr.bf16.mxu1 %v4939_v0  ;;  %v4333_v8 = vpack.c.bf16 %v1869_v3, %v1868_v2  ;;  %v1842_v19 = vld [vmem:[#allocation7 + $0xa0] sm:$0xff]  ;;  %v1843_v20 = vld [vmem:[#allocation7 + $0xa8] sm:$0xff]  ;;  %v344_v21 = vld [vmem:[%s5118_s17 + $0x88] sm:$0xff]  ;;  %v4339_v22 = vpack.c.bf16 %v1873_v17, %v1872_v16 }
  0x67   : > { %3976 = vmatprep.mubr.msk.f32.mxu0 %vm4940_vm0, %v4941_v1  ;;  %4274 = vmatpush1.bf16.msra.mxu0 %v4273_v38  ;;  %v4294_v23 = vpack.c.bf16 %v1843_v20, %v1842_v19  ;;  %v1844_v24 = vld [vmem:[#allocation7 + $0xb0] sm:$0xff]  ;;  %v1845_v25 = vld [vmem:[#allocation7 + $0xb8] sm:$0xff]  ;;  %v346_v28 = vld [vmem:[%s5118_s17 + $0x98] sm:$0xff] }
  0x68   : > { %4275 = vmatprep.subr.bf16.mxu0 %v4939_v0  ;;  %v345_v26 = vld [vmem:[%s5118_s17 + $0x90] sm:$0xff]  ;;  %v347_v29 = vld [vmem:[%s5118_s17 + $0xa0] sm:$0xff]  ;;  %v348_v30 = vld [vmem:[%s5118_s17 + $0xa8] sm:$0xff] }
  0x69   : > { %4325 = vmatpush1.bf16.msra.mxu1 %v4324_v49  ;;  %v1874_v31 = vld [vmem:[#allocation7 + $0x1a0] sm:$0xff]  ;;  %v1875_v32 = vld [vmem:[#allocation7 + $0x1a8] sm:$0xff]  ;;  %v349_v37 = vld [vmem:[%s5118_s17 + $0xb0] sm:$0xff] }
  0x6a   : > { %3977 = vmatmul.mubr.msk.f32.gmra.mrb[8].mxu0 %vm370_vm4, %v331_v9  ;;  %4326 = vmatprep.subr.bf16.mxu1 %v4939_v0  ;;  %v1870_v9 = vld [vmem:[#allocation7 + $0x180] sm:$0xff]  ;;  %v1847_v35 = vld [vmem:[#allocation7 + $0xc8] sm:$0xff]  ;;  %v1876_v38 = vld [vmem:[#allocation7 + $0x1b0] sm:$0xff] }
  0x6b   : > { %3979 = vmatprep.mubr.msk.f32.mxu0 %vm4940_vm0, %v4941_v1  ;;  %4277 = vmatpush1.bf16.msra.mxu0 %v4276_v45  ;;  %v1846_v33 = vld [vmem:[#allocation7 + $0xc0] sm:$0xff]  ;;  %v1877_v39 = vld [vmem:[#allocation7 + $0x1b8] sm:$0xff]  ;;  %v1848_v40 = vld [vmem:[#allocation7 + $0xd0] sm:$0xff] }
  0x6c   : > { %4278 = vmatprep.subr.bf16.mxu0 %v4939_v0  ;;  %v4300_v36 = vpack.c.bf16 %v1847_v35, %v1846_v33  ;;  %v1849_v42 = vld [vmem:[#allocation7 + $0xd8] sm:$0xff]  ;;  %v350_v44 = vld [vmem:[%s5118_s17 + $0xb8] sm:$0xff]  ;;  %v1879_v46 = vld [vmem:[#allocation7 + $0x1c8] sm:$0xff] }
  0x6d   : > { %4328 = vmatpush1.bf16.msra.mxu1 %v4327_v56  ;;  %v4303_v43 = vpack.c.bf16 %v1849_v42, %v1848_v40  ;;  %v1878_v45 = vld [vmem:[#allocation7 + $0x1c0] sm:$0xff]  ;;  %v1851_v49 = vld [vmem:[#allocation7 + $0xe8] sm:$0xff]  ;;  %v1881_v53 = vld [vmem:[#allocation7 + $0x1d8] sm:$0xff] }
  0x6e   : > { %3980 = vmatmul.mubr.msk.f32.gmra.mrb[10].mxu0 %vm370_vm4, %v332_v10  ;;  %4329 = vmatprep.subr.bf16.mxu1 %v4939_v0  ;;  %v1871_v10 = vld [vmem:[#allocation7 + $0x188] sm:$0xff]  ;;  %v1850_v47 = vld [vmem:[#allocation7 + $0xe0] sm:$0xff]  ;;  %v1852_v54 = vld [vmem:[#allocation7 + $0xf0] sm:$0xff] }
  0x6f   : > { %3982 = vmatprep.mubr.msk.f32.mxu0 %vm4940_vm0, %v4941_v1  ;;  %4280 = vmatpush1.bf16.msra.mxu0 %v4279_v52  ;;  %v4336_v15 = vpack.c.bf16 %v1871_v10, %v1870_v9  ;;  %v4306_v50 = vpack.c.bf16 %v1851_v49, %v1850_v47  ;;  %v351_v51 = vld [vmem:[%s5118_s17 + $0xc0] sm:$0xff]  ;;  %v1880_v52 = vld [vmem:[#allocation7 + $0x1d0] sm:$0xff]  ;;  %v1853_v56 = vld [vmem:[#allocation7 + $0xf8] sm:$0xff] }
  0x70   : > { %4281 = vmatprep.subr.bf16.mxu0 %v4939_v0  ;;  %v4309_v57 = vpack.c.bf16 %v1853_v56, %v1852_v54  ;;  %v352_v58 = vld [vmem:[%s5118_s17 + $0xc8] sm:$0xff]  ;;  %v1883_v60 = vld [vmem:[#allocation7 + $0x1e8] sm:$0xff]  ;;  %v1885_v2 = vld [vmem:[#allocation7 + $0x1f8] sm:$0xff] }
  0x71   : > { %4331 = vmatpush1.bf16.msra.mxu1 %v4330_v63  ;;  %v1884_v63 = vld [vmem:[#allocation7 + $0x1f0] sm:$0xff]  ;;  %v359_v9 = vld [vmem:[%s5118_s17 + $0x100] sm:$0xff]  ;;  %v366_v16 = vld [vmem:[%s5118_s17 + $0x138] sm:$0xff] }
  0x72   : > { %3983 = vmatmul.mubr.msk.f32.gmra.mrb[12].mxu0 %vm370_vm4, %v333_v11  ;;  %4332 = vmatprep.subr.bf16.mxu1 %v4939_v0  ;;  %v4288_v11 = vpack.c.bf16 %v1839_v6, %v1838_v5  ;;  %v4357_v3 = vpack.c.bf16 %v1885_v2, %v1884_v63  ;;  %v355_v5 = vld [vmem:[%s5118_s17 + $0xe0] sm:$0xff]  ;;  %v356_v6 = vld [vmem:[%s5118_s17 + $0xe8] sm:$0xff]  ;;  %v1886_v42 = vld [vmem:[#allocation7 + $0x200] sm:$0xff] }
  0x73   : > { %3985 = vmatprep.mubr.msk.f32.mxu0 %vm4940_vm0, %v4941_v1  ;;  %4283 = vmatpush1.bf16.msra.mxu0 %v4282_v59  ;;  %v1882_v59 = vld [vmem:[#allocation7 + $0x1e0] sm:$0xff]  ;;  %v360_v10 = vld [vmem:[%s5118_s17 + $0x108] sm:$0xff]  ;;  %v367_v17 = vld [vmem:[%s5118_s17 + $0x140] sm:$0x3f] }
  0x74   : > { %4284 = vmatprep.subr.bf16.mxu0 %v4939_v0  ;;  %v4354_v61 = vpack.c.bf16 %v1883_v60, %v1882_v59  ;;  %v1951_v19 = vld [vmem:[#allocation7 + $0x408] sm:$0xff]  ;;  %v1889_v54 = vld [vmem:[#allocation7 + $0x218] sm:$0xff]  ;;  %v1890_v63 = vld [vmem:[#allocation7 + $0x220] sm:$0xff] }
  0x75   : > { %4334 = vmatpush1.bf16.msra.mxu1 %v4333_v8  ;;  %v358_v8 = vld [vmem:[%s5118_s17 + $0xf8] sm:$0xff] }
  0x76   : > { %3986 = vmatmul.mubr.msk.f32.gmra.mrb[14].mxu0 %vm370_vm4, %v334_v12  ;;  %v1840_v12 = vld [vmem:[#allocation7 + $0x90] sm:$0xff]  ;;  %4335 = vmatprep.subr.bf16.mxu1 %v4939_v0 }
  0x77   : > { %3988 = vmatprep.mubr.msk.f32.mxu0 %vm4940_vm0, %v4941_v1  ;;  %4286 = vmatpush1.bf16.msra.mxu0 %v4285_v4  ;;  %v354_v4 = vld [vmem:[%s5118_s17 + $0xd8] sm:$0xff] }
  0x78   : > { %4287 = vmatprep.subr.bf16.mxu0 %v4939_v0 }
  0x79   : > { %4337 = vmatpush1.bf16.msra.mxu1 %v4336_v15  ;;  %v365_v15 = vld [vmem:[%s5118_s17 + $0x130] sm:$0xff] }
  0x7a   : > { %3989 = vmatmul.mubr.msk.f32.gmra.mrb[16].mxu0 %vm370_vm4, %v335_v13  ;;  %v1841_v13 = vld [vmem:[#allocation7 + $0x98] sm:$0xff]  ;;  %4338 = vmatprep.subr.bf16.mxu1 %v4939_v0 }
  0x7b   : > { %3991 = vmatprep.mubr.msk.f32.mxu0 %vm4940_vm0, %v4941_v1  ;;  %4289 = vmatpush1.bf16.msra.mxu0 %v4288_v11  ;;  %v4291_v18 = vpack.c.bf16 %v1841_v13, %v1840_v12  ;;  %v361_v11 = vld [vmem:[%s5118_s17 + $0x110] sm:$0xff]  ;;  %v362_v12 = vld [vmem:[%s5118_s17 + $0x118] sm:$0xff]  ;;  %v363_v13 = vld [vmem:[%s5118_s17 + $0x120] sm:$0xff] }
  0x7c   : > { %4290 = vmatprep.subr.bf16.mxu0 %v4939_v0 }
  0x7d   : > { %4340 = vmatpush1.bf16.msra.mxu1 %v4339_v22 }
  0x7e   : > { %3992 = vmatmul.mubr.msk.f32.gmra.mrb[18].mxu0 %vm370_vm4, %v336_v27  ;;  %4341 = vmatprep.subr.bf16.mxu1 %v4939_v0  ;;  %v4297_v27 = vpack.c.bf16 %v1845_v25, %v1844_v24 }
  0x7f   : > { %3994 = vmatprep.mubr.msk.f32.mxu0 %vm4940_vm0, %v4941_v1  ;;  %4292 = vmatpush1.bf16.msra.mxu0 %v4291_v18  ;;  %v1950_v18 = vld [vmem:[#allocation7 + $0x400] sm:$0xff] }
  0x80   : > { %4293 = vmatprep.subr.bf16.mxu0 %v4939_v0  ;;  %v4455_v20 = vpack.c.bf16 %v1951_v19, %v1950_v18  ;;  %v1962_v18 = vld [vmem:[#allocation7 + $0x460] sm:$0xff]  ;;  %v1963_v19 = vld [vmem:[#allocation7 + $0x468] sm:$0xff] }
  0x82   : > { %3995 = vmatmul.mubr.msk.f32.gmra.mrb[20].mxu0 %vm370_vm4, %v337_v34  ;;  %v4342_v34 = vpack.c.bf16 %v1875_v32, %v1874_v31 }
  0x83   : > { %3997 = vmatprep.mubr.msk.f32.mxu0 %vm4940_vm0, %v4941_v1  ;;  %4295 = vmatpush1.bf16.msra.mxu0 %v4294_v23 }
  0x84   : > { %4296 = vmatprep.subr.bf16.mxu0 %v4939_v0  ;;  %4343 = vmatpush1.bf16.msra.mxu1 %v4342_v34 }
  0x85   : > { %4344 = vmatprep.subr.bf16.mxu1 %v4939_v0 }
  0x86   : > { %3998 = vmatmul.mubr.msk.f32.gmra.mrb[22].mxu0 %vm370_vm4, %v338_v41  ;;  %v4345_v41 = vpack.c.bf16 %v1877_v39, %v1876_v38 }
  0x87   : > { %4000 = vmatprep.mubr.msk.f32.mxu0 %vm4940_vm0, %v4941_v1  ;;  %4298 = vmatpush1.bf16.msra.mxu0 %v4297_v27 }
  0x88   : > { %4299 = vmatprep.subr.bf16.mxu0 %v4939_v0  ;;  %4346 = vmatpush1.bf16.msra.mxu1 %v4345_v41 }
  0x89   : > { %4347 = vmatprep.subr.bf16.mxu1 %v4939_v0 }
  0x8a   : > { %4001 = vmatmul.mubr.msk.f32.gmra.mrb[24].mxu0 %vm370_vm4, %v339_v48  ;;  %v4348_v48 = vpack.c.bf16 %v1879_v46, %v1878_v45  ;;  %v1956_v45 = vld [vmem:[#allocation7 + $0x430] sm:$0xff]  ;;  %v1957_v46 = vld [vmem:[#allocation7 + $0x438] sm:$0xff] }
  0x8b   : > { %4003 = vmatprep.mubr.msk.f32.mxu0 %vm4940_vm0, %v4941_v1  ;;  %4301 = vmatpush1.bf16.msra.mxu0 %v4300_v36  ;;  %v1954_v36 = vld [vmem:[#allocation7 + $0x420] sm:$0xff] }
  0x8c   : > { %4302 = vmatprep.subr.bf16.mxu0 %v4939_v0  ;;  %4349 = vmatpush1.bf16.msra.mxu1 %v4348_v48 }
  0x8d   : > { %4350 = vmatprep.subr.bf16.mxu1 %v4939_v0 }
  0x8e   : > { %4004 = vmatmul.mubr.msk.f32.gmra.mrb[26].mxu0 %vm370_vm4, %v340_v55  ;;  %v4351_v55 = vpack.c.bf16 %v1881_v53, %v1880_v52 }
  0x8f   : > { %4006 = vmatprep.mubr.msk.f32.mxu0 %vm4940_vm0, %v4941_v1  ;;  %4304 = vmatpush1.bf16.msra.mxu0 %v4303_v43  ;;  %v1887_v43 = vld [vmem:[#allocation7 + $0x208] sm:$0xff] }
  0x90   : > { %4305 = vmatprep.subr.bf16.mxu0 %v4939_v0  ;;  %4352 = vmatpush1.bf16.msra.mxu1 %v4351_v55  ;;  %v4467_v55 = vpack.c.bf16 %v1957_v46, %v1956_v45  ;;  %v1899_v46 = vld [vmem:[#allocation7 + $0x268] sm:$0xff] }
  0x91   : > { %4353 = vmatprep.subr.bf16.mxu1 %v4939_v0 }
  0x92   : > { %4007 = vmatmul.mubr.msk.f32.gmra.mrb[28].mxu0 %vm370_vm4, %v341_v62  ;;  %v353_v62 = vld [vmem:[%s5118_s17 + $0xd0] sm:$0xff] }
  0x93   : > { %4009 = vmatprep.mubr.msk.f32.mxu0 %vm4940_vm0, %v4941_v1  ;;  %4307 = vmatpush1.bf16.msra.mxu0 %v4306_v50  ;;  %v4360_v50 = vpack.c.bf16 %v1887_v43, %v1886_v42  ;;  %v1898_v43 = vld [vmem:[#allocation7 + $0x260] sm:$0xff] }
  0x94   : > { %4308 = vmatprep.subr.bf16.mxu0 %v4939_v0  ;;  %4355 = vmatpush1.bf16.msra.mxu1 %v4354_v61 }
  0x95   : > { %4356 = vmatprep.subr.bf16.mxu1 %v4939_v0 }
  0x96   : > { %4010 = vmatmul.mubr.msk.f32.gmra.mrb[30].mxu0 %vm370_vm4, %v342_v7  ;;  %v357_v7 = vld [vmem:[%s5118_s17 + $0xf0] sm:$0xff] }
  0x97   : > { %4012 = vmatprep.mubr.msk.f32.mxu0 %vm4940_vm0, %v4941_v1  ;;  %4310 = vmatpush1.bf16.msra.mxu0 %v4309_v57  ;;  %v1958_v57 = vld [vmem:[#allocation7 + $0x440] sm:$0xff] }
  0x98   : > { %4358 = vmatpush1.bf16.msra.mxu1 %v4357_v3  ;;  %4456 = vmatprep.subr.bf16.mxu0 %v4455_v20 }
  0x99   : > { %4359 = vmatprep.subr.bf16.mxu1 %v4939_v0 }
  0x9a   : > { %4013 = vmatmul.mubr.msk.f32.gmra.mrb[32].mxu0 %vm370_vm4, %v343_v14  ;;  %v364_v14 = vld [vmem:[%s5118_s17 + $0x128] sm:$0xff]  ;;  %s4735_s17 = smul.u32 288, %s314_s15 }
  0x9b   : > { %4015 = vmatprep.mubr.msk.f32.mxu0 %vm4940_vm0, %v4941_v1 }
  0x9c   : > { %s5852_s13 = scalar_lea.vmem [#allocation9], %s4735_s17 }
  0x9d   : > { %s3660_s21 = sshll.u32 %s5852_s13, 4  ;;  %s5963_s21 = int_to_ptr.vmem [resolvable:$true] %s3660_s21 }
  0x9e   : > { %4016 = vmatmul.mubr.msk.f32.gmra.mrb[34].mxu0 %vm370_vm4, %v344_v21  ;;  %s4863_s8 = scalar_lea.vmem %s5963_s21, 4608  ;;  %p4870_p4 = scmp.lt.s32.totalorder %s5963_s21, %s4868_s10 }
  0x9f   : > { %4018 = vmatprep.mubr.msk.f32.mxu0 %vm4940_vm0, %v4941_v1  ;;  %p4864_p10 = scmp.ne.s32.totalorder %s5963_s21, %s4863_s8  ;;  %p4871_p7 = scmp.lt.s32.totalorder %s4869_s19, %s4863_s8 }
  0xa1   : > { %p4865_p2 = pnand %p4864_p10, %p6073_p1  ;;  %p4872_p8 = por %p4871_p7, %p4870_p4 }
  0xa2   : > { %4019 = vmatmul.mubr.msk.f32.gmra.mrb[36].mxu0 %vm370_vm4, %v345_v26 }
  0xa3   : > { %4021 = vmatprep.mubr.msk.f32.mxu0 %vm4940_vm0, %v4941_v1  ;;  %p4866_p3 = pneg %p4865_p2 }
  0xa5   : > { %p4873_p11 = pnand %p4872_p8, %p4866_p3 }
  0xa6   : > { %4022 = vmatmul.mubr.msk.f32.gmra.mrb[38].mxu0 %vm370_vm4, %v346_v28 }
  0xa7   : > { %4024 = vmatprep.mubr.msk.f32.mxu0 %vm4940_vm0, %v4941_v1 }
  0xaa   : > { %4025 = vmatmul.mubr.msk.f32.gmra.mrb[40].mxu0 %vm370_vm4, %v347_v29 }
  0xab   : > { %4027 = vmatprep.mubr.msk.f32.mxu0 %vm4940_vm0, %v4941_v1 }
  0xae   : > { %4028 = vmatmul.mubr.msk.f32.gmra.mrb[42].mxu0 %vm370_vm4, %v348_v30  ;;  %v1953_v30 = vld [vmem:[#allocation7 + $0x418] sm:$0xff] }
  0xaf   : > { %4030 = vmatprep.mubr.msk.f32.mxu0 %vm4940_vm0, %v4941_v1 }
  0xb2   : > { %4031 = vmatmul.mubr.msk.f32.gmra.mrb[44].mxu0 %vm370_vm4, %v349_v37  ;;  %v1955_v37 = vld [vmem:[#allocation7 + $0x428] sm:$0xff] }
  0xb3   : > { %4033 = vmatprep.mubr.msk.f32.mxu0 %vm4940_vm0, %v4941_v1 }
  0xb6   : > { %4034 = vmatmul.mubr.msk.f32.gmra.mrb[46].mxu0 %vm370_vm4, %v350_v44  ;;  %v4463_v44 = vpack.c.bf16 %v1955_v37, %v1954_v36  ;;  %v1897_v37 = vld [vmem:[#allocation7 + $0x258] sm:$0xff] }
  0xb7   : > { %4036 = vmatprep.mubr.msk.f32.mxu0 %vm4940_vm0, %v4941_v1 }
  0xba   : > { %4037 = vmatmul.mubr.msk.f32.gmra.mrb[48].mxu0 %vm370_vm4, %v351_v51  ;;  %v1888_v51 = vld [vmem:[#allocation7 + $0x210] sm:$0xff] }
  0xbb   : > { %4039 = vmatprep.mubr.msk.f32.mxu0 %vm4940_vm0, %v4941_v1 }
  0xbe   : > { %4040 = vmatmul.mubr.msk.f32.gmra.mrb[50].mxu0 %vm370_vm4, %v352_v58  ;;  %v1959_v58 = vld [vmem:[#allocation7 + $0x448] sm:$0xff] }
  0xbf   : > { %4042 = vmatprep.mubr.msk.f32.mxu0 %vm4940_vm0, %v4941_v1 }
  0xc2   : > { %4043 = vmatmul.mubr.msk.f32.gmra.mrb[52].mxu0 %vm370_vm4, %v353_v62  ;;  %v4363_v62 = vpack.c.bf16 %v1889_v54, %v1888_v51  ;;  %v1900_v51 = vld [vmem:[#allocation7 + $0x270] sm:$0xff]  ;;  %v1901_v54 = vld [vmem:[#allocation7 + $0x278] sm:$0xff] }
  0xc3   : > { %4045 = vmatprep.mubr.msk.f32.mxu0 %vm4940_vm0, %v4941_v1 }
  0xc6   : > { %4046 = vmatmul.mubr.msk.f32.gmra.mrb[54].mxu0 %vm370_vm4, %v354_v4  ;;  %v1891_v4 = vld [vmem:[#allocation7 + $0x228] sm:$0xff] }
  0xc7   : > { %4048 = vmatprep.mubr.msk.f32.mxu0 %vm4940_vm0, %v4941_v1 }
  0xca   : > { %4049 = vmatmul.mubr.msk.f32.gmra.mrb[56].mxu0 %vm370_vm4, %v355_v5  ;;  %v4471_v5 = vpack.c.bf16 %v1959_v58, %v1958_v57  ;;  %v4381_v58 = vpack.c.bf16 %v1901_v54, %v1900_v51 }
  0xcb   : > { %4051 = vmatprep.mubr.msk.f32.mxu0 %vm4940_vm0, %v4941_v1 }
  0xce   : > { %4052 = vmatmul.mubr.msk.f32.gmra.mrb[58].mxu0 %vm370_vm4, %v356_v6 }
  0xcf   : > { %4054 = vmatprep.mubr.msk.f32.mxu0 %vm4940_vm0, %v4941_v1 }
  0xd2   : > { %4055 = vmatmul.mubr.msk.f32.gmra.mrb[60].mxu0 %vm370_vm4, %v357_v7  ;;  %v1960_v7 = vld [vmem:[#allocation7 + $0x450] sm:$0xff] }
  0xd3   : > { %4057 = vmatprep.mubr.msk.f32.mxu0 %vm4940_vm0, %v4941_v1 }
  0xd6   : > { %4058 = vmatmul.mubr.msk.f32.gmra.mrb[62].mxu0 %vm370_vm4, %v358_v8  ;;  %v1961_v8 = vld [vmem:[#allocation7 + $0x458] sm:$0xff] }
  0xd7   : > { %4060 = vmatprep.mubr.msk.f32.mxu0 %vm4940_vm0, %v4941_v1 }
  0xda   : > { %4061 = vmatmul.mubr.msk.f32.gmra.mrb[64].mxu0 %vm370_vm4, %v359_v9 }
  0xdb   : > { %4063 = vmatprep.mubr.msk.f32.mxu0 %vm4940_vm0, %v4941_v1 }
  0xde   : > { %4064 = vmatmul.mubr.msk.f32.gmra.mrb[66].mxu0 %vm370_vm4, %v360_v10 }
  0xdf   : > { %4066 = vmatprep.mubr.msk.f32.mxu0 %vm4940_vm0, %v4941_v1 }
  0xe2   : > { %4067 = vmatmul.mubr.msk.f32.gmra.mrb[68].mxu0 %vm370_vm4, %v361_v11 }
  0xe3   : > { %4069 = vmatprep.mubr.msk.f32.mxu0 %vm4940_vm0, %v4941_v1 }
  0xe6   : > { %4070 = vmatmul.mubr.msk.f32.gmra.mrb[70].mxu0 %vm370_vm4, %v362_v12  ;;  %v4366_v12 = vpack.c.bf16 %v1891_v4, %v1890_v63 }
  0xe7   : > { %4072 = vmatprep.mubr.msk.f32.mxu0 %vm4940_vm0, %v4941_v1 }
  0xea   : > { %4073 = vmatmul.mubr.msk.f32.gmra.mrb[72].mxu0 %vm370_vm4, %v363_v13  ;;  %v1892_v13 = vld [vmem:[#allocation7 + $0x230] sm:$0xff] }
  0xeb   : > { %4075 = vmatprep.mubr.msk.f32.mxu0 %vm4940_vm0, %v4941_v1 }
  0xee   : > { %4076 = vmatmul.mubr.msk.f32.gmra.mrb[74].mxu0 %vm370_vm4, %v364_v14 }
  0xef   : > { %4078 = vmatprep.mubr.msk.f32.mxu0 %vm4940_vm0, %v4941_v1 }
  0xf2   : > { %4079 = vmatmul.mubr.msk.f32.gmra.mrb[76].mxu0 %vm370_vm4, %v365_v15 }
  0xf3   : > { %4081 = vmatprep.mubr.msk.f32.mxu0 %vm4940_vm0, %v4941_v1 }
  0xf6   : > { %4082 = vmatmul.mubr.msk.f32.gmra.mrb[78].mxu0 %vm370_vm4, %v366_v16  ;;  %v1893_v16 = vld [vmem:[#allocation7 + $0x238] sm:$0xff] }
  0xf7   : > { %4084 = vmatprep.mubr.msk.f32.mxu0 %vm4940_vm0, %v4941_v1  ;;  %v1952_v1 = vld [vmem:[#allocation7 + $0x410] sm:$0xff] }
  0xf8   : > { %v4459_v35 = vpack.c.bf16 %v1953_v30, %v1952_v1  ;;  %v1965_v1 = vld [vmem:[#allocation7 + $0x478] sm:$0xff] }
  0xfa   : > { %4085 = vmatmul.mubr.msk.f32.gmra.mrb[80].mxu0 %vm370_vm4, %v367_v17  ;;  %v4475_v17 = vpack.c.bf16 %v1961_v8, %v1960_v7  ;;  %v1905_v8 = vld [vmem:[#allocation7 + $0x298] sm:$0xff] }
 0x12d   : > { %v564_v21 = vpop.f32.mrb[0].mxu0 }
 0x12e   : > { %v768_v22 = vmax.f32 %v564_v21, 0.0  ;;  %v3966_v23 = vpop.f32.mrb[1].mxu0 }
 0x12f   : > { %v4369_v23 = vpack.c.bf16 %v1893_v16, %v1892_v13  ;;  %v1906_v13 = vld [vmem:[#allocation7 + $0x2a0] sm:$0xff]  ;;  %v1907_v16 = vld [vmem:[#allocation7 + $0x2a8] sm:$0xff] }
 0x130   : > { %809 = vst [vmem:[#allocation2] sm:$0xff] %v768_v22 }
 0x131   : > { %v569_v24 = vpop.f32.mrb[2].mxu0 }
 0x132   : > { %v769_v25 = vmax.f32 %v569_v24, 0.0  ;;  %v3969_v26 = vpop.f32.mrb[3].mxu0  ;;  %v1894_v24 = vld [vmem:[#allocation7 + $0x240] sm:$0xff] }
 0x134   : > { %810 = vst [vmem:[#allocation2 + $0x8] sm:$0xff] %v769_v25 }
 0x135   : > { %v574_v27 = vpop.f32.mrb[4].mxu0 }
 0x136   : > { %v770_v28 = vmax.f32 %v574_v27, 0.0  ;;  %v3972_v29 = vpop.f32.mrb[5].mxu0  ;;  %v1895_v27 = vld [vmem:[#allocation7 + $0x248] sm:$0xff] }
 0x137   : > { %v1964_v29 = vld [vmem:[#allocation7 + $0x470] sm:$0xff] }
 0x138   : > { %811 = vst [vmem:[#allocation2 + $0x10] sm:$0xff] %v770_v28 }
 0x139   : > { %v5314_v31 = vpop.f32.mrb[6].mxu0 }
 0x13a   : > { %v771_v32 = vmax.f32 %v5314_v31, 0.0  ;;  %v3975_v33 = vpop.f32.mrb[7].mxu0 }
 0x13b   : > { %v922_v34 = vld [vmem:[#allocation2 + $0x1] sm:$0xff]  ;;  %v4372_v33 = vpack.c.bf16 %v1895_v27, %v1894_v24  ;;  %v1909_v24 = vld [vmem:[#allocation7 + $0x2b8] sm:$0xff] }
 0x13c   : > { %812 = vst [vmem:[#allocation2 + $0x18] sm:$0xff] %v771_v32  ;;  %2037 = vmatprep.mubr.f32.mxu0 %v922_v34  ;;  %v994_v56 = vld [vmem:[#allocation2 + $0x2] sm:$0xff] }
 0x13d   : > { %v5317_v38 = vpop.f32.mrb[8].mxu0  ;;  %2038 = vmatmul.mubr.f32.vlgmr.msra.gmra.mrb[82].mxu0 %v768_v22  ;;  %v1896_v34 = vld [vmem:[#allocation7 + $0x250] sm:$0xff] }
 0x13e   : > { %v772_v39 = vmax.f32 %v5317_v38, 0.0  ;;  %v3978_v40 = vpop.f32.mrb[9].mxu0  ;;  %4458 = vmatpush3.bf16.msra.mxu0 %v4455_v20  ;;  %v4483_v38 = vpack.c.bf16 %v1965_v1, %v1964_v29  ;;  %v4375_v42 = vpack.c.bf16 %v1897_v37, %v1896_v34  ;;  %v1910_v29 = vld [vmem:[#allocation7 + $0x2c0] sm:$0xff] }
 0x13f   : > { %v923_v41 = vld [vmem:[#allocation2 + $0x9] sm:$0xff]  ;;  %4460 = vmatprep.subr.bf16.mxu0 %v4459_v35 }
 0x140   : > { %813 = vst [vmem:[#allocation2 + $0x20] sm:$0xff] %v772_v39  ;;  %2042 = vmatprep.mubr.f32.mxu0 %v923_v41  ;;  %v995_v6 = vld [vmem:[#allocation2 + $0xa] sm:$0xff] }
 0x141   : > { %v5322_v47 = vpop.f32.mrb[10].mxu0  ;;  %2043 = vmatmul.mubr.f32.gmra.mrb[84].mxu0 %v769_v25 }
 0x142   : > { %v773_v48 = vmax.f32 %v5322_v47, 0.0  ;;  %v3981_v49 = vpop.f32.mrb[11].mxu0  ;;  %4462 = vmatpush3.bf16.msra.mxu0 %v4459_v35 }
 0x143   : > { %v924_v52 = vld [vmem:[#allocation2 + $0x11] sm:$0xff]  ;;  %4464 = vmatprep.subr.bf16.mxu0 %v4463_v44 }
 0x144   : > { %v1066_v53 = vld [vmem:[#allocation2 + $0x12] sm:$0xff]  ;;  %814 = vst [vmem:[#allocation2 + $0x28] sm:$0xff] %v773_v48  ;;  %2047 = vmatprep.mubr.f32.mxu0 %v924_v52 }
 0x145   : > { %2282 = vmatprep.mubr.f32.mxu1 %v1066_v53  ;;  %v5327_v59 = vpop.f32.mrb[12].mxu0  ;;  %2048 = vmatmul.mubr.f32.gmra.mrb[86].mxu0 %v770_v28  ;;  %v4479_v28 = vpack.c.bf16 %v1963_v19, %v1962_v18 }
 0x146   : > { %2283 = vmatmul.mubr.f32.vlgmr.msra.gmra.mrb[0].mxu1 %v994_v56  ;;  %v774_v60 = vmax.f32 %v5327_v59, 0.0  ;;  %v3984_v61 = vpop.f32.mrb[13].mxu0  ;;  %4466 = vmatpush3.bf16.msra.mxu0 %v4463_v44  ;;  %v1902_v59 = vld [vmem:[#allocation7 + $0x280] sm:$0xff] }
 0x147   : > { %4361 = vmatpush1.bf16.msra.mxu1 %v4360_v50  ;;  %v925_v2 = vld [vmem:[#allocation2 + $0x19] sm:$0xff]  ;;  %4468 = vmatprep.subr.bf16.mxu0 %v4467_v55  ;;  %v4378_v50 = vpack.c.bf16 %v1899_v46, %v1898_v43 }
 0x148   : > { %v1067_v3 = vld [vmem:[#allocation2 + $0x1a] sm:$0xff]  ;;  %4362 = vmatprep.subr.bf16.mxu1 %v4939_v0  ;;  %815 = vst [vmem:[#allocation2 + $0x30] sm:$0xff] %v774_v60  ;;  %2052 = vmatprep.mubr.f32.mxu0 %v925_v2 }
 0x149   : > { %2287 = vmatprep.mubr.f32.mxu1 %v1067_v3  ;;  %v5333_v9 = vpop.f32.mrb[14].mxu0  ;;  %2053 = vmatmul.mubr.f32.gmra.mrb[88].mxu0 %v771_v32 }
 0x14a   : > { %2288 = vmatmul.mubr.f32.gmra.mrb[2].mxu1 %v995_v6  ;;  %v775_v10 = vmax.f32 %v5333_v9, 0.0  ;;  %v3987_v11 = vpop.f32.mrb[15].mxu0  ;;  %4470 = vmatpush3.bf16.msra.mxu0 %v4467_v55 }
 0x14b   : > { %4364 = vmatpush1.bf16.msra.mxu1 %v4363_v62  ;;  %v926_v14 = vld [vmem:[#allocation2 + $0x21] sm:$0xff]  ;;  %4472 = vmatprep.subr.bf16.mxu0 %v4471_v5 }
 0x14c   : > { %v1068_v15 = vld [vmem:[#allocation2 + $0x22] sm:$0xff]  ;;  %4365 = vmatprep.subr.bf16.mxu1 %v4939_v0  ;;  %816 = vst [vmem:[#allocation2 + $0x38] sm:$0xff] %v775_v10  ;;  %2057 = vmatprep.mubr.f32.mxu0 %v926_v14 }
 0x14d   : > { %2292 = vmatprep.mubr.f32.mxu1 %v1068_v15  ;;  %v5339_v20 = vpop.f32.mrb[16].mxu0  ;;  %2058 = vmatmul.mubr.f32.gmra.mrb[90].mxu0 %v772_v39  ;;  %v1903_v62 = vld [vmem:[#allocation7 + $0x288] sm:$0xff] }
 0x14e   : > { %2293 = vmatmul.mubr.f32.gmra.mrb[4].mxu1 %v1066_v53  ;;  %v776_v21 = vmax.f32 %v5339_v20, 0.0  ;;  %v3990_v22 = vpop.f32.mrb[17].mxu0  ;;  %4474 = vmatpush3.bf16.msra.mxu0 %v4471_v5  ;;  %v4384_v4 = vpack.c.bf16 %v1903_v62, %v1902_v59  ;;  %v1904_v5 = vld [vmem:[#allocation7 + $0x290] sm:$0xff]  ;;  %v4390_v20 = vpack.c.bf16 %v1907_v16, %v1906_v13 }
 0x14f   : > { %4367 = vmatpush1.bf16.msra.mxu1 %v4366_v12  ;;  %v927_v25 = vld [vmem:[#allocation2 + $0x29] sm:$0xff]  ;;  %4476 = vmatprep.subr.bf16.mxu0 %v4475_v17  ;;  %v4387_v12 = vpack.c.bf16 %v1905_v8, %v1904_v5 }
 0x150   : > { %v1069_v26 = vld [vmem:[#allocation2 + $0x2a] sm:$0xff]  ;;  %4368 = vmatprep.subr.bf16.mxu1 %v4939_v0  ;;  %817 = vst [vmem:[#allocation2 + $0x40] sm:$0xff] %v776_v21  ;;  %2062 = vmatprep.mubr.f32.mxu0 %v927_v25 }
 0x151   : > { %2297 = vmatprep.mubr.f32.mxu1 %v1069_v26  ;;  %v5347_v30 = vpop.f32.mrb[18].mxu0  ;;  %2063 = vmatmul.mubr.f32.gmra.mrb[92].mxu0 %v773_v48 }
 0x152   : > { %2298 = vmatmul.mubr.f32.gmra.mrb[6].mxu1 %v1067_v3  ;;  %v777_v31 = vmax.f32 %v5347_v30, 0.0  ;;  %v3993_v32 = vpop.f32.mrb[19].mxu0  ;;  %4478 = vmatpush3.bf16.msra.mxu0 %v4475_v17 }
 0x153   : > { %4370 = vmatpush1.bf16.msra.mxu1 %v4369_v23  ;;  %v928_v35 = vld [vmem:[#allocation2 + $0x31] sm:$0xff]  ;;  %4480 = vmatprep.subr.bf16.mxu0 %v4479_v28 }
 0x154   : > { %v1070_v36 = vld [vmem:[#allocation2 + $0x32] sm:$0xff]  ;;  %4371 = vmatprep.subr.bf16.mxu1 %v4939_v0  ;;  %818 = vst [vmem:[#allocation2 + $0x48] sm:$0xff] %v777_v31  ;;  %2067 = vmatprep.mubr.f32.mxu0 %v928_v35 }
 0x155   : > { %2302 = vmatprep.mubr.f32.mxu1 %v1070_v36  ;;  %v5355_v39 = vpop.f32.mrb[20].mxu0  ;;  %2068 = vmatmul.mubr.f32.gmra.mrb[94].mxu0 %v774_v60 }
 0x156   : > { %2303 = vmatmul.mubr.f32.gmra.mrb[8].mxu1 %v1068_v15  ;;  %v778_v40 = vmax.f32 %v5355_v39, 0.0  ;;  %v3996_v41 = vpop.f32.mrb[21].mxu0  ;;  %4482 = vmatpush3.bf16.msra.mxu0 %v4479_v28  ;;  %v1913_v39 = vld [vmem:[#allocation7 + $0x2d8] sm:$0xff] }
 0x157   : > { %4373 = vmatpush1.bf16.msra.mxu1 %v4372_v33  ;;  %v929_v44 = vld [vmem:[#allocation2 + $0x39] sm:$0xff]  ;;  %4484 = vmatprep.subr.bf16.mxu0 %v4483_v38 }
 0x158   : > { %v1071_v45 = vld [vmem:[#allocation2 + $0x3a] sm:$0xff]  ;;  %4374 = vmatprep.subr.bf16.mxu1 %v4939_v0  ;;  %819 = vst [vmem:[#allocation2 + $0x50] sm:$0xff] %v778_v40  ;;  %2072 = vmatprep.mubr.f32.mxu0 %v929_v44 }
 0x159   : > { %2307 = vmatprep.mubr.f32.mxu1 %v1071_v45  ;;  %v619_v47 = vpop.f32.mrb[22].mxu0  ;;  %2073 = vmatmul.mubr.f32.gmra.mrb[96].mxu0 %v775_v10  ;;  %v1914_v44 = vld [vmem:[#allocation7 + $0x2e0] sm:$0xff] }
 0x15a   : > { %2308 = vmatmul.mubr.f32.gmra.mrb[10].mxu1 %v1069_v26  ;;  %v779_v48 = vmax.f32 %v619_v47, 0.0  ;;  %v3999_v49 = vpop.f32.mrb[23].mxu0  ;;  %4486 = vmatpush3.bf16.msra.mxu0 %v4483_v38  ;;  %v1915_v47 = vld [vmem:[#allocation7 + $0x2e8] sm:$0xff] }
 0x15b   : > { %4376 = vmatpush1.bf16.msra.mxu1 %v4375_v42  ;;  %v930_v52 = vld [vmem:[#allocation2 + $0x41] sm:$0xff]  ;;  %v4402_v51 = vpack.c.bf16 %v1915_v47, %v1914_v44 }
 0x15c   : > { %v1072_v53 = vld [vmem:[#allocation2 + $0x42] sm:$0xff]  ;;  %4377 = vmatprep.subr.bf16.mxu1 %v4939_v0  ;;  %820 = vst [vmem:[#allocation2 + $0x58] sm:$0xff] %v779_v48  ;;  %2077 = vmatprep.mubr.f32.mxu0 %v930_v52 }
 0x15d   : > { %2312 = vmatprep.mubr.f32.mxu1 %v1072_v53  ;;  %v624_v55 = vpop.f32.mrb[24].mxu0  ;;  %2078 = vmatmul.mubr.f32.gmra.mrb[98].mxu0 %v776_v21  ;;  %v1908_v21 = vld [vmem:[#allocation7 + $0x2b0] sm:$0xff] }
 0x15e   : > { %2313 = vmatmul.mubr.f32.gmra.mrb[12].mxu1 %v1070_v36  ;;  %v780_v56 = vmax.f32 %v624_v55, 0.0  ;;  %v4002_v57 = vpop.f32.mrb[25].mxu0  ;;  %v4393_v28 = vpack.c.bf16 %v1909_v24, %v1908_v21  ;;  %v1912_v36 = vld [vmem:[#allocation7 + $0x2d0] sm:$0xff]  ;;  %v1917_v55 = vld [vmem:[#allocation7 + $0x2f8] sm:$0xff] }
 0x15f   : > { %4379 = vmatpush1.bf16.msra.mxu1 %v4378_v50  ;;  %v931_v60 = vld [vmem:[#allocation2 + $0x49] sm:$0xff]  ;;  %v4399_v43 = vpack.c.bf16 %v1913_v39, %v1912_v36 }
 0x160   : > { %v1073_v61 = vld [vmem:[#allocation2 + $0x4a] sm:$0xff]  ;;  %4380 = vmatprep.subr.bf16.mxu1 %v4939_v0  ;;  %821 = vst [vmem:[#allocation2 + $0x60] sm:$0xff] %v780_v56  ;;  %2082 = vmatprep.mubr.f32.mxu0 %v931_v60 }
 0x161   : > { %2317 = vmatprep.mubr.f32.mxu1 %v1073_v61  ;;  %v629_v63 = vpop.f32.mrb[26].mxu0  ;;  %2083 = vmatmul.mubr.f32.gmra.mrb[100].mxu0 %v777_v31  ;;  %v1911_v31 = vld [vmem:[#allocation7 + $0x2c8] sm:$0xff]  ;;  %v1916_v52 = vld [vmem:[#allocation7 + $0x2f0] sm:$0xff] }
 0x162   : > { %2318 = vmatmul.mubr.f32.gmra.mrb[14].mxu1 %v1071_v45  ;;  %v781_v2 = vmax.f32 %v629_v63, 0.0  ;;  %v4005_v3 = vpop.f32.mrb[27].mxu0  ;;  %v4396_v35 = vpack.c.bf16 %v1911_v31, %v1910_v29  ;;  %v4405_v59 = vpack.c.bf16 %v1917_v55, %v1916_v52 }
 0x163   : > { %4382 = vmatpush1.bf16.msra.mxu1 %v4381_v58  ;;  %v932_v6 = vld [vmem:[#allocation2 + $0x51] sm:$0xff] }
 0x164   : > { %v1074_v7 = vld [vmem:[#allocation2 + $0x52] sm:$0xff]  ;;  %4383 = vmatprep.subr.bf16.mxu1 %v4939_v0  ;;  %822 = vst [vmem:[#allocation2 + $0x68] sm:$0xff] %v781_v2  ;;  %2087 = vmatprep.mubr.f32.mxu0 %v932_v6 }
 0x165   : > { %2322 = vmatprep.mubr.f32.mxu1 %v1074_v7  ;;  %v634_v9 = vpop.f32.mrb[28].mxu0  ;;  %2088 = vmatmul.mubr.f32.gmra.mrb[102].mxu0 %v778_v40 }
 0x166   : > { %2323 = vmatmul.mubr.f32.gmra.mrb[16].mxu1 %v1072_v53  ;;  %v782_v10 = vmax.f32 %v634_v9, 0.0  ;;  %v4008_v11 = vpop.f32.mrb[29].mxu0 }
 0x167   : > { %4385 = vmatpush1.bf16.msra.mxu1 %v4384_v4  ;;  %v933_v14 = vld [vmem:[#allocation2 + $0x59] sm:$0xff] }
 0x168   : > { %v1075_v15 = vld [vmem:[#allocation2 + $0x5a] sm:$0xff]  ;;  %4386 = vmatprep.subr.bf16.mxu1 %v4939_v0  ;;  %823 = vst [vmem:[#allocation2 + $0x70] sm:$0xff] %v782_v10  ;;  %2092 = vmatprep.mubr.f32.mxu0 %v933_v14 }
 0x169   : > { %2327 = vmatprep.mubr.f32.mxu1 %v1075_v15  ;;  %v639_v17 = vpop.f32.mrb[30].mxu0  ;;  %2093 = vmatmul.mubr.f32.gmra.mrb[104].mxu0 %v779_v48 }
 0x16a   : > { %2328 = vmatmul.mubr.f32.gmra.mrb[18].mxu1 %v1073_v61  ;;  %v783_v18 = vmax.f32 %v639_v17, 0.0  ;;  %v4011_v19 = vpop.f32.mrb[31].mxu0 }
 0x16b   : > { %4388 = vmatpush1.bf16.msra.mxu1 %v4387_v12  ;;  %v934_v22 = vld [vmem:[#allocation2 + $0x61] sm:$0xff] }
 0x16c   : > { %v1076_v23 = vld [vmem:[#allocation2 + $0x62] sm:$0xff]  ;;  %4389 = vmatprep.subr.bf16.mxu1 %v4939_v0  ;;  %824 = vst [vmem:[#allocation2 + $0x78] sm:$0xff] %v783_v18  ;;  %2097 = vmatprep.mubr.f32.mxu0 %v934_v22 }
 0x16d   : > { %2332 = vmatprep.mubr.f32.mxu1 %v1076_v23  ;;  %v644_v25 = vpop.f32.mrb[32].mxu0  ;;  %2098 = vmatmul.mubr.f32.gmra.mrb[106].mxu0 %v780_v56 }
 0x16e   : > { %2333 = vmatmul.mubr.f32.gmra.mrb[20].mxu1 %v1074_v7  ;;  %v784_v26 = vmax.f32 %v644_v25, 0.0  ;;  %v4014_v27 = vpop.f32.mrb[33].mxu0 }
 0x16f   : > { %4391 = vmatpush1.bf16.msra.mxu1 %v4390_v20  ;;  %v935_v1 = vld [vmem:[#allocation2 + $0x69] sm:$0xff] }
 0x170   : > { %v1077_v30 = vld [vmem:[#allocation2 + $0x6a] sm:$0xff]  ;;  %4392 = vmatprep.subr.bf16.mxu1 %v4939_v0  ;;  %825 = vst [vmem:[#allocation2 + $0x80] sm:$0xff] %v784_v26  ;;  %2102 = vmatprep.mubr.f32.mxu0 %v935_v1 }
 0x171   : > { %2337 = vmatprep.mubr.f32.mxu1 %v1077_v30  ;;  %v649_v32 = vpop.f32.mrb[34].mxu0  ;;  %2103 = vmatmul.mubr.f32.gmra.mrb[108].mxu0 %v781_v2 }
 0x172   : > { %2338 = vmatmul.mubr.f32.gmra.mrb[22].mxu1 %v1075_v15  ;;  %v785_v33 = vmax.f32 %v649_v32, 0.0  ;;  %v4017_v34 = vpop.f32.mrb[35].mxu0 }
 0x173   : > { %4394 = vmatpush1.bf16.msra.mxu1 %v4393_v28  ;;  %v936_v37 = vld [vmem:[#allocation2 + $0x71] sm:$0xff] }
 0x174   : > { %v1078_v38 = vld [vmem:[#allocation2 + $0x72] sm:$0xff]  ;;  %4395 = vmatprep.subr.bf16.mxu1 %v4939_v0  ;;  %826 = vst [vmem:[#allocation2 + $0x88] sm:$0xff] %v785_v33  ;;  %2107 = vmatprep.mubr.f32.mxu0 %v936_v37 }
 0x175   : > { %2342 = vmatprep.mubr.f32.mxu1 %v1078_v38  ;;  %v654_v40 = vpop.f32.mrb[36].mxu0  ;;  %2108 = vmatmul.mubr.f32.gmra.mrb[110].mxu0 %v782_v10 }
 0x176   : > { %2343 = vmatmul.mubr.f32.gmra.mrb[24].mxu1 %v1076_v23  ;;  %v786_v41 = vmax.f32 %v654_v40, 0.0  ;;  %v4020_v42 = vpop.f32.mrb[37].mxu0 }
 0x177   : > { %4397 = vmatpush1.bf16.msra.mxu1 %v4396_v35  ;;  %v937_v45 = vld [vmem:[#allocation2 + $0x79] sm:$0xff] }
 0x178   : > { %v1079_v46 = vld [vmem:[#allocation2 + $0x7a] sm:$0xff]  ;;  %4398 = vmatprep.subr.bf16.mxu1 %v4939_v0  ;;  %827 = vst [vmem:[#allocation2 + $0x90] sm:$0xff] %v786_v41  ;;  %2112 = vmatprep.mubr.f32.mxu0 %v937_v45 }
 0x179   : > { %2347 = vmatprep.mubr.f32.mxu1 %v1079_v46  ;;  %v659_v48 = vpop.f32.mrb[38].mxu0  ;;  %2113 = vmatmul.mubr.f32.gmra.mrb[112].mxu0 %v783_v18 }
 0x17a   : > { %2348 = vmatmul.mubr.f32.gmra.mrb[26].mxu1 %v1077_v30  ;;  %v787_v49 = vmax.f32 %v659_v48, 0.0  ;;  %v4023_v50 = vpop.f32.mrb[39].mxu0 }
 0x17b   : > { %4400 = vmatpush1.bf16.msra.mxu1 %v4399_v43  ;;  %v938_v53 = vld [vmem:[#allocation2 + $0x81] sm:$0xff] }
 0x17c   : > { %v1080_v54 = vld [vmem:[#allocation2 + $0x82] sm:$0xff]  ;;  %4401 = vmatprep.subr.bf16.mxu1 %v4939_v0  ;;  %828 = vst [vmem:[#allocation2 + $0x98] sm:$0xff] %v787_v49  ;;  %2117 = vmatprep.mubr.f32.mxu0 %v938_v53 }
 0x17d   : > { %2352 = vmatprep.mubr.f32.mxu1 %v1080_v54  ;;  %v664_v56 = vpop.f32.mrb[40].mxu0  ;;  %2118 = vmatmul.mubr.f32.gmra.mrb[114].mxu0 %v784_v26 }
 0x17e   : > { %2353 = vmatmul.mubr.f32.gmra.mrb[28].mxu1 %v1078_v38  ;;  %v788_v57 = vmax.f32 %v664_v56, 0.0  ;;  %v4026_v58 = vpop.f32.mrb[41].mxu0 }
 0x17f   : > { %4403 = vmatpush1.bf16.msra.mxu1 %v4402_v51  ;;  %v939_v60 = vld [vmem:[#allocation2 + $0x89] sm:$0xff] }
 0x180   : > { %v1081_v61 = vld [vmem:[#allocation2 + $0x8a] sm:$0xff]  ;;  %4404 = vmatprep.subr.bf16.mxu1 %v4939_v0  ;;  %829 = vst [vmem:[#allocation2 + $0xa0] sm:$0xff] %v788_v57  ;;  %2122 = vmatprep.mubr.f32.mxu0 %v939_v60 }
 0x181   : > { %2357 = vmatprep.mubr.f32.mxu1 %v1081_v61  ;;  %v669_v62 = vpop.f32.mrb[42].mxu0  ;;  %2123 = vmatmul.mubr.f32.gmra.mrb[116].mxu0 %v785_v33 }
 0x182   : > { %2358 = vmatmul.mubr.f32.gmra.mrb[30].mxu1 %v1079_v46  ;;  %v789_v63 = vmax.f32 %v669_v62, 0.0  ;;  %v4029_v2 = vpop.f32.mrb[43].mxu0 }
 0x183   : > { %4406 = vmatpush1.bf16.msra.mxu1 %v4405_v59  ;;  %v940_v3 = vld [vmem:[#allocation2 + $0x91] sm:$0xff] }
 0x184   : > { %v1082_v4 = vld [vmem:[#allocation2 + $0x92] sm:$0xff]  ;;  %4407 = vmatprep.subr.bf16.mxu1 %v4939_v0  ;;  %830 = vst [vmem:[#allocation2 + $0xa8] sm:$0xff] %v789_v63  ;;  %2127 = vmatprep.mubr.f32.mxu0 %v940_v3 }
 0x185   : > { %2362 = vmatprep.mubr.f32.mxu1 %v1082_v4  ;;  %v674_v5 = vpop.f32.mrb[44].mxu0  ;;  %2128 = vmatmul.mubr.f32.gmra.mrb[118].mxu0 %v786_v41 }
 0x186   : > { %2363 = vmatmul.mubr.f32.gmra.mrb[32].mxu1 %v1080_v54  ;;  %v790_v6 = vmax.f32 %v674_v5, 0.0  ;;  %v4032_v7 = vpop.f32.mrb[45].mxu0 }
 0x187   : > { %v941_v8 = vld [vmem:[#allocation2 + $0x99] sm:$0xff] }
 0x188   : > { %v1083_v9 = vld [vmem:[#allocation2 + $0x9a] sm:$0xff]  ;;  %831 = vst [vmem:[#allocation2 + $0xb0] sm:$0xff] %v790_v6  ;;  %2132 = vmatprep.mubr.f32.mxu0 %v941_v8 }
 0x189   : > { %2367 = vmatprep.mubr.f32.mxu1 %v1083_v9  ;;  %v679_v10 = vpop.f32.mrb[46].mxu0  ;;  %2133 = vmatmul.mubr.f32.gmra.mrb[120].mxu0 %v787_v49 }
 0x18a   : > { %2368 = vmatmul.mubr.f32.gmra.mrb[34].mxu1 %v1081_v61  ;;  %v791_v11 = vmax.f32 %v679_v10, 0.0  ;;  %v4035_v12 = vpop.f32.mrb[47].mxu0 }
 0x18b   : > { %v942_v13 = vld [vmem:[#allocation2 + $0xa1] sm:$0xff] }
 0x18c   : > { %v1084_v14 = vld [vmem:[#allocation2 + $0xa2] sm:$0xff]  ;;  %832 = vst [vmem:[#allocation2 + $0xb8] sm:$0xff] %v791_v11  ;;  %2137 = vmatprep.mubr.f32.mxu0 %v942_v13 }
 0x18d   : > { %2372 = vmatprep.mubr.f32.mxu1 %v1084_v14  ;;  %v684_v15 = vpop.f32.mrb[48].mxu0  ;;  %2138 = vmatmul.mubr.f32.gmra.mrb[122].mxu0 %v788_v57 }
 0x18e   : > { %2373 = vmatmul.mubr.f32.gmra.mrb[36].mxu1 %v1082_v4  ;;  %v792_v16 = vmax.f32 %v684_v15, 0.0  ;;  %v4038_v17 = vpop.f32.mrb[49].mxu0 }
 0x18f   : > { %v943_v18 = vld [vmem:[#allocation2 + $0xa9] sm:$0xff] }
 0x190   : > { %v1085_v19 = vld [vmem:[#allocation2 + $0xaa] sm:$0xff]  ;;  %833 = vst [vmem:[#allocation2 + $0xc0] sm:$0xff] %v792_v16  ;;  %2142 = vmatprep.mubr.f32.mxu0 %v943_v18 }
 0x191   : > { %2377 = vmatprep.mubr.f32.mxu1 %v1085_v19  ;;  %v689_v20 = vpop.f32.mrb[50].mxu0  ;;  %2143 = vmatmul.mubr.f32.gmra.mrb[124].mxu0 %v789_v63 }
 0x192   : > { %2378 = vmatmul.mubr.f32.gmra.mrb[38].mxu1 %v1083_v9  ;;  %v793_v21 = vmax.f32 %v689_v20, 0.0  ;;  %v4041_v22 = vpop.f32.mrb[51].mxu0 }
 0x193   : > { %v944_v23 = vld [vmem:[#allocation2 + $0xb1] sm:$0xff] }
 0x194   : > { %v1086_v24 = vld [vmem:[#allocation2 + $0xb2] sm:$0xff]  ;;  %834 = vst [vmem:[#allocation2 + $0xc8] sm:$0xff] %v793_v21  ;;  %2147 = vmatprep.mubr.f32.mxu0 %v944_v23 }
 0x195   : > { %2382 = vmatprep.mubr.f32.mxu1 %v1086_v24  ;;  %v694_v25 = vpop.f32.mrb[52].mxu0  ;;  %2148 = vmatmul.mubr.f32.gmra.mrb[126].mxu0 %v790_v6 }
 0x196   : > { %2383 = vmatmul.mubr.f32.gmra.mrb[40].mxu1 %v1084_v14  ;;  %v794_v26 = vmax.f32 %v694_v25, 0.0  ;;  %v4044_v27 = vpop.f32.mrb[53].mxu0 }
 0x197   : > { %v945_v28 = vld [vmem:[#allocation2 + $0xb9] sm:$0xff] }
 0x198   : > { %v1087_v29 = vld [vmem:[#allocation2 + $0xba] sm:$0xff]  ;;  %835 = vst [vmem:[#allocation2 + $0xd0] sm:$0xff] %v794_v26  ;;  %2152 = vmatprep.mubr.f32.mxu0 %v945_v28  ;;  %v1426_v28 = vld [vmem:[#allocation2 + $0x26] sm:$0xff] }
 0x199   : > { %2387 = vmatprep.mubr.f32.mxu1 %v1087_v29  ;;  %v699_v1 = vpop.f32.mrb[54].mxu0  ;;  %2153 = vmatmul.mubr.f32.gmra.mrb[128].mxu0 %v791_v11 }
 0x19a   : > { %2388 = vmatmul.mubr.f32.gmra.mrb[42].mxu1 %v1085_v19  ;;  %v795_v30 = vmax.f32 %v699_v1, 0.0  ;;  %v4047_v31 = vpop.f32.mrb[55].mxu0 }
 0x19b   : > { %v946_v32 = vld [vmem:[#allocation2 + $0xc1] sm:$0xff]  ;;  %v1427_v31 = vld [vmem:[#allocation2 + $0x2e] sm:$0xff] }
 0x19c   : > { %v1088_v33 = vld [vmem:[#allocation2 + $0xc2] sm:$0xff]  ;;  %836 = vst [vmem:[#allocation2 + $0xd8] sm:$0xff] %v795_v30  ;;  %2157 = vmatprep.mubr.f32.mxu0 %v946_v32  ;;  %v1428_v32 = vld [vmem:[#allocation2 + $0x36] sm:$0xff] }
 0x19d   : > { %2392 = vmatprep.mubr.f32.mxu1 %v1088_v33  ;;  %v704_v34 = vpop.f32.mrb[56].mxu0  ;;  %2158 = vmatmul.mubr.f32.gmra.mrb[130].mxu0 %v792_v16 }
 0x19e   : > { %2393 = vmatmul.mubr.f32.gmra.mrb[44].mxu1 %v1086_v24  ;;  %v796_v35 = vmax.f32 %v704_v34, 0.0  ;;  %v4050_v36 = vpop.f32.mrb[57].mxu0 }
 0x19f   : > { %v947_v37 = vld [vmem:[#allocation2 + $0xc9] sm:$0xff] }
 0x1a0   : > { %v1089_v38 = vld [vmem:[#allocation2 + $0xca] sm:$0xff]  ;;  %837 = vst [vmem:[#allocation2 + $0xe0] sm:$0xff] %v796_v35  ;;  %2162 = vmatprep.mubr.f32.mxu0 %v947_v37  ;;  %v1918_v37 = vld [vmem:[#allocation7 + $0x300] sm:$0xff] }
 0x1a1   : > { %2397 = vmatprep.mubr.f32.mxu1 %v1089_v38  ;;  %v709_v39 = vpop.f32.mrb[58].mxu0  ;;  %2163 = vmatmul.mubr.f32.gmra.mrb[132].mxu0 %v793_v21 }
 0x1a2   : > { %2398 = vmatmul.mubr.f32.gmra.mrb[46].mxu1 %v1087_v29  ;;  %v797_v40 = vmax.f32 %v709_v39, 0.0  ;;  %v4053_v41 = vpop.f32.mrb[59].mxu0  ;;  %v1429_v39 = vld [vmem:[#allocation2 + $0x3e] sm:$0xff] }
 0x1a3   : > { %v948_v42 = vld [vmem:[#allocation2 + $0xd1] sm:$0xff]  ;;  %v1430_v41 = vld [vmem:[#allocation2 + $0x46] sm:$0xff] }
 0x1a4   : > { %v1090_v43 = vld [vmem:[#allocation2 + $0xd2] sm:$0xff]  ;;  %838 = vst [vmem:[#allocation2 + $0xe8] sm:$0xff] %v797_v40  ;;  %2167 = vmatprep.mubr.f32.mxu0 %v948_v42 }
 0x1a5   : > { %2402 = vmatprep.mubr.f32.mxu1 %v1090_v43  ;;  %v714_v44 = vpop.f32.mrb[60].mxu0  ;;  %2168 = vmatmul.mubr.f32.gmra.mrb[134].mxu0 %v794_v26 }
 0x1a6   : > { %2403 = vmatmul.mubr.f32.gmra.mrb[48].mxu1 %v1088_v33  ;;  %v798_v45 = vmax.f32 %v714_v44, 0.0  ;;  %v4056_v46 = vpop.f32.mrb[61].mxu0  ;;  %v1431_v44 = vld [vmem:[#allocation2 + $0x4e] sm:$0xff] }
 0x1a7   : > { %v949_v47 = vld [vmem:[#allocation2 + $0xd9] sm:$0xff]  ;;  %v1921_v46 = vld [vmem:[#allocation7 + $0x318] sm:$0xff] }
 0x1a8   : > { %v1091_v48 = vld [vmem:[#allocation2 + $0xda] sm:$0xff]  ;;  %839 = vst [vmem:[#allocation2 + $0xf0] sm:$0xff] %v798_v45  ;;  %2172 = vmatprep.mubr.f32.mxu0 %v949_v47 }
 0x1a9   : > { %2407 = vmatprep.mubr.f32.mxu1 %v1091_v48  ;;  %v719_v49 = vpop.f32.mrb[62].mxu0  ;;  %2173 = vmatmul.mubr.f32.gmra.mrb[136].mxu0 %v795_v30  ;;  %v1211_v47 = vld [vmem:[#allocation2 + $0x1c] sm:$0xff] }
 0x1aa   : > { %2408 = vmatmul.mubr.f32.gmra.mrb[50].mxu1 %v1089_v38  ;;  %v799_v50 = vmax.f32 %v719_v49, 0.0  ;;  %v4059_v51 = vpop.f32.mrb[63].mxu0  ;;  %v1919_v38 = vld [vmem:[#allocation7 + $0x308] sm:$0xff] }
 0x1ab   : > { %v950_v52 = vld [vmem:[#allocation2 + $0xe1] sm:$0xff]  ;;  %v4408_v42 = vpack.c.bf16 %v1919_v38, %v1918_v37  ;;  %v1447_v37 = vld [vmem:[#allocation2 + $0xce] sm:$0xff] }
 0x1ac   : > { %v1092_v53 = vld [vmem:[#allocation2 + $0xe2] sm:$0xff]  ;;  %840 = vst [vmem:[#allocation2 + $0xf8] sm:$0xff] %v799_v50  ;;  %2177 = vmatprep.mubr.f32.mxu0 %v950_v52  ;;  %v1922_v52 = vld [vmem:[#allocation7 + $0x320] sm:$0xff] }
 0x1ad   : > { %2412 = vmatprep.mubr.f32.mxu1 %v1092_v53  ;;  %v724_v54 = vpop.f32.mrb[64].mxu0  ;;  %2178 = vmatmul.mubr.f32.gmra.mrb[138].mxu0 %v796_v35  ;;  %v1139_v49 = vld [vmem:[#allocation2 + $0x1b] sm:$0xff]  ;;  %v1936_v38 = vld [vmem:[#allocation7 + $0x390] sm:$0xff] }
 0x1ae   : > { %2413 = vmatmul.mubr.f32.gmra.mrb[52].mxu1 %v1090_v43  ;;  %v800_v55 = vmax.f32 %v724_v54, 0.0  ;;  %v4062_v56 = vpop.f32.mrb[65].mxu0  ;;  %v1138_v43 = vld [vmem:[#allocation2 + $0x13] sm:$0xff]  ;;  %v1433_v51 = vld [vmem:[#allocation2 + $0x5e] sm:$0xff] }
 0x1af   : > { %v951_v57 = vld [vmem:[#allocation2 + $0xe9] sm:$0xff] }
 0x1b0   : > { %v1093_v58 = vld [vmem:[#allocation2 + $0xea] sm:$0xff]  ;;  %841 = vst [vmem:[#allocation2 + $0x100] sm:$0xff] %v800_v55  ;;  %2182 = vmatprep.mubr.f32.mxu0 %v951_v57 }
 0x1b1   : > { %2417 = vmatprep.mubr.f32.mxu1 %v1093_v58  ;;  %v729_v59 = vpop.f32.mrb[66].mxu0  ;;  %2183 = vmatmul.mubr.f32.gmra.mrb[140].mxu0 %v797_v40  ;;  %v1210_v40 = vld [vmem:[#allocation2 + $0x14] sm:$0xff]  ;;  %v5379_v54 = vld [vmem:[#allocation2 + $0x24] sm:$0xff] }
 0x1b2   : > { %2418 = vmatmul.mubr.f32.gmra.mrb[54].mxu1 %v1091_v48  ;;  %v801_v60 = vmax.f32 %v729_v59, 0.0  ;;  %v4065_v61 = vpop.f32.mrb[67].mxu0  ;;  %v1432_v48 = vld [vmem:[#allocation2 + $0x56] sm:$0xff]  ;;  %v1140_v56 = vld [vmem:[#allocation2 + $0x23] sm:$0xff] }
 0x1b3   : > { %v952_v62 = vld [vmem:[#allocation2 + $0xf1] sm:$0xff]  ;;  %v1924_v59 = vld [vmem:[#allocation7 + $0x330] sm:$0xff] }
 0x1b4   : > { %v1094_v63 = vld [vmem:[#allocation2 + $0xf2] sm:$0xff]  ;;  %842 = vst [vmem:[#allocation2 + $0x108] sm:$0xff] %v801_v60  ;;  %2187 = vmatprep.mubr.f32.mxu0 %v952_v62 }
 0x1b5   : > { %2422 = vmatprep.mubr.f32.mxu1 %v1094_v63  ;;  %v734_v2 = vpop.f32.mrb[68].mxu0  ;;  %2188 = vmatmul.mubr.f32.gmra.mrb[142].mxu0 %v798_v45  ;;  %v1920_v45 = vld [vmem:[#allocation7 + $0x310] sm:$0xff]  ;;  %v1436_v62 = vld [vmem:[#allocation2 + $0x76] sm:$0xff] }
 0x1b6   : > { %2423 = vmatmul.mubr.f32.gmra.mrb[56].mxu1 %v1092_v53  ;;  %v802_v3 = vmax.f32 %v734_v2, 0.0  ;;  %v4068_v4 = vpop.f32.mrb[69].mxu0  ;;  %v1923_v53 = vld [vmem:[#allocation7 + $0x328] sm:$0xff]  ;;  %v5383_v61 = vld [vmem:[#allocation2 + $0x2c] sm:$0xff] }
 0x1b7   : > { %v953_v5 = vld [vmem:[#allocation2 + $0xf9] sm:$0xff]  ;;  %v4414_v57 = vpack.c.bf16 %v1923_v53, %v1922_v52  ;;  %v1940_v52 = vld [vmem:[#allocation7 + $0x3b0] sm:$0xff]  ;;  %v1941_v53 = vld [vmem:[#allocation7 + $0x3b8] sm:$0xff] }
 0x1b8   : > { %v1095_v6 = vld [vmem:[#allocation2 + $0xfa] sm:$0xff]  ;;  %843 = vst [vmem:[#allocation2 + $0x110] sm:$0xff] %v802_v3  ;;  %2192 = vmatprep.mubr.f32.mxu0 %v953_v5 }
 0x1b9   : > { %2427 = vmatprep.mubr.f32.mxu1 %v1095_v6  ;;  %v739_v7 = vpop.f32.mrb[70].mxu0  ;;  %2193 = vmatmul.mubr.f32.gmra.mrb[144].mxu0 %v799_v50  ;;  %v4411_v50 = vpack.c.bf16 %v1921_v46, %v1920_v45  ;;  %v1926_v4 = vld [vmem:[#allocation7 + $0x340] sm:$0xff]  ;;  %v1927_v5 = vld [vmem:[#allocation7 + $0x348] sm:$0xff] }
 0x1ba   : > { %2428 = vmatmul.mubr.f32.gmra.mrb[58].mxu1 %v1093_v58  ;;  %v803_v8 = vmax.f32 %v739_v7, 0.0  ;;  %v4071_v9 = vpop.f32.mrb[71].mxu0  ;;  %v1435_v58 = vld [vmem:[#allocation2 + $0x6e] sm:$0xff]  ;;  %v1438_v7 = vld [vmem:[#allocation2 + $0x86] sm:$0xff]  ;;  %v1938_v45 = vld [vmem:[#allocation7 + $0x3a0] sm:$0xff] }
 0x1bb   : > { %v954_v10 = vld [vmem:[#allocation2 + $0x101] sm:$0xff]  ;;  %v4420_v9 = vpack.c.bf16 %v1927_v5, %v1926_v4 }
 0x1bc   : > { %v1096_v11 = vld [vmem:[#allocation2 + $0x102] sm:$0xff]  ;;  %844 = vst [vmem:[#allocation2 + $0x118] sm:$0xff] %v803_v8  ;;  %2197 = vmatprep.mubr.f32.mxu0 %v954_v10  ;;  %v1439_v10 = vld [vmem:[#allocation2 + $0x8e] sm:$0xff] }
 0x1bd   : > { %2432 = vmatprep.mubr.f32.mxu1 %v1096_v11  ;;  %v744_v12 = vpop.f32.mrb[72].mxu0  ;;  %2198 = vmatmul.mubr.f32.gmra.mrb[146].mxu0 %v800_v55  ;;  %v1434_v55 = vld [vmem:[#allocation2 + $0x66] sm:$0xff] }
 0x1be   : > { %2433 = vmatmul.mubr.f32.gmra.mrb[60].mxu1 %v1094_v63  ;;  %v804_v13 = vmax.f32 %v744_v12, 0.0  ;;  %v4074_v14 = vpop.f32.mrb[73].mxu0  ;;  %v1141_v63 = vld [vmem:[#allocation2 + $0x2b] sm:$0xff]  ;;  %v1939_v46 = vld [vmem:[#allocation7 + $0x3a8] sm:$0xff] }
 0x1bf   : > { %v955_v15 = vld [vmem:[#allocation2 + $0x109] sm:$0xff]  ;;  %v1440_v14 = vld [vmem:[#allocation2 + $0x96] sm:$0xff] }
 0x1c0   : > { %v1097_v16 = vld [vmem:[#allocation2 + $0x10a] sm:$0xff]  ;;  %845 = vst [vmem:[#allocation2 + $0x120] sm:$0xff] %v804_v13  ;;  %2202 = vmatprep.mubr.f32.mxu0 %v955_v15  ;;  %v5391_v13 = vld [vmem:[#allocation2 + $0x3c] sm:$0xff] }
 0x1c1   : > { %2437 = vmatprep.mubr.f32.mxu1 %v1097_v16  ;;  %v749_v17 = vpop.f32.mrb[74].mxu0  ;;  %2203 = vmatmul.mubr.f32.gmra.mrb[148].mxu0 %v801_v60  ;;  %v1925_v60 = vld [vmem:[#allocation7 + $0x338] sm:$0xff]  ;;  %v1143_v15 = vld [vmem:[#allocation2 + $0x3b] sm:$0xff] }
 0x1c2   : > { %2438 = vmatmul.mubr.f32.gmra.mrb[62].mxu1 %v1095_v6  ;;  %v805_v18 = vmax.f32 %v749_v17, 0.0  ;;  %v4077_v19 = vpop.f32.mrb[75].mxu0  ;;  %v4417_v2 = vpack.c.bf16 %v1925_v60, %v1924_v59  ;;  %v5387_v6 = vld [vmem:[#allocation2 + $0x34] sm:$0xff]  ;;  %v1441_v17 = vld [vmem:[#allocation2 + $0x9e] sm:$0xff] }
 0x1c3   : > { %v956_v20 = vld [vmem:[#allocation2 + $0x111] sm:$0xff]  ;;  %v1931_v19 = vld [vmem:[#allocation7 + $0x368] sm:$0xff] }
 0x1c4   : > { %v1098_v21 = vld [vmem:[#allocation2 + $0x112] sm:$0xff]  ;;  %846 = vst [vmem:[#allocation2 + $0x128] sm:$0xff] %v805_v18  ;;  %2207 = vmatprep.mubr.f32.mxu0 %v956_v20  ;;  %v5395_v20 = vld [vmem:[#allocation2 + $0x44] sm:$0xff] }
 0x1c5   : > { %2442 = vmatprep.mubr.f32.mxu1 %v1098_v21  ;;  %v754_v22 = vpop.f32.mrb[76].mxu0  ;;  %2208 = vmatmul.mubr.f32.gmra.mrb[150].mxu0 %v802_v3  ;;  %v1437_v3 = vld [vmem:[#allocation2 + $0x7e] sm:$0xff]  ;;  %v1929_v12 = vld [vmem:[#allocation7 + $0x358] sm:$0xff] }
 0x1c6   : > { %2443 = vmatmul.mubr.f32.gmra.mrb[64].mxu1 %v1096_v11  ;;  %v806_v23 = vmax.f32 %v754_v22, 0.0  ;;  %v4080_v24 = vpop.f32.mrb[77].mxu0  ;;  %v1928_v11 = vld [vmem:[#allocation7 + $0x350] sm:$0xff]  ;;  %v1930_v18 = vld [vmem:[#allocation7 + $0x360] sm:$0xff] }
 0x1c7   : > { %v957_v25 = vld [vmem:[#allocation2 + $0x119] sm:$0xff]  ;;  %v1144_v22 = vld [vmem:[#allocation2 + $0x43] sm:$0xff]  ;;  %v1443_v24 = vld [vmem:[#allocation2 + $0xae] sm:$0xff] }
 0x1c8   : > { %v1099_v26 = vld [vmem:[#allocation2 + $0x11a] sm:$0xff]  ;;  %847 = vst [vmem:[#allocation2 + $0x130] sm:$0xff] %v806_v23  ;;  %2212 = vmatprep.mubr.f32.mxu0 %v957_v25  ;;  %v4426_v23 = vpack.c.bf16 %v1931_v19, %v1930_v18  ;;  %v1932_v25 = vld [vmem:[#allocation7 + $0x370] sm:$0xff] }
 0x1c9   : > { %2447 = vmatprep.mubr.f32.mxu1 %v1099_v26  ;;  %v759_v27 = vpop.f32.mrb[78].mxu0  ;;  %2213 = vmatmul.mubr.f32.gmra.mrb[152].mxu0 %v803_v8  ;;  %v1142_v8 = vld [vmem:[#allocation2 + $0x33] sm:$0xff]  ;;  %v1453_v59 = vld [vmem:[#allocation2 + $0xfe] sm:$0xff] }
 0x1ca   : > { %2448 = vmatmul.mubr.f32.gmra.mrb[66].mxu1 %v1097_v16  ;;  %v807_v29 = vmax.f32 %v759_v27, 0.0  ;;  %4119 = vmatprep.mubr.f32.mxu0 %v1426_v28  ;;  %v4083_v1 = vpop.f32.mrb[79].mxu0  ;;  %v4423_v16 = vpack.c.bf16 %v1929_v12, %v1928_v11  ;;  %v5399_v27 = vld [vmem:[#allocation2 + $0x4c] sm:$0xff]  ;;  %v1444_v28 = vld [vmem:[#allocation2 + $0xb6] sm:$0xff]  ;;  %v1152_v19 = vld [vmem:[#allocation2 + $0x83] sm:$0xff] }
 0x1cb   : > { %v1100_v30 = vld [vmem:[#allocation2 + $0x122] sm:$0xff]  ;;  %v1942_v60 = vld [vmem:[#allocation7 + $0x3c0] sm:$0xff]  ;;  %v1455_v5 = vld [vmem:[#allocation2 + $0x10e] sm:$0xff] }
 0x1cc   : > { %848 = vst [vmem:[#allocation2 + $0x138] sm:$0xff] %v807_v29  ;;  %2452 = vmatprep.mubr.f32.mxu1 %v1100_v30  ;;  %v1145_v29 = vld [vmem:[#allocation2 + $0x4b] sm:$0xff]  ;;  %v1445_v30 = vld [vmem:[#allocation2 + $0xbe] sm:$0xff] }
 0x1cd   : > { %4120 = vmatmul.mubr.f32.vlgmr.msra.gmra.mrb[154].mxu0 %v1427_v31  ;;  %v764_v33 = vpop.f32.mrb[80].mxu0  ;;  %v1934_v31 = vld [vmem:[#allocation7 + $0x380] sm:$0xff]  ;;  %v1458_v18 = vld [vmem:[#allocation2 + $0x126] sm:$0xff] }
 0x1ce   : > { %2453 = vmatmul.mubr.f32.gmra.mrb[68].mxu1 %v1098_v21  ;;  %4122 = vmatprep.mubr.f32.mxu0 %v1428_v32  ;;  %v808_v34 = vmax.f32 %v764_v33, 0.0  ;;  %v4086_v35 = vpop.f32.mrb[81].mxu0  ;;  %v1442_v21 = vld [vmem:[#allocation2 + $0xa6] sm:$0xff]  ;;  %v5403_v33 = vld [vmem:[#allocation2 + $0x54] sm:$0xff] }
 0x1cf   : > { %v1101_v36 = vld [vmem:[#allocation2 + $0x12a] sm:$0xff]  ;;  %v1935_v32 = vld [vmem:[#allocation7 + $0x388] sm:$0xff]  ;;  %v1146_v35 = vld [vmem:[#allocation2 + $0x53] sm:$0xff] }
 0x1d0   : > { %2457 = vmatprep.mubr.f32.mxu1 %v1101_v36  ;;  %849 = vst [vmem:[#allocation2 + $0x140] sm:$0x3f] %v808_v34  ;;  %v1446_v34 = vld [vmem:[#allocation2 + $0xc6] sm:$0xff]  ;;  %v4432_v36 = vpack.c.bf16 %v1935_v32, %v1934_v31  ;;  %v1151_v11 = vld [vmem:[#allocation2 + $0x7b] sm:$0xff] }
 0x1d1   : > { %4123 = vmatmul.mubr.f32.gmra.mrb[156].mxu0 %v1429_v39  ;;  %v1937_v39 = vld [vmem:[#allocation7 + $0x398] sm:$0xff] }
 0x1d2   : > { %2458 = vmatmul.mubr.f32.gmra.mrb[70].mxu1 %v1099_v26  ;;  %4125 = vmatprep.mubr.f32.mxu0 %v1430_v41  ;;  %v1933_v26 = vld [vmem:[#allocation7 + $0x378] sm:$0xff] }
 0x1d3   : > { %2527 = vmatprep.mubr.f32.mxu1 %v1210_v40  ;;  %v4429_v1 = vpack.c.bf16 %v1933_v26, %v1932_v25  ;;  %v5407_v40 = vld [vmem:[#allocation2 + $0x5c] sm:$0xff]  ;;  %v5431_v25 = vld [vmem:[#allocation2 + $0x8c] sm:$0xff]  ;;  %v5437_v31 = vld [vmem:[#allocation2 + $0x94] sm:$0xff] }
 0x1d4   : > { %v1448_v41 = vld [vmem:[#allocation2 + $0xd6] sm:$0xff] }
 0x1d5   : > { %4126 = vmatmul.mubr.f32.gmra.mrb[158].mxu0 %v1431_v44  ;;  %v1449_v44 = vld [vmem:[#allocation2 + $0xde] sm:$0xff]  ;;  %v1460_v26 = vld [vmem:[#allocation2 + $0x136] sm:$0xff] }
 0x1d6   : > { %2528 = vmatmul.mubr.f32.vlgmr.msra.gmra.mrb[0].mxu1 %v1138_v43  ;;  %4128 = vmatprep.mubr.f32.mxu0 %v1432_v48  ;;  %v4435_v43 = vpack.c.bf16 %v1937_v39, %v1936_v38  ;;  %v1450_v48 = vld [vmem:[#allocation2 + $0xe6] sm:$0xff]  ;;  %v1155_v38 = vld [vmem:[#allocation2 + $0x9b] sm:$0xff] }
 0x1d7   : > { %4409 = vmatpush1.bf16.msra.mxu1 %v4408_v42  ;;  %2532 = vmatprep.mubr.f32.mxu1 %v1211_v47  ;;  %v1147_v42 = vld [vmem:[#allocation2 + $0x5b] sm:$0xff]  ;;  %v5411_v47 = vld [vmem:[#allocation2 + $0x64] sm:$0xff] }
 0x1d8   : > { %4410 = vmatprep.subr.bf16.mxu1 %v4939_v0  ;;  %v5447_v39 = vld [vmem:[#allocation2 + $0xa4] sm:$0xff] }
 0x1d9   : > { %4129 = vmatmul.mubr.f32.gmra.mrb[160].mxu0 %v1433_v51  ;;  %v1451_v51 = vld [vmem:[#allocation2 + $0xee] sm:$0xff] }
 0x1da   : > { %2533 = vmatmul.mubr.f32.gmra.mrb[2].mxu1 %v1139_v49  ;;  %4131 = vmatprep.mubr.f32.mxu0 %v1434_v55  ;;  %v1148_v49 = vld [vmem:[#allocation2 + $0x63] sm:$0xff]  ;;  %v5415_v55 = vld [vmem:[#allocation2 + $0x6c] sm:$0xff] }
 0x1db   : > { %2537 = vmatprep.mubr.f32.mxu1 %v5379_v54  ;;  %4412 = vmatpush1.bf16.msra.mxu1 %v4411_v50  ;;  %v4438_v50 = vpack.c.bf16 %v1939_v46, %v1938_v45  ;;  %v1157_v46 = vld [vmem:[#allocation2 + $0xab] sm:$0xff] }
 0x1dc   : > { %4413 = vmatprep.subr.bf16.mxu1 %v4939_v0 }
 0x1dd   : > { %4132 = vmatmul.mubr.f32.gmra.mrb[162].mxu0 %v1435_v58  ;;  %v4441_v58 = vpack.c.bf16 %v1941_v53, %v1940_v52  ;;  %v5462_v53 = vld [vmem:[#allocation2 + $0xbc] sm:$0xff] }
 0x1de   : > { %2538 = vmatmul.mubr.f32.gmra.mrb[4].mxu1 %v1140_v56  ;;  %4134 = vmatprep.mubr.f32.mxu0 %v1436_v62  ;;  %v1452_v56 = vld [vmem:[#allocation2 + $0xf6] sm:$0xff]  ;;  %v1943_v62 = vld [vmem:[#allocation7 + $0x3c8] sm:$0xff] }
 0x1df   : > { %2542 = vmatprep.mubr.f32.mxu1 %v5383_v61  ;;  %4415 = vmatpush1.bf16.msra.mxu1 %v4414_v57  ;;  %v1149_v57 = vld [vmem:[#allocation2 + $0x6b] sm:$0xff]  ;;  %v4444_v4 = vpack.c.bf16 %v1943_v62, %v1942_v60  ;;  %v1160_v62 = vld [vmem:[#allocation2 + $0xc3] sm:$0xff] }
 0x1e0   : > { %4416 = vmatprep.subr.bf16.mxu1 %v4939_v0 }
 0x1e1   : > { %4135 = vmatmul.mubr.f32.gmra.mrb[164].mxu0 %v1437_v3  ;;  %v1150_v3 = vld [vmem:[#allocation2 + $0x73] sm:$0xff] }
 0x1e2   : > { %2543 = vmatmul.mubr.f32.gmra.mrb[6].mxu1 %v1141_v63  ;;  %4137 = vmatprep.mubr.f32.mxu0 %v1438_v7  ;;  %v5419_v63 = vld [vmem:[#allocation2 + $0x74] sm:$0xff]  ;;  %v1944_v7 = vld [vmem:[#allocation7 + $0x3d0] sm:$0xff] }
 0x1e3   : > { %2547 = vmatprep.mubr.f32.mxu1 %v5387_v6  ;;  %4418 = vmatpush1.bf16.msra.mxu1 %v4417_v2  ;;  %v1454_v2 = vld [vmem:[#allocation2 + $0x106] sm:$0xff] }
 0x1e4   : > { %4419 = vmatprep.subr.bf16.mxu1 %v4939_v0 }
 0x1e5   : > { %4138 = vmatmul.mubr.f32.gmra.mrb[166].mxu0 %v1439_v10  ;;  %v1456_v10 = vld [vmem:[#allocation2 + $0x116] sm:$0xff] }
 0x1e6   : > { %2548 = vmatmul.mubr.f32.gmra.mrb[8].mxu1 %v1142_v8  ;;  %4140 = vmatprep.mubr.f32.mxu0 %v1440_v14  ;;  %v1945_v8 = vld [vmem:[#allocation7 + $0x3d8] sm:$0xff]  ;;  %v1457_v14 = vld [vmem:[#allocation2 + $0x11e] sm:$0xff] }
 0x1e7   : > { %2552 = vmatprep.mubr.f32.mxu1 %v5391_v13  ;;  %4421 = vmatpush1.bf16.msra.mxu1 %v4420_v9  ;;  %v5423_v9 = vld [vmem:[#allocation2 + $0x7c] sm:$0xff]  ;;  %v4447_v12 = vpack.c.bf16 %v1945_v8, %v1944_v7  ;;  %v5477_v8 = vld [vmem:[#allocation2 + $0xd4] sm:$0xff] }
 0x1e8   : > { %4422 = vmatprep.subr.bf16.mxu1 %v4939_v0 }
 0x1e9   : > { %4141 = vmatmul.mubr.f32.gmra.mrb[168].mxu0 %v1441_v17  ;;  %v5427_v17 = vld [vmem:[#allocation2 + $0x84] sm:$0xff] }
 0x1ea   : > { %2553 = vmatmul.mubr.f32.gmra.mrb[10].mxu1 %v1143_v15  ;;  %4143 = vmatprep.mubr.f32.mxu0 %v1442_v21  ;;  %v1946_v15 = vld [vmem:[#allocation7 + $0x3e0] sm:$0xff] }
 0x1eb   : > { %2557 = vmatprep.mubr.f32.mxu1 %v5395_v20  ;;  %4424 = vmatpush1.bf16.msra.mxu1 %v4423_v16  ;;  %v1947_v16 = vld [vmem:[#allocation7 + $0x3e8] sm:$0xff] }
 0x1ec   : > { %4425 = vmatprep.subr.bf16.mxu1 %v4939_v0  ;;  %v4450_v21 = vpack.c.bf16 %v1947_v16, %v1946_v15  ;;  %v1163_v16 = vld [vmem:[#allocation2 + $0xdb] sm:$0xff] }
 0x1ed   : > { %4144 = vmatmul.mubr.f32.gmra.mrb[170].mxu0 %v1443_v24  ;;  %v1949_v24 = vld [vmem:[#allocation7 + $0x3f8] sm:$0xff] }
 0x1ee   : > { %2558 = vmatmul.mubr.f32.gmra.mrb[12].mxu1 %v1144_v22  ;;  %4146 = vmatprep.mubr.f32.mxu0 %v1444_v28  ;;  %v1459_v22 = vld [vmem:[#allocation2 + $0x12e] sm:$0xff] }
 0x1ef   : > { %2562 = vmatprep.mubr.f32.mxu1 %v5399_v27  ;;  %4427 = vmatpush1.bf16.msra.mxu1 %v4426_v23  ;;  %v1948_v23 = vld [vmem:[#allocation7 + $0x3f0] sm:$0xff] }
 0x1f0   : > { %4428 = vmatprep.subr.bf16.mxu1 %v4939_v0  ;;  %v4453_v28 = vpack.c.bf16 %v1949_v24, %v1948_v23  ;;  %v5492_v24 = vld [vmem:[#allocation2 + $0xec] sm:$0xff] }
 0x1f1   : > { %4147 = vmatmul.mubr.f32.gmra.mrb[172].mxu0 %v1445_v30 }
 0x1f2   : > { %2563 = vmatmul.mubr.f32.gmra.mrb[14].mxu1 %v1145_v29  ;;  %4149 = vmatprep.mubr.f32.mxu0 %v1446_v34  ;;  %v1154_v34 = vld [vmem:[#allocation2 + $0x93] sm:$0xff] }
 0x1f3   : > { %2567 = vmatprep.mubr.f32.mxu1 %v5403_v33  ;;  %4430 = vmatpush1.bf16.msra.mxu1 %v4429_v1  ;;  %v1153_v1 = vld [vmem:[#allocation2 + $0x8b] sm:$0xff] }
 0x1f4   : > { %4431 = vmatprep.subr.bf16.mxu1 %v4939_v0 }
 0x1f5   : > { %4150 = vmatmul.mubr.f32.gmra.mrb[174].mxu0 %v1447_v37 }
 0x1f6   : > { %2568 = vmatmul.mubr.f32.gmra.mrb[16].mxu1 %v1146_v35  ;;  %4152 = vmatprep.mubr.f32.mxu0 %v1448_v41 }
 0x1f7   : > { %2572 = vmatprep.mubr.f32.mxu1 %v5407_v40  ;;  %4433 = vmatpush1.bf16.msra.mxu1 %v4432_v36  ;;  %v5442_v36 = vld [vmem:[#allocation2 + $0x9c] sm:$0xff] }
 0x1f8   : > { %4434 = vmatprep.subr.bf16.mxu1 %v4939_v0 }
 0x1f9   : > { %4153 = vmatmul.mubr.f32.gmra.mrb[176].mxu0 %v1449_v44  ;;  %v5452_v44 = vld [vmem:[#allocation2 + $0xac] sm:$0xff] }
 0x1fa   : > { %2573 = vmatmul.mubr.f32.gmra.mrb[18].mxu1 %v1147_v42  ;;  %4155 = vmatprep.mubr.f32.mxu0 %v1450_v48  ;;  %v1156_v42 = vld [vmem:[#allocation2 + $0xa3] sm:$0xff] }
 0x1fb   : > { %2577 = vmatprep.mubr.f32.mxu1 %v5411_v47  ;;  %4436 = vmatpush1.bf16.msra.mxu1 %v4435_v43 }
 0x1fc   : > { %4437 = vmatprep.subr.bf16.mxu1 %v4939_v0 }
 0x1fd   : > { %4156 = vmatmul.mubr.f32.gmra.mrb[178].mxu0 %v1451_v51  ;;  %v1158_v51 = vld [vmem:[#allocation2 + $0xb3] sm:$0xff] }
 0x1fe   : > { %2578 = vmatmul.mubr.f32.gmra.mrb[20].mxu1 %v1148_v49  ;;  %4158 = vmatprep.mubr.f32.mxu0 %v1452_v56  ;;  %v5457_v49 = vld [vmem:[#allocation2 + $0xb4] sm:$0xff] }
 0x1ff   : > { %2582 = vmatprep.mubr.f32.mxu1 %v5415_v55  ;;  %4439 = vmatpush1.bf16.msra.mxu1 %v4438_v50 }
 0x200   : > { %4440 = vmatprep.subr.bf16.mxu1 %v4939_v0 }
 0x201   : > { %4159 = vmatmul.mubr.f32.gmra.mrb[180].mxu0 %v1453_v59  ;;  %v5467_v59 = vld [vmem:[#allocation2 + $0xc4] sm:$0xff] }
 0x202   : > { %2583 = vmatmul.mubr.f32.gmra.mrb[22].mxu1 %v1149_v57  ;;  %4161 = vmatprep.mubr.f32.mxu0 %v1454_v2  ;;  %v1159_v57 = vld [vmem:[#allocation2 + $0xbb] sm:$0xff] }
 0x203   : > { %2587 = vmatprep.mubr.f32.mxu1 %v5419_v63  ;;  %4442 = vmatpush1.bf16.msra.mxu1 %v4441_v58 }
 0x204   : > { %4443 = vmatprep.subr.bf16.mxu1 %v4939_v0 }
 0x205   : > { %4162 = vmatmul.mubr.f32.gmra.mrb[182].mxu0 %v1455_v5  ;;  %v1161_v5 = vld [vmem:[#allocation2 + $0xcb] sm:$0xff] }
 0x206   : > { %2588 = vmatmul.mubr.f32.gmra.mrb[24].mxu1 %v1150_v3  ;;  %4164 = vmatprep.mubr.f32.mxu0 %v1456_v10  ;;  %v5472_v3 = vld [vmem:[#allocation2 + $0xcc] sm:$0xff] }
 0x207   : > { %2592 = vmatprep.mubr.f32.mxu1 %v5423_v9  ;;  %4445 = vmatpush1.bf16.msra.mxu1 %v4444_v4 }
 0x208   : > { %4446 = vmatprep.subr.bf16.mxu1 %v4939_v0 }
 0x209   : > { %4165 = vmatmul.mubr.f32.gmra.mrb[184].mxu0 %v1457_v14  ;;  %v5482_v14 = vld [vmem:[#allocation2 + $0xdc] sm:$0xff] }
 0x20a   : > { %2593 = vmatmul.mubr.f32.gmra.mrb[26].mxu1 %v1151_v11  ;;  %4167 = vmatprep.mubr.f32.mxu0 %v1458_v18  ;;  %v1162_v11 = vld [vmem:[#allocation2 + $0xd3] sm:$0xff] }
 0x20b   : > { %2597 = vmatprep.mubr.f32.mxu1 %v5427_v17  ;;  %4448 = vmatpush1.bf16.msra.mxu1 %v4447_v12 }
 0x20c   : > { %4449 = vmatprep.subr.bf16.mxu1 %v4939_v0 }
 0x20d   : > { %4168 = vmatmul.mubr.f32.gmra.mrb[186].mxu0 %v1459_v22  ;;  %v1164_v22 = vld [vmem:[#allocation2 + $0xe3] sm:$0xff] }
 0x20e   : > { %2598 = vmatmul.mubr.f32.gmra.mrb[28].mxu1 %v1152_v19  ;;  %4170 = vmatprep.mubr.f32.mxu0 %v1460_v26  ;;  %v5487_v19 = vld [vmem:[#allocation2 + $0xe4] sm:$0xff] }
 0x20f   : > { %2602 = vmatprep.mubr.f32.mxu1 %v5431_v25  ;;  %4451 = vmatpush1.bf16.msra.mxu1 %v4450_v21 }
 0x210   : > { %v5434_v29 = vpop.f32.mrb[82].mxu0  ;;  %4452 = vmatprep.subr.bf16.mxu1 %v4939_v0 }
 0x211   : > { %v2041_v30 = vpop.f32.mrb[83].mxu0 }
 0x212   : > { %2603 = vmatmul.mubr.f32.gmra.mrb[30].mxu1 %v1153_v1  ;;  %v5497_v30 = vld [vmem:[#allocation2 + $0xf4] sm:$0xff] }
 0x213   : > { %2607 = vmatprep.mubr.f32.mxu1 %v5437_v31  ;;  %4454 = vmatpush1.bf16.msra.mxu1 %v4453_v28  ;;  %v1165_v28 = vld [vmem:[#allocation2 + $0xeb] sm:$0xff] }
 0x214   : > { %v5440_v32 = vpop.f32.mrb[84].mxu0 }
 0x215   : > { %v2046_v35 = vpop.f32.mrb[85].mxu0 }
 0x216   : > { %2608 = vmatmul.mubr.f32.gmra.mrb[32].mxu1 %v1154_v34  ;;  %v1166_v35 = vld [vmem:[#allocation2 + $0xf3] sm:$0xff] }
 0x217   : > { %2612 = vmatprep.mubr.f32.mxu1 %v5442_v36 }
 0x218   : > { %v5445_v37 = vpop.f32.mrb[86].mxu0 }
 0x219   : > { %v2051_v0 = vpop.f32.mrb[87].mxu0 }
 0x21a   : > { %2613 = vmatmul.mubr.f32.gmra.mrb[34].mxu1 %v1155_v38  ;;  %v5502_v0 = vld [vmem:[#allocation2 + $0xfc] sm:$0xff] }
 0x21b   : > { %2617 = vmatprep.mubr.f32.mxu1 %v5447_v39 }
 0x21c   : > { %v5450_v41 = vpop.f32.mrb[88].mxu0 }
 0x21d   : > { %v2056_v43 = vpop.f32.mrb[89].mxu0 }
 0x21e   : > { %2618 = vmatmul.mubr.f32.gmra.mrb[36].mxu1 %v1156_v42  ;;  %v1167_v43 = vld [vmem:[#allocation2 + $0xfb] sm:$0xff] }
 0x21f   : > { %2622 = vmatprep.mubr.f32.mxu1 %v5452_v44 }
 0x220   : > { %v5455_v45 = vpop.f32.mrb[90].mxu0 }
 0x221   : > { %v2061_v48 = vpop.f32.mrb[91].mxu0 }
 0x222   : > { %2623 = vmatmul.mubr.f32.gmra.mrb[38].mxu1 %v1157_v46  ;;  %v5507_v48 = vld [vmem:[#allocation2 + $0x104] sm:$0xff] }
 0x223   : > { %2627 = vmatprep.mubr.f32.mxu1 %v5457_v49 }
 0x224   : > { %v5460_v50 = vpop.f32.mrb[92].mxu0 }
 0x225   : > { %v2066_v52 = vpop.f32.mrb[93].mxu0 }
 0x226   : > { %2628 = vmatmul.mubr.f32.gmra.mrb[40].mxu1 %v1158_v51  ;;  %v1168_v52 = vld [vmem:[#allocation2 + $0x103] sm:$0xff] }
 0x227   : > { %2632 = vmatprep.mubr.f32.mxu1 %v5462_v53 }
 0x228   : > { %v5465_v56 = vpop.f32.mrb[94].mxu0 }
 0x229   : > { %v2071_v58 = vpop.f32.mrb[95].mxu0 }
 0x22a   : > { %2633 = vmatmul.mubr.f32.gmra.mrb[42].mxu1 %v1159_v57  ;;  %v5512_v58 = vld [vmem:[#allocation2 + $0x10c] sm:$0xff] }
 0x22b   : > { %2637 = vmatprep.mubr.f32.mxu1 %v5467_v59 }
 0x22c   : > { %v5470_v60 = vpop.f32.mrb[96].mxu0 }
 0x22d   : > { %v2076_v2 = vpop.f32.mrb[97].mxu0 }
 0x22e   : > { %2638 = vmatmul.mubr.f32.gmra.mrb[44].mxu1 %v1160_v62  ;;  %v1169_v2 = vld [vmem:[#allocation2 + $0x10b] sm:$0xff] }
 0x22f   : > { %2642 = vmatprep.mubr.f32.mxu1 %v5472_v3 }
 0x230   : > { %v5475_v4 = vpop.f32.mrb[98].mxu0 }
 0x231   : > { %v2081_v7 = vpop.f32.mrb[99].mxu0 }
 0x232   : > { %2643 = vmatmul.mubr.f32.gmra.mrb[46].mxu1 %v1161_v5  ;;  %v5517_v7 = vld [vmem:[#allocation2 + $0x114] sm:$0xff] }
 0x233   : > { %2647 = vmatprep.mubr.f32.mxu1 %v5477_v8 }
 0x234   : > { %v5480_v10 = vpop.f32.mrb[100].mxu0 }
 0x235   : > { %v2086_v12 = vpop.f32.mrb[101].mxu0 }
 0x236   : > { %2648 = vmatmul.mubr.f32.gmra.mrb[48].mxu1 %v1162_v11  ;;  %v1170_v12 = vld [vmem:[#allocation2 + $0x113] sm:$0xff] }
 0x237   : > { %2652 = vmatprep.mubr.f32.mxu1 %v5482_v14 }
 0x238   : > { %v5485_v15 = vpop.f32.mrb[102].mxu0 }
 0x239   : > { %v2091_v18 = vpop.f32.mrb[103].mxu0 }
 0x23a   : > { %2653 = vmatmul.mubr.f32.gmra.mrb[50].mxu1 %v1163_v16  ;;  %v5522_v18 = vld [vmem:[#allocation2 + $0x11c] sm:$0xff] }
 0x23b   : > { %2657 = vmatprep.mubr.f32.mxu1 %v5487_v19 }
 0x23c   : > { %v5490_v21 = vpop.f32.mrb[104].mxu0 }
 0x23d   : > { %v2096_v23 = vpop.f32.mrb[105].mxu0 }
 0x23e   : > { %2658 = vmatmul.mubr.f32.gmra.mrb[52].mxu1 %v1164_v22  ;;  %v1171_v23 = vld [vmem:[#allocation2 + $0x11b] sm:$0xff] }
 0x23f   : > { %2662 = vmatprep.mubr.f32.mxu1 %v5492_v24 }
 0x240   : > { %v5495_v26 = vpop.f32.mrb[106].mxu0 }
 0x241   : > { %v2101_v1 = vpop.f32.mrb[107].mxu0 }
 0x242   : > { %2663 = vmatmul.mubr.f32.gmra.mrb[54].mxu1 %v1165_v28  ;;  %v5527_v1 = vld [vmem:[#allocation2 + $0x124] sm:$0xff] }
 0x243   : > { %2667 = vmatprep.mubr.f32.mxu1 %v5497_v30 }
 0x244   : > { %v5500_v34 = vpop.f32.mrb[108].mxu0 }
 0x245   : > { %v2106_v38 = vpop.f32.mrb[109].mxu0 }
 0x246   : > { %2668 = vmatmul.mubr.f32.gmra.mrb[56].mxu1 %v1166_v35  ;;  %v1172_v38 = vld [vmem:[#allocation2 + $0x123] sm:$0xff] }
 0x247   : > { %2672 = vmatprep.mubr.f32.mxu1 %v5502_v0 }
 0x248   : > { %v5505_v42 = vpop.f32.mrb[110].mxu0 }
 0x249   : > { %v2111_v46 = vpop.f32.mrb[111].mxu0 }
 0x24a   : > { %2673 = vmatmul.mubr.f32.gmra.mrb[58].mxu1 %v1167_v43  ;;  %v5532_v46 = vld [vmem:[#allocation2 + $0x12c] sm:$0xff] }
 0x24b   : > { %2677 = vmatprep.mubr.f32.mxu1 %v5507_v48 }
 0x24c   : > { %v5510_v51 = vpop.f32.mrb[112].mxu0 }
 0x24d   : > { %v2116_v57 = vpop.f32.mrb[113].mxu0 }
 0x24e   : > { %2678 = vmatmul.mubr.f32.gmra.mrb[60].mxu1 %v1168_v52  ;;  %v1173_v57 = vld [vmem:[#allocation2 + $0x12b] sm:$0xff] }
 0x24f   : > { %2682 = vmatprep.mubr.f32.mxu1 %v5512_v58 }
 0x250   : > { %v5515_v62 = vpop.f32.mrb[114].mxu0 }
 0x251   : > { %v2121_v5 = vpop.f32.mrb[115].mxu0 }
 0x252   : > { %2683 = vmatmul.mubr.f32.gmra.mrb[62].mxu1 %v1169_v2  ;;  %v1354_v5 = vld [vmem:[#allocation2 + $0x25] sm:$0xff] }
 0x253   : > { %2687 = vmatprep.mubr.f32.mxu1 %v5517_v7 }
 0x254   : > { %v5520_v11 = vpop.f32.mrb[116].mxu0 }
 0x255   : > { %v2126_v16 = vpop.f32.mrb[117].mxu0 }
 0x256   : > { %2688 = vmatmul.mubr.f32.gmra.mrb[64].mxu1 %v1170_v12 }
 0x257   : > { %2692 = vmatprep.mubr.f32.mxu1 %v5522_v18 }
 0x258   : > { %v5525_v22 = vpop.f32.mrb[118].mxu0 }
 0x259   : > { %v2131_v28 = vpop.f32.mrb[119].mxu0 }
 0x25a   : > { %2693 = vmatmul.mubr.f32.gmra.mrb[66].mxu1 %v1171_v23  ;;  %v1355_v23 = vld [vmem:[#allocation2 + $0x2d] sm:$0xff] }
 0x25b   : > { %2697 = vmatprep.mubr.f32.mxu1 %v5527_v1 }
 0x25c   : > { %v5530_v35 = vpop.f32.mrb[120].mxu0 }
 0x25d   : > { %v2136_v43 = vpop.f32.mrb[121].mxu0 }
 0x25e   : > { %2698 = vmatmul.mubr.f32.gmra.mrb[68].mxu1 %v1172_v38  ;;  %v1356_v43 = vld [vmem:[#allocation2 + $0x35] sm:$0xff] }
 0x25f   : > { %2702 = vmatprep.mubr.f32.mxu1 %v5532_v46 }
 0x260   : > { %v5535_v52 = vpop.f32.mrb[122].mxu0 }
 0x261   : > { %6031 = vst [vmem:[#allocation14_spill] sm:$0xff] %v5535_v52  ;;  %v2141_v2 = vpop.f32.mrb[123].mxu0  ;;  %v1461_v52 = vld [vmem:[#allocation2 + $0x13e] sm:$0xff] }
 0x262   : > { %2703 = vmatmul.mubr.f32.gmra.mrb[70].mxu1 %v1173_v57  ;;  %4171 = vmatmul.mubr.f32.gmra.mrb[188].mxu0 %v1461_v52  ;;  %v3235_v52 = vld [vmem:[%s6015_s5 + $0x8] sm:$0xff] }
 0x263   : > { %2772 = vmatprep.mubr.f32.mxu1 %v1354_v5  ;;  %v1357_v5 = vld [vmem:[#allocation2 + $0x3d] sm:$0xff] }
 0x264   : > { %v5537_v12 = vpop.f32.mrb[124].mxu0 }
 0x265   : > { %v2146_v16 = vpop.f32.mrb[125].mxu0 }
 0x266   : > { %2773 = vmatmul.mubr.f32.vlgmr.msra.gmra.mrb[0].mxu1 %v5379_v54  ;;  %v1358_v54 = vld [vmem:[#allocation2 + $0x45] sm:$0xff] }
 0x267   : > { %2777 = vmatprep.mubr.f32.mxu1 %v1355_v23 }
 0x268   : > { %v5540_v28 = vpop.f32.mrb[126].mxu0 }
 0x269   : > { %v2151_v38 = vpop.f32.mrb[127].mxu0 }
 0x26a   : > { %2778 = vmatmul.mubr.f32.gmra.mrb[2].mxu1 %v5383_v61  ;;  %v3234_v61 = vld [vmem:[%s6015_s5] sm:$0xff] }
 0x26b   : > { %2782 = vmatprep.mubr.f32.mxu1 %v1356_v43  ;;  %v4487_v38 = vpack.c.bf16 %v3235_v52, %v3234_v61  ;;  %v3237_v43 = vld [vmem:[%s6015_s5 + $0x18] sm:$0xff]  ;;  %v3240_v52 = vld [vmem:[%s6015_s5 + $0x30] sm:$0xff] }
 0x26c   : > { %v5543_v2 = vpop.f32.mrb[128].mxu0 }
 0x26d   : > { %v2156_v57 = vpop.f32.mrb[129].mxu0  ;;  %4488 = vmatprep.subr.bf16.mxu0 %v4487_v38 }
 0x26e   : > { %2783 = vmatmul.mubr.f32.gmra.mrb[4].mxu1 %v5387_v6  ;;  %v3236_v6 = vld [vmem:[%s6015_s5 + $0x10] sm:$0xff]  ;;  %4490 = vmatpush3.bf16.msra.mxu0 %v4487_v38  ;;  %v3242_v38 = vld [vmem:[%s6015_s5 + $0x40] sm:$0xff] }
 0x26f   : > { %2787 = vmatprep.mubr.f32.mxu1 %v1357_v5  ;;  %v4491_v57 = vpack.c.bf16 %v3237_v43, %v3236_v6  ;;  %v3239_v5 = vld [vmem:[%s6015_s5 + $0x28] sm:$0xff]  ;;  %v3241_v6 = vld [vmem:[%s6015_s5 + $0x38] sm:$0xff] }
 0x270   : > { %v5546_v16 = vpop.f32.mrb[130].mxu0 }
 0x271   : > { %6032 = vst [vmem:[#allocation15_spill] sm:$0xff] %v5546_v16  ;;  %v2161_v23 = vpop.f32.mrb[131].mxu0  ;;  %4492 = vmatprep.subr.bf16.mxu0 %v4491_v57 }
 0x272   : > { %2788 = vmatmul.mubr.f32.gmra.mrb[6].mxu1 %v5391_v13  ;;  %v3238_v13 = vld [vmem:[%s6015_s5 + $0x20] sm:$0xff]  ;;  %4494 = vmatpush3.bf16.msra.mxu0 %v4491_v57  ;;  %v3244_v57 = vld [vmem:[%s6015_s5 + $0x50] sm:$0xff] }
 0x273   : > { %2792 = vmatprep.mubr.f32.mxu1 %v1358_v54  ;;  %v1359_v54 = vld [vmem:[#allocation2 + $0x4d] sm:$0xff]  ;;  %v4495_v61 = vpack.c.bf16 %v3239_v5, %v3238_v13 }
 0x274   : > { %v5567_v23 = vpop.f32.mrb[132].mxu0  ;;  %v3243_v13 = vld [vmem:[%s6015_s5 + $0x48] sm:$0xff] }
 0x275   : > { %6033 = vst [vmem:[#allocation16_spill] sm:$0xff] %v5567_v23  ;;  %v2166_v16 = vpop.f32.mrb[133].mxu0  ;;  %4496 = vmatprep.subr.bf16.mxu0 %v4495_v61 }
 0x276   : > { %2793 = vmatmul.mubr.f32.gmra.mrb[8].mxu1 %v5395_v20  ;;  %v1360_v16 = vld [vmem:[#allocation2 + $0x55] sm:$0xff]  ;;  %v4499_v20 = vpack.c.bf16 %v3241_v6, %v3240_v52  ;;  %4498 = vmatpush3.bf16.msra.mxu0 %v4495_v61 }
 0x277   : > { %2797 = vmatprep.mubr.f32.mxu1 %v1359_v54  ;;  %v3245_v52 = vld [vmem:[%s6015_s5 + $0x58] sm:$0xff] }
 0x278   : > { %v5576_v43 = vpop.f32.mrb[134].mxu0  ;;  %4500 = vmatprep.subr.bf16.mxu0 %v4499_v20 }
 0x279   : > { %v2171_v23 = vpop.f32.mrb[135].mxu0 }
 0x27a   : > { %2798 = vmatmul.mubr.f32.gmra.mrb[10].mxu1 %v5399_v27  ;;  %v1361_v23 = vld [vmem:[#allocation2 + $0x5d] sm:$0xff]  ;;  %v4503_v27 = vpack.c.bf16 %v3243_v13, %v3242_v38  ;;  %4502 = vmatpush3.bf16.msra.mxu0 %v4499_v20  ;;  %v1363_v13 = vld [vmem:[#allocation2 + $0x6d] sm:$0xff] }
 0x27b   : > { %2802 = vmatprep.mubr.f32.mxu1 %v1360_v16 }
 0x27c   : > { %v5585_v5 = vpop.f32.mrb[136].mxu0  ;;  %4504 = vmatprep.subr.bf16.mxu0 %v4503_v27 }
 0x27d   : > { %6034 = vst [vmem:[#allocation17_spill] sm:$0xff] %v5585_v5  ;;  %v2176_v54 = vpop.f32.mrb[137].mxu0  ;;  %v1384_v5 = vld [vmem:[#allocation2 + $0x115] sm:$0xff] }
 0x27e   : > { %2803 = vmatmul.mubr.f32.gmra.mrb[12].mxu1 %v5403_v33  ;;  %v1362_v54 = vld [vmem:[#allocation2 + $0x65] sm:$0xff]  ;;  %v4507_v33 = vpack.c.bf16 %v3245_v52, %v3244_v57  ;;  %4506 = vmatpush3.bf16.msra.mxu0 %v4503_v27  ;;  %v1365_v52 = vld [vmem:[#allocation2 + $0x7d] sm:$0xff] }
 0x27f   : > { %2807 = vmatprep.mubr.f32.mxu1 %v1361_v23 }
 0x280   : > { %v5594_v6 = vpop.f32.mrb[138].mxu0  ;;  %4508 = vmatprep.subr.bf16.mxu0 %v4507_v33 }
 0x281   : > { %6035 = vst [vmem:[#allocation18_spill] sm:$0xff] %v5594_v6  ;;  %v2181_v16 = vpop.f32.mrb[139].mxu0 }
 0x282   : > { %2808 = vmatmul.mubr.f32.gmra.mrb[14].mxu1 %v5407_v40  ;;  %v1364_v40 = vld [vmem:[#allocation2 + $0x75] sm:$0xff]  ;;  %4510 = vmatpush3.bf16.msra.mxu0 %v4507_v33  ;;  %v1366_v16 = vld [vmem:[#allocation2 + $0x85] sm:$0xff] }
 0x283   : > { %2812 = vmatprep.mubr.f32.mxu1 %v1362_v54  ;;  %v1367_v54 = vld [vmem:[#allocation2 + $0x8d] sm:$0xff] }
 0x284   : > { %v5597_v61 = vpop.f32.mrb[140].mxu0 }
 0x285   : > { %6036 = vst [vmem:[#allocation19_spill] sm:$0xff] %v5597_v61  ;;  %v2186_v38 = vpop.f32.mrb[141].mxu0  ;;  %v1383_v61 = vld [vmem:[#allocation2 + $0x10d] sm:$0xff] }
 0x286   : > { %2813 = vmatmul.mubr.f32.gmra.mrb[16].mxu1 %v5411_v47 }
 0x287   : > { %2817 = vmatprep.mubr.f32.mxu1 %v1363_v13 }
 0x288   : > { %v5600_v23 = vpop.f32.mrb[142].mxu0 }
 0x289   : > { %6037 = vst [vmem:[#allocation20_spill] sm:$0xff] %v5600_v23  ;;  %v2191_v6 = vpop.f32.mrb[143].mxu0  ;;  %v1382_v23 = vld [vmem:[#allocation2 + $0x105] sm:$0xff] }
 0x28a   : > { %2818 = vmatmul.mubr.f32.gmra.mrb[18].mxu1 %v5415_v55 }
 0x28b   : > { %2822 = vmatprep.mubr.f32.mxu1 %v1364_v40 }
 0x28c   : > { %v5603_v20 = vpop.f32.mrb[144].mxu0 }
 0x28d   : > { %6038 = vst [vmem:[#allocation21_spill] sm:$0xff] %v5603_v20  ;;  %v2196_v57 = vpop.f32.mrb[145].mxu0 }
 0x28e   : > { %2823 = vmatmul.mubr.f32.gmra.mrb[20].mxu1 %v5419_v63  ;;  %v1368_v63 = vld [vmem:[#allocation2 + $0x95] sm:$0xff] }
 0x28f   : > { %2827 = vmatprep.mubr.f32.mxu1 %v1365_v52  ;;  %v1370_v52 = vld [vmem:[#allocation2 + $0xa5] sm:$0xff] }
 0x290   : > { %v5606_v47 = vpop.f32.mrb[146].mxu0 }
 0x291   : > { %6039 = vst [vmem:[#allocation22_spill] sm:$0xff] %v5606_v47  ;;  %v2201_v27 = vpop.f32.mrb[147].mxu0  ;;  %v1379_v47 = vld [vmem:[#allocation2 + $0xed] sm:$0xff] }
 0x292   : > { %2828 = vmatmul.mubr.f32.gmra.mrb[22].mxu1 %v5423_v9  ;;  %v1369_v9 = vld [vmem:[#allocation2 + $0x9d] sm:$0xff] }
 0x293   : > { %2832 = vmatprep.mubr.f32.mxu1 %v1366_v16  ;;  %v1371_v16 = vld [vmem:[#allocation2 + $0xad] sm:$0xff] }
 0x294   : > { %v5609_v6 = vpop.f32.mrb[148].mxu0 }
 0x295   : > { %6040 = vst [vmem:[#allocation23_spill] sm:$0xff] %v5609_v6  ;;  %v2206_v55 = vpop.f32.mrb[149].mxu0 }
 0x296   : > { %2833 = vmatmul.mubr.f32.gmra.mrb[24].mxu1 %v5427_v17 }
 0x297   : > { %2837 = vmatprep.mubr.f32.mxu1 %v1367_v54  ;;  %v1372_v54 = vld [vmem:[#allocation2 + $0xb5] sm:$0xff] }
 0x298   : > { %v5612_v33 = vpop.f32.mrb[150].mxu0 }
 0x299   : > { %6041 = vst [vmem:[#allocation24_spill] sm:$0xff] %v5612_v33  ;;  %v2211_v38 = vpop.f32.mrb[151].mxu0  ;;  %v3249_v33 = vld [vmem:[%s6015_s5 + $0x78] sm:$0xff] }
 0x29a   : > { %2838 = vmatmul.mubr.f32.gmra.mrb[26].mxu1 %v5431_v25 }
 0x29b   : > { %2842 = vmatprep.mubr.f32.mxu1 %v1368_v63  ;;  %v1373_v63 = vld [vmem:[#allocation2 + $0xbd] sm:$0xff] }
 0x29c   : > { %v5615_v13 = vpop.f32.mrb[152].mxu0 }
 0x29d   : > { %6042 = vst [vmem:[#allocation25_spill] sm:$0xff] %v5615_v13  ;;  %v2216_v40 = vpop.f32.mrb[153].mxu0 }
 0x29e   : > { %2843 = vmatmul.mubr.f32.gmra.mrb[28].mxu1 %v5437_v31 }
 0x29f   : > { %2847 = vmatprep.mubr.f32.mxu1 %v1369_v9  ;;  %v1374_v9 = vld [vmem:[#allocation2 + $0xc5] sm:$0xff] }
 0x2a0   : > { %v5618_v57 = vpop.f32.mrb[154].mxu0 }
 0x2a1   : > { %v5621_v17 = vpop.f32.mrb[155].mxu0 }
 0x2a2   : > { %2848 = vmatmul.mubr.f32.gmra.mrb[30].mxu1 %v5442_v36 }
 0x2a3   : > { %2852 = vmatprep.mubr.f32.mxu1 %v1370_v52 }
 0x2a4   : > { %v5623_v27 = vpop.f32.mrb[156].mxu0 }
 0x2a5   : > { %v5626_v25 = vpop.f32.mrb[157].mxu0 }
 0x2a6   : > { %2853 = vmatmul.mubr.f32.gmra.mrb[32].mxu1 %v5447_v39 }
 0x2a7   : > { %2857 = vmatprep.mubr.f32.mxu1 %v1371_v16  ;;  %v1375_v16 = vld [vmem:[#allocation2 + $0xcd] sm:$0xff] }
 0x2a8   : > { %v5628_v55 = vpop.f32.mrb[158].mxu0 }
 0x2a9   : > { %v5631_v31 = vpop.f32.mrb[159].mxu0 }
 0x2aa   : > { %2858 = vmatmul.mubr.f32.gmra.mrb[34].mxu1 %v5452_v44 }
 0x2ab   : > { %2862 = vmatprep.mubr.f32.mxu1 %v1372_v54 }
 0x2ac   : > { %v5633_v36 = vpop.f32.mrb[160].mxu0 }
 0x2ad   : > { %v5636_v38 = vpop.f32.mrb[161].mxu0 }
 0x2ae   : > { %2863 = vmatmul.mubr.f32.gmra.mrb[36].mxu1 %v5457_v49 }
 0x2af   : > { %2867 = vmatprep.mubr.f32.mxu1 %v1373_v63  ;;  %v1376_v63 = vld [vmem:[#allocation2 + $0xd5] sm:$0xff] }
 0x2b0   : > { %v5638_v39 = vpop.f32.mrb[162].mxu0 }
 0x2b1   : > { %v5641_v40 = vpop.f32.mrb[163].mxu0 }
 0x2b2   : > { %2868 = vmatmul.mubr.f32.gmra.mrb[38].mxu1 %v5462_v53  ;;  %v3246_v53 = vld [vmem:[%s6015_s5 + $0x60] sm:$0xff] }
 0x2b3   : > { %2872 = vmatprep.mubr.f32.mxu1 %v1374_v9 }
 0x2b4   : > { %v5643_v44 = vpop.f32.mrb[164].mxu0 }
 0x2b5   : > { %v5646_v52 = vpop.f32.mrb[165].mxu0 }
 0x2b6   : > { %2873 = vmatmul.mubr.f32.gmra.mrb[40].mxu1 %v5467_v59  ;;  %v3247_v59 = vld [vmem:[%s6015_s5 + $0x68] sm:$0xff] }
 0x2b7   : > { %2877 = vmatprep.mubr.f32.mxu1 %v1375_v16  ;;  %v4511_v9 = vpack.c.bf16 %v3247_v59, %v3246_v53  ;;  %v1378_v59 = vld [vmem:[#allocation2 + $0xe5] sm:$0xff] }
 0x2b8   : > { %v5648_v49 = vpop.f32.mrb[166].mxu0 }
 0x2b9   : > { %v5651_v54 = vpop.f32.mrb[167].mxu0  ;;  %4512 = vmatprep.subr.bf16.mxu0 %v4511_v9 }
 0x2ba   : > { %2878 = vmatmul.mubr.f32.gmra.mrb[42].mxu1 %v5472_v3  ;;  %v1377_v3 = vld [vmem:[#allocation2 + $0xdd] sm:$0xff]  ;;  %4514 = vmatpush3.bf16.msra.mxu0 %v4511_v9 }
 0x2bb   : > { %2882 = vmatprep.mubr.f32.mxu1 %v1376_v63  ;;  %v3248_v63 = vld [vmem:[%s6015_s5 + $0x70] sm:$0xff] }
 0x2bc   : > { %v5659_v13 = vpop.f32.mrb[168].mxu0  ;;  %v4515_v6 = vpack.c.bf16 %v3249_v33, %v3248_v63 }
 0x2bd   : > { %v5662_v16 = vpop.f32.mrb[169].mxu0 }
 0x2be   : > { %2883 = vmatmul.mubr.f32.gmra.mrb[44].mxu1 %v5477_v8  ;;  %4516 = vmatprep.subr.bf16.mxu0 %v4515_v6 }
 0x2bf   : > { %2887 = vmatprep.mubr.f32.mxu1 %v1377_v3  ;;  %4518 = vmatpush3.bf16.msra.mxu0 %v4515_v6 }
 0x2c0   : > { %v5670_v53 = vpop.f32.mrb[170].mxu0 }
 0x2c1   : > { %v5673_v8 = vpop.f32.mrb[171].mxu0 }
 0x2c2   : > { %2888 = vmatmul.mubr.f32.gmra.mrb[46].mxu1 %v5482_v14  ;;  %v1380_v14 = vld [vmem:[#allocation2 + $0xf5] sm:$0xff] }
 0x2c3   : > { %2892 = vmatprep.mubr.f32.mxu1 %v1378_v59  ;;  %v1381_v59 = vld [vmem:[#allocation2 + $0xfd] sm:$0xff] }
 0x2c4   : > { %v5675_v9 = vpop.f32.mrb[172].mxu0 }
 0x2c5   : > { %v5678_v3 = vpop.f32.mrb[173].mxu0 }
 0x2c6   : > { %2893 = vmatmul.mubr.f32.gmra.mrb[48].mxu1 %v5487_v19 }
 0x2c7   : > { %2897 = vmatprep.mubr.f32.mxu1 %v1379_v47 }
 0x2c8   : > { %v5680_v20 = vpop.f32.mrb[174].mxu0 }
 0x2c9   : > { %v5683_v33 = vpop.f32.mrb[175].mxu0 }
 0x2ca   : > { %2898 = vmatmul.mubr.f32.gmra.mrb[50].mxu1 %v5492_v24 }
 0x2cb   : > { %2902 = vmatprep.mubr.f32.mxu1 %v1380_v14 }
 0x2cc   : > { %v5685_v63 = vpop.f32.mrb[176].mxu0 }
 0x2cd   : > { %v5688_v6 = vpop.f32.mrb[177].mxu0 }
 0x2ce   : > { %2903 = vmatmul.mubr.f32.gmra.mrb[52].mxu1 %v5497_v30 }
 0x2cf   : > { %2907 = vmatprep.mubr.f32.mxu1 %v1381_v59 }
 0x2d0   : > { %v5690_v19 = vpop.f32.mrb[178].mxu0 }
 0x2d1   : > { %6043 = vst [vmem:[#allocation26_spill] sm:$0xff] %v5690_v19  ;;  %v5693_v47 = vpop.f32.mrb[179].mxu0 }
 0x2d2   : > { %2908 = vmatmul.mubr.f32.gmra.mrb[54].mxu1 %v5502_v0 }
 0x2d3   : > { %2912 = vmatprep.mubr.f32.mxu1 %v1382_v23 }
 0x2d4   : > { %v5695_v24 = vpop.f32.mrb[180].mxu0 }
 0x2d5   : > { %6044 = vst [vmem:[#allocation27_spill] sm:$0xff] %v5695_v24  ;;  %v5698_v14 = vpop.f32.mrb[181].mxu0  ;;  %v1385_v24 = vld [vmem:[#allocation2 + $0x11d] sm:$0xff] }
 0x2d6   : > { %2913 = vmatmul.mubr.f32.gmra.mrb[56].mxu1 %v5507_v48  ;;  %6045 = vst [vmem:[#allocation28_spill] sm:$0xff] %v5698_v14 }
 0x2d7   : > { %2917 = vmatprep.mubr.f32.mxu1 %v1383_v61 }
 0x2d8   : > { %v5700_v30 = vpop.f32.mrb[182].mxu0 }
 0x2d9   : > { %6046 = vst [vmem:[#allocation29_spill] sm:$0xff] %v5700_v30  ;;  %v5703_v59 = vpop.f32.mrb[183].mxu0  ;;  %v1386_v30 = vld [vmem:[#allocation2 + $0x125] sm:$0xff] }
 0x2da   : > { %2918 = vmatmul.mubr.f32.gmra.mrb[58].mxu1 %v5512_v58  ;;  %6047 = vst [vmem:[#allocation30_spill] sm:$0xff] %v5703_v59  ;;  %v1387_v58 = vld [vmem:[#allocation2 + $0x12d] sm:$0xff] }
 0x2db   : > { %2922 = vmatprep.mubr.f32.mxu1 %v1384_v5  ;;  %v1388_v5 = vld [vmem:[#allocation2 + $0x135] sm:$0xff] }
 0x2dc   : > { %v5705_v0 = vpop.f32.mrb[184].mxu0 }
 0x2dd   : > { %6048 = vst [vmem:[#allocation31_spill] sm:$0xff] %v5705_v0  ;;  %v5708_v23 = vpop.f32.mrb[185].mxu0  ;;  %v1389_v0 = vld [vmem:[#allocation2 + $0x13d] sm:$0xff] }
 0x2de   : > { %2923 = vmatmul.mubr.f32.gmra.mrb[60].mxu1 %v5517_v7  ;;  %6049 = vst [vmem:[#allocation32_spill] sm:$0xff] %v5708_v23  ;;  %v1316_v7 = vld [vmem:[#allocation2 + $0x134] sm:$0xff] }
 0x2df   : > { %2927 = vmatprep.mubr.f32.mxu1 %v1385_v24  ;;  %v1317_v24 = vld [vmem:[#allocation2 + $0x13c] sm:$0xff] }
 0x2e0   : > { %v5710_v48 = vpop.f32.mrb[186].mxu0 }
 0x2e1   : > { %6050 = vst [vmem:[#allocation33_spill] sm:$0xff] %v5710_v48  ;;  %v5713_v61 = vpop.f32.mrb[187].mxu0 }
 0x2e2   : > { %2928 = vmatmul.mubr.f32.gmra.mrb[62].mxu1 %v5522_v18  ;;  %6051 = vst [vmem:[#allocation34_spill] sm:$0xff] %v5713_v61  ;;  %v5720_v18 = vld [vmem:[%s6014_s4] ss:$0 sm:$0xff] }
 0x2e3   : > { %2932 = vmatprep.mubr.f32.mxu1 %v1386_v30  ;;  %v2050_v23 = vadd.f32 %v5720_v18, %v5445_v37 }
 0x2e6   : > { %2933 = vmatmul.mubr.f32.gmra.mrb[64].mxu1 %v5527_v1  ;;  %v2040_v1 = vadd.f32 %v5720_v18, %v5434_v29 }
 0x2e7   : > { %2937 = vmatprep.mubr.f32.mxu1 %v1387_v58 }
 0x2ea   : > { %2938 = vmatmul.mubr.f32.gmra.mrb[66].mxu1 %v5532_v46  ;;  %v2045_v46 = vadd.f32 %v5720_v18, %v5440_v32  ;;  %v2055_v32 = vadd.f32 %v5720_v18, %v5450_v41  ;;  %v2065_v41 = vadd.f32 %v5720_v18, %v5460_v50  ;;  %v2075_v50 = vadd.f32 %v5720_v18, %v5470_v60 }
 0x2eb   : > { %2942 = vmatprep.mubr.f32.mxu1 %v1388_v5  ;;  %v2085_v60 = vadd.f32 %v5720_v18, %v5480_v10  ;;  %v2095_v10 = vadd.f32 %v5720_v18, %v5490_v21  ;;  %v2105_v21 = vadd.f32 %v5720_v18, %v5500_v34  ;;  %v2115_v34 = vadd.f32 %v5720_v18, %v5510_v51 }
 0x2ec   : > { %v2125_v51 = vadd.f32 %v5720_v18, %v5520_v11  ;;  %v2135_v11 = vadd.f32 %v5720_v18, %v5530_v35  ;;  %v2145_v35 = vadd.f32 %v5720_v18, %v5537_v12  ;;  %v2155_v12 = vadd.f32 %v5720_v18, %v5543_v2 }
 0x2ee   : > { %2943 = vmatmul.mubr.f32.gmra.mrb[68].mxu1 %v1316_v7 }
 0x2ef   : > { %2947 = vmatprep.mubr.f32.mxu1 %v1389_v0 }
 0x2f2   : > { %2948 = vmatmul.mubr.f32.gmra.mrb[70].mxu1 %v1317_v24 }
 0x335   : > { %v5730_v29 = vpop.f32.mrb[188].mxu0 }
 0x336   : > { %v5732_v19 = vpop.f32.mrb[189].mxu0 }
 0x339   : > { %v2774_v30 = vpop.f32.mrb[0].mxu1 }
 0x33a   : > { %v4520_v58 = vadd.f32 %v2774_v30, %v2040_v1  ;;  %v2776_v48 = vpop.f32.mrb[1].mxu1 }
 0x33c   : > { %v3020_v5 = vadd.f32 %v4520_v58, %v5621_v17 }
 0x33d   : > { %v2779_v7 = vpop.f32.mrb[2].mxu1 }
 0x33e   : > { %v3198_v0 = vmax.f32 %v3020_v5, 0.0  ;;  %v4522_v61 = vadd.f32 %v2779_v7, %v2045_v46  ;;  %v2781_v24 = vpop.f32.mrb[3].mxu1 }
 0x340   : > { %v3025_v59 = vadd.f32 %v4522_v61, %v5618_v57  ;;  %4205 = vmatprep.mubr.f32.mxu0 %v3198_v0  ;;  %v2060_v57 = vadd.f32 %v5720_v18, %v5455_v45  ;;  %v2070_v45 = vadd.f32 %v5720_v18, %v5465_v56  ;;  %v2080_v56 = vadd.f32 %v5720_v18, %v5475_v4 }
 0x341   : > { %v2784_v14 = vpop.f32.mrb[4].mxu1  ;;  %v2090_v4 = vadd.f32 %v5720_v18, %v5485_v15  ;;  %v2100_v15 = vadd.f32 %v5720_v18, %v5495_v26  ;;  %v2110_v26 = vadd.f32 %v5720_v18, %v5505_v42  ;;  %v2120_v42 = vadd.f32 %v5720_v18, %v5515_v62 }
 0x342   : > { %v3199_v1 = vmax.f32 %v3025_v59, 0.0  ;;  %v4524_v48 = vadd.f32 %v2784_v14, %v2050_v23  ;;  %v2786_v30 = vpop.f32.mrb[5].mxu1  ;;  %v2130_v62 = vadd.f32 %v5720_v18, %v5525_v22 }
 0x344   : > { %v3030_v17 = vadd.f32 %v4524_v48, %v5626_v25  ;;  %4206 = vmatmul.mubr.f32.vlgmr.msra.gmra.mrb[190].mxu0 %v3199_v1 }
 0x345   : > { %v2789_v58 = vpop.f32.mrb[6].mxu1 }
 0x346   : > { %v3200_v46 = vmax.f32 %v3030_v17, 0.0  ;;  %v4526_v37 = vadd.f32 %v2789_v58, %v2055_v32  ;;  %v2791_v5 = vpop.f32.mrb[7].mxu1 }
 0x348   : > { %v3035_v61 = vadd.f32 %v4526_v37, %v5623_v27  ;;  %4208 = vmatprep.mubr.f32.mxu0 %v3200_v46 }
 0x349   : > { %v2794_v14 = vpop.f32.mrb[8].mxu1 }
 0x34a   : > { %v3201_v59 = vmax.f32 %v3035_v61, 0.0  ;;  %v4528_v23 = vadd.f32 %v2794_v14, %v2060_v57  ;;  %v2796_v7 = vpop.f32.mrb[9].mxu1 }
 0x34c   : > { %v3040_v25 = vadd.f32 %v4528_v23, %v5631_v31  ;;  %4209 = vmatmul.mubr.f32.gmra.mrb[192].mxu0 %v3201_v59 }
 0x34d   : > { %v2799_v0 = vpop.f32.mrb[10].mxu1 }
 0x34e   : > { %v3202_v24 = vmax.f32 %v3040_v25, 0.0  ;;  %v4530_v1 = vadd.f32 %v2799_v0, %v2065_v41  ;;  %v2801_v48 = vpop.f32.mrb[11].mxu1 }
 0x350   : > { %v3045_v27 = vadd.f32 %v4530_v1, %v5628_v55  ;;  %4211 = vmatprep.mubr.f32.mxu0 %v3202_v24 }
 0x351   : > { %v2804_v30 = vpop.f32.mrb[12].mxu1 }
 0x352   : > { %v3203_v32 = vmax.f32 %v3045_v27, 0.0  ;;  %v4532_v17 = vadd.f32 %v2804_v30, %v2070_v45  ;;  %v2806_v58 = vpop.f32.mrb[13].mxu1 }
 0x354   : > { %v3050_v31 = vadd.f32 %v4532_v17, %v5636_v38  ;;  %4212 = vmatmul.mubr.f32.gmra.mrb[194].mxu0 %v3203_v32 }
 0x355   : > { %v2809_v46 = vpop.f32.mrb[14].mxu1 }
 0x356   : > { %v3204_v37 = vmax.f32 %v3050_v31, 0.0  ;;  %v4534_v5 = vadd.f32 %v2809_v46, %v2075_v50  ;;  %v2811_v57 = vpop.f32.mrb[15].mxu1 }
 0x358   : > { %v3055_v55 = vadd.f32 %v4534_v5, %v5633_v36  ;;  %4214 = vmatprep.mubr.f32.mxu0 %v3204_v37 }
 0x359   : > { %v2814_v61 = vpop.f32.mrb[16].mxu1 }
 0x35a   : > { %v3205_v14 = vmax.f32 %v3055_v55, 0.0  ;;  %v4536_v59 = vadd.f32 %v2814_v61, %v2080_v56  ;;  %v2816_v23 = vpop.f32.mrb[17].mxu1 }
 0x35c   : > { %v3060_v38 = vadd.f32 %v4536_v59, %v5641_v40  ;;  %4215 = vmatmul.mubr.f32.gmra.mrb[196].mxu0 %v3205_v14 }
 0x35d   : > { %v2819_v7 = vpop.f32.mrb[18].mxu1 }
 0x35e   : > { %v3206_v41 = vmax.f32 %v3060_v38, 0.0  ;;  %v4538_v25 = vadd.f32 %v2819_v7, %v2085_v60  ;;  %v2821_v0 = vpop.f32.mrb[19].mxu1 }
 0x360   : > { %v3065_v36 = vadd.f32 %v4538_v25, %v5638_v39  ;;  %4217 = vmatprep.mubr.f32.mxu0 %v3206_v41 }
 0x361   : > { %v2824_v24 = vpop.f32.mrb[20].mxu1 }
 0x362   : > { %v3207_v1 = vmax.f32 %v3065_v36, 0.0  ;;  %v4540_v48 = vadd.f32 %v2824_v24, %v2090_v4  ;;  %v2826_v45 = vpop.f32.mrb[21].mxu1 }
 0x364   : > { %v3070_v40 = vadd.f32 %v4540_v48, %v5646_v52  ;;  %4218 = vmatmul.mubr.f32.gmra.mrb[198].mxu0 %v3207_v1 }
 0x365   : > { %v2829_v27 = vpop.f32.mrb[22].mxu1 }
 0x366   : > { %v3208_v30 = vmax.f32 %v3070_v40, 0.0  ;;  %v4542_v32 = vadd.f32 %v2829_v27, %v2095_v10  ;;  %v2831_v17 = vpop.f32.mrb[23].mxu1 }
 0x368   : > { %v3075_v39 = vadd.f32 %v4542_v32, %v5643_v44  ;;  %4220 = vmatprep.mubr.f32.mxu0 %v3208_v30 }
 0x369   : > { %v2834_v58 = vpop.f32.mrb[24].mxu1 }
 0x36a   : > { %v3209_v50 = vmax.f32 %v3075_v39, 0.0  ;;  %v4544_v31 = vadd.f32 %v2834_v58, %v2100_v15  ;;  %v2836_v46 = vpop.f32.mrb[25].mxu1  ;;  %v6052_v39 = vld [vmem:[#allocation14_spill] sm:$0xff] }
 0x36b   : > { %v2140_v22 = vadd.f32 %v5720_v18, %v6052_v39 }
 0x36c   : > { %v3080_v52 = vadd.f32 %v4544_v31, %v5651_v54  ;;  %4221 = vmatmul.mubr.f32.gmra.mrb[200].mxu0 %v3209_v50 }
 0x36d   : > { %v2839_v37 = vpop.f32.mrb[26].mxu1 }
 0x36e   : > { %v3210_v5 = vmax.f32 %v3080_v52, 0.0  ;;  %v4546_v57 = vadd.f32 %v2839_v37, %v2105_v21  ;;  %v2841_v56 = vpop.f32.mrb[27].mxu1 }
 0x370   : > { %v3085_v44 = vadd.f32 %v4546_v57, %v5648_v49  ;;  %4223 = vmatprep.mubr.f32.mxu0 %v3210_v5  ;;  %v2150_v57 = vadd.f32 %v5720_v18, %v5540_v28 }
 0x371   : > { %v2844_v55 = vpop.f32.mrb[28].mxu1 }
 0x372   : > { %v3211_v61 = vmax.f32 %v3085_v44, 0.0  ;;  %v4548_v14 = vadd.f32 %v2844_v55, %v2110_v26  ;;  %v2846_v59 = vpop.f32.mrb[29].mxu1 }
 0x374   : > { %v3090_v54 = vadd.f32 %v4548_v14, %v5662_v16  ;;  %4224 = vmatmul.mubr.f32.gmra.mrb[202].mxu0 %v3211_v61 }
 0x375   : > { %v2849_v23 = vpop.f32.mrb[30].mxu1 }
 0x376   : > { %v3212_v60 = vmax.f32 %v3090_v54, 0.0  ;;  %v4550_v38 = vadd.f32 %v2849_v23, %v2115_v34  ;;  %v2851_v7 = vpop.f32.mrb[31].mxu1  ;;  %v6053_v54 = vld [vmem:[#allocation15_spill] sm:$0xff] }
 0x377   : > { %v2160_v28 = vadd.f32 %v5720_v18, %v6053_v54  ;;  %v6066_v54 = vld [vmem:[#allocation22_spill] sm:$0xff] }
 0x378   : > { %v3095_v49 = vadd.f32 %v4550_v38, %v5659_v13  ;;  %4226 = vmatprep.mubr.f32.mxu0 %v3212_v60 }
 0x379   : > { %v2854_v41 = vpop.f32.mrb[32].mxu1 }
 0x37a   : > { %v3213_v25 = vmax.f32 %v3095_v49, 0.0  ;;  %v4552_v0 = vadd.f32 %v2854_v41, %v2120_v42  ;;  %v2856_v4 = vpop.f32.mrb[33].mxu1  ;;  %v6054_v42 = vld [vmem:[#allocation16_spill] sm:$0xff] }
 0x37b   : > { %v2165_v2 = vadd.f32 %v5720_v18, %v6054_v42  ;;  %v2170_v4 = vadd.f32 %v5720_v18, %v5576_v43 }
 0x37c   : > { %v3100_v16 = vadd.f32 %v4552_v0, %v5673_v8  ;;  %4227 = vmatmul.mubr.f32.gmra.mrb[204].mxu0 %v3213_v25 }
 0x37d   : > { %v2859_v36 = vpop.f32.mrb[34].mxu1 }
 0x37e   : > { %v3214_v24 = vmax.f32 %v3100_v16, 0.0  ;;  %v4554_v1 = vadd.f32 %v2859_v36, %v2125_v51  ;;  %v2861_v48 = vpop.f32.mrb[35].mxu1  ;;  %v6055_v51 = vld [vmem:[#allocation26_spill] sm:$0xff] }
 0x37f   : > { %v6056_v48 = vld [vmem:[#allocation17_spill] sm:$0xff] }
 0x380   : > { %v3105_v13 = vadd.f32 %v4554_v1, %v5670_v53  ;;  %4229 = vmatprep.mubr.f32.mxu0 %v3214_v24 }
 0x381   : > { %v2864_v45 = vpop.f32.mrb[36].mxu1 }
 0x382   : > { %v3215_v10 = vmax.f32 %v3105_v13, 0.0  ;;  %v4556_v40 = vadd.f32 %v2864_v45, %v2130_v62  ;;  %v2866_v27 = vpop.f32.mrb[37].mxu1  ;;  %v2175_v62 = vadd.f32 %v5720_v18, %v6056_v48  ;;  %v6057_v13 = vld [vmem:[#allocation28_spill] sm:$0xff] }
 0x384   : > { %v3110_v8 = vadd.f32 %v4556_v40, %v5678_v3  ;;  %4230 = vmatmul.mubr.f32.gmra.mrb[206].mxu0 %v3215_v10 }
 0x385   : > { %v2869_v30 = vpop.f32.mrb[38].mxu1 }
 0x386   : > { %v3216_v32 = vmax.f32 %v3110_v8, 0.0  ;;  %v4558_v17 = vadd.f32 %v2869_v30, %v2135_v11  ;;  %v2871_v15 = vpop.f32.mrb[39].mxu1  ;;  %v6058_v11 = vld [vmem:[#allocation18_spill] sm:$0xff]  ;;  %v6059_v8 = vld [vmem:[#allocation27_spill] sm:$0xff] }
 0x387   : > { %v2180_v43 = vadd.f32 %v5720_v18, %v6058_v11 }
 0x388   : > { %v3115_v53 = vadd.f32 %v4558_v17, %v5675_v9  ;;  %4232 = vmatprep.mubr.f32.mxu0 %v3216_v32 }
 0x389   : > { %v2874_v58 = vpop.f32.mrb[40].mxu1 }
 0x38a   : > { %v3217_v50 = vmax.f32 %v3115_v53, 0.0  ;;  %v4560_v31 = vadd.f32 %v2874_v58, %v2140_v22  ;;  %v2876_v46 = vpop.f32.mrb[41].mxu1  ;;  %v6060_v22 = vld [vmem:[#allocation19_spill] sm:$0xff]  ;;  %v6061_v58 = vld [vmem:[#allocation30_spill] sm:$0xff] }
 0x38b   : > { %v2185_v53 = vadd.f32 %v5720_v18, %v6060_v22 }
 0x38c   : > { %v3120_v3 = vadd.f32 %v4560_v31, %v5683_v33  ;;  %4233 = vmatmul.mubr.f32.gmra.mrb[208].mxu0 %v3217_v50 }
 0x38d   : > { %v2879_v21 = vpop.f32.mrb[42].mxu1 }
 0x38e   : > { %v3218_v52 = vmax.f32 %v3120_v3, 0.0  ;;  %v4562_v37 = vadd.f32 %v2879_v21, %v2145_v35  ;;  %v2881_v5 = vpop.f32.mrb[43].mxu1  ;;  %v6062_v21 = vld [vmem:[#allocation20_spill] sm:$0xff] }
 0x390   : > { %v3125_v9 = vadd.f32 %v4562_v37, %v5680_v20  ;;  %4235 = vmatprep.mubr.f32.mxu0 %v3218_v52  ;;  %v2190_v52 = vadd.f32 %v5720_v18, %v6062_v21  ;;  %v6063_v37 = vld [vmem:[#allocation29_spill] sm:$0xff] }
 0x391   : > { %v2884_v56 = vpop.f32.mrb[44].mxu1  ;;  %v3504_v21 = vld [vmem:[%s5839_s16 + $0x10] sm:$0xff] }
 0x392   : > { %v3219_v26 = vmax.f32 %v3125_v9, 0.0  ;;  %v4564_v44 = vadd.f32 %v2884_v56, %v2150_v57  ;;  %v2886_v55 = vpop.f32.mrb[45].mxu1 }
 0x394   : > { %v3130_v33 = vadd.f32 %v4564_v44, %v5688_v6  ;;  %4236 = vmatmul.mubr.f32.gmra.mrb[210].mxu0 %v3219_v26  ;;  %v6064_v44 = vld [vmem:[#allocation21_spill] sm:$0xff] }
 0x395   : > { %v2889_v61 = vpop.f32.mrb[46].mxu1  ;;  %v2195_v55 = vadd.f32 %v5720_v18, %v6064_v44 }
 0x396   : > { %v3220_v14 = vmax.f32 %v3130_v33, 0.0  ;;  %v4566_v59 = vadd.f32 %v2889_v61, %v2155_v12  ;;  %v2891_v34 = vpop.f32.mrb[47].mxu1  ;;  %v6065_v12 = vld [vmem:[#allocation32_spill] sm:$0xff] }
 0x398   : > { %v3135_v20 = vadd.f32 %v4566_v59, %v5685_v63  ;;  %4238 = vmatprep.mubr.f32.mxu0 %v3220_v14 }
 0x399   : > { %v2894_v23 = vpop.f32.mrb[48].mxu1 }
 0x39a   : > { %v3221_v60 = vmax.f32 %v3135_v20, 0.0  ;;  %v4568_v38 = vadd.f32 %v2894_v23, %v2160_v28  ;;  %v2896_v7 = vpop.f32.mrb[49].mxu1  ;;  %v2200_v28 = vadd.f32 %v5720_v18, %v6066_v54  ;;  %v6067_v20 = vld [vmem:[#allocation31_spill] sm:$0xff] }
 0x39c   : > { %v3140_v6 = vadd.f32 %v4568_v38, %v5693_v47  ;;  %4239 = vmatmul.mubr.f32.gmra.mrb[212].mxu0 %v3221_v60 }
 0x39d   : > { %v2899_v49 = vpop.f32.mrb[50].mxu1 }
 0x39e   : > { %v3222_v41 = vmax.f32 %v3140_v6, 0.0  ;;  %v4570_v25 = vadd.f32 %v2899_v49, %v2165_v2  ;;  %v2901_v0 = vpop.f32.mrb[51].mxu1  ;;  %v6068_v2 = vld [vmem:[#allocation23_spill] sm:$0xff]  ;;  %v6069_v49 = vld [vmem:[#allocation34_spill] sm:$0xff] }
 0x39f   : > { %v2205_v6 = vadd.f32 %v5720_v18, %v6068_v2 }
 0x3a0   : > { %v3145_v63 = vadd.f32 %v4570_v25, %v6055_v51  ;;  %4241 = vmatprep.mubr.f32.mxu0 %v3222_v41 }
 0x3a1   : > { %v2904_v16 = vpop.f32.mrb[52].mxu1 }
 0x3a2   : > { %v3223_v36 = vmax.f32 %v3145_v63, 0.0  ;;  %v4572_v24 = vadd.f32 %v2904_v16, %v2170_v4  ;;  %v2906_v1 = vpop.f32.mrb[53].mxu1  ;;  %v6070_v63 = vld [vmem:[#allocation24_spill] sm:$0xff] }
 0x3a3   : > { %v2210_v16 = vadd.f32 %v5720_v18, %v6070_v63 }
 0x3a4   : > { %v3150_v47 = vadd.f32 %v4572_v24, %v6057_v13  ;;  %4242 = vmatmul.mubr.f32.gmra.mrb[214].mxu0 %v3223_v36  ;;  %v6071_v36 = vld [vmem:[#allocation33_spill] sm:$0xff] }
 0x3a5   : > { %v2909_v45 = vpop.f32.mrb[54].mxu1 }
 0x3a6   : > { %v3224_v10 = vmax.f32 %v3150_v47, 0.0  ;;  %v4574_v40 = vadd.f32 %v2909_v45, %v2175_v62  ;;  %v2911_v27 = vpop.f32.mrb[55].mxu1  ;;  %v6072_v47 = vld [vmem:[#allocation25_spill] sm:$0xff] }
 0x3a7   : > { %v2215_v45 = vadd.f32 %v5720_v18, %v6072_v47  ;;  %v3512_v47 = vld [vmem:[%s5839_s16 + $0x50] sm:$0xff] }
 0x3a8   : > { %v3155_v30 = vadd.f32 %v4574_v40, %v6059_v8  ;;  %4244 = vmatprep.mubr.f32.mxu0 %v3224_v10 }
 0x3a9   : > { %v2914_v32 = vpop.f32.mrb[56].mxu1 }
 0x3aa   : > { %v3225_v17 = vmax.f32 %v3155_v30, 0.0  ;;  %v4576_v15 = vadd.f32 %v2914_v32, %v2180_v43  ;;  %v2916_v39 = vpop.f32.mrb[57].mxu1 }
 0x3ac   : > { %v3160_v50 = vadd.f32 %v4576_v15, %v6061_v58  ;;  %4245 = vmatmul.mubr.f32.gmra.mrb[216].mxu0 %v3225_v17  ;;  %v3502_v15 = vld [vmem:[%s5839_s16] sm:$0xff] }
 0x3ad   : > { %v2919_v31 = vpop.f32.mrb[58].mxu1 }
 0x3ae   : > { %v3226_v46 = vmax.f32 %v3160_v50, 0.0  ;;  %v4578_v35 = vadd.f32 %v2919_v31, %v2185_v53  ;;  %v2921_v3 = vpop.f32.mrb[59].mxu1 }
 0x3b0   : > { %v3165_v5 = vadd.f32 %v4578_v35, %v6063_v37  ;;  %4247 = vmatprep.mubr.f32.mxu0 %v3226_v46  ;;  %v3505_v46 = vld [vmem:[%s5839_s16 + $0x18] sm:$0xff] }
 0x3b1   : > { %v2924_v57 = vpop.f32.mrb[60].mxu1 }
 0x3b2   : > { %v3227_v9 = vmax.f32 %v3165_v5, 0.0  ;;  %v4580_v56 = vadd.f32 %v2924_v57, %v2190_v52  ;;  %v2926_v26 = vpop.f32.mrb[61].mxu1 }
 0x3b3   : > { %v3507_v26 = vld [vmem:[%s5839_s16 + $0x28] sm:$0xff] }
 0x3b4   : > { %v3170_v33 = vadd.f32 %v4580_v56, %v6065_v12  ;;  %4248 = vmatmul.mubr.f32.gmra.mrb[218].mxu0 %v3227_v9  ;;  %v3506_v12 = vld [vmem:[%s5839_s16 + $0x20] sm:$0xff] }
 0x3b5   : > { %v2929_v61 = vpop.f32.mrb[62].mxu1 }
 0x3b6   : > { %v3228_v14 = vmax.f32 %v3170_v33, 0.0  ;;  %v4582_v59 = vadd.f32 %v2929_v61, %v2195_v55  ;;  %v2931_v34 = vpop.f32.mrb[63].mxu1 }
 0x3b8   : > { %v3175_v23 = vadd.f32 %v4582_v59, %v6067_v20  ;;  %4250 = vmatprep.mubr.f32.mxu0 %v3228_v14 }
 0x3b9   : > { %v2934_v60 = vpop.f32.mrb[64].mxu1 }
 0x3ba   : > { %v3229_v38 = vmax.f32 %v3175_v23, 0.0  ;;  %v4584_v7 = vadd.f32 %v2934_v60, %v2200_v28  ;;  %v2936_v42 = vpop.f32.mrb[65].mxu1  ;;  %v3509_v28 = vld [vmem:[%s5839_s16 + $0x38] sm:$0xff]  ;;  %v3508_v60 = vld [vmem:[%s5839_s16 + $0x30] sm:$0xff] }
 0x3bc   : > { %v3180_v41 = vadd.f32 %v4584_v7, %v6069_v49  ;;  %4251 = vmatmul.mubr.f32.gmra.mrb[220].mxu0 %v3229_v38 }
 0x3bd   : > { %v2939_v25 = vpop.f32.mrb[66].mxu1 }
 0x3be   : > { %v3230_v0 = vmax.f32 %v3180_v41, 0.0  ;;  %v4586_v4 = vadd.f32 %v2939_v25, %v2205_v6  ;;  %v2941_v51 = vpop.f32.mrb[67].mxu1  ;;  %v3511_v41 = vld [vmem:[%s5839_s16 + $0x48] sm:$0xff] }
 0x3c0   : > { %v3185_v24 = vadd.f32 %v4586_v4, %v6071_v36  ;;  %4253 = vmatprep.mubr.f32.mxu0 %v3230_v0  ;;  %v3510_v4 = vld [vmem:[%s5839_s16 + $0x40] sm:$0xff] }
 0x3c1   : > { %v2944_v1 = vpop.f32.mrb[68].mxu1 }
 0x3c2   : > { %v3231_v48 = vmax.f32 %v3185_v24, 0.0  ;;  %v4588_v62 = vadd.f32 %v2944_v1, %v2210_v16  ;;  %v2946_v13 = vpop.f32.mrb[69].mxu1 }
 0x3c4   : > { %v3190_v10 = vadd.f32 %v4588_v62, %v5732_v19  ;;  %4254 = vmatmul.mubr.f32.gmra.mrb[222].mxu0 %v3231_v48  ;;  %v5844_v19 = vld [vmem:[%s6016_s6] ss:$0 sm:$0xff]  ;;  %v3513_v48 = vld [vmem:[%s5839_s16 + $0x58] sm:$0xff] }
 0x3c5   : > { %v2949_v40 = vpop.f32.mrb[70].mxu1 }
 0x3c6   : > { %v3232_v27 = vmax.f32 %v3190_v10, 0.0  ;;  %v4590_v11 = vadd.f32 %v2949_v40, %v2215_v45  ;;  %v2951_v43 = vpop.f32.mrb[71].mxu1 }
 0x3c8   : > { %v3195_v8 = vadd.f32 %v4590_v11, %v5730_v29  ;;  %4256 = vmatprep.mubr.f32.mxu0 %v3232_v27  ;;  %v3503_v29 = vld [vmem:[%s5839_s16 + $0x8] sm:$0xff] }
 0x3ca   : > { %v3233_v30 = vmax.f32 %v3195_v8, 0.0  ;;  %v3515_v8 = vld [vmem:[%s5839_s16 + $0x68] sm:$0xff] }
 0x3cc   : > { %4257 = vmatmul.mubr.f32.gmra.mrb[224].mxu0 %v3233_v30 }
 0x417   : > { %v4207_v18 = vpop.f32.mrb[190].mxu0 }
 0x418   : > { %v3329_v32 = vadd.f32 %v4207_v18, %v5844_v19  ;;  %v3323_v17 = vpop.f32.mrb[191].mxu0 }
 0x419   : > { %v3324_v39 = vadd.f32 %v5844_v19, %v3323_v17 }
 0x41a   : > { %v3539_v22 = vadd.f32 %v3503_v29, %v3329_v32  ;;  %v3514_v29 = vld [vmem:[%s5839_s16 + $0x60] sm:$0xff] }
 0x41b   : > { %v3538_v53 = vadd.f32 %v3502_v15, %v3324_v39 }
 0x41c   : > { %v3575_v58 = vmax.f32 %v3539_v22, 0.0 }
 0x41d   : > { %v3574_v50 = vmax.f32 %v3538_v53, 0.0 }
 0x41e   : > { %3611 = vst [vmem:[%s5852_s13 + $0x8] sm:$0xff] %v3575_v58  ;;  %v3517_v58 = vld [vmem:[%s5839_s16 + $0x78] sm:$0xff] }
 0x41f   : > { %3610 = vst [vmem:[%s5852_s13] sm:$0xff] %v3574_v50  ;;  %v4210_v31 = vpop.f32.mrb[192].mxu0 }
 0x420   : > { %v3339_v35 = vadd.f32 %v4210_v31, %v5844_v19  ;;  %v3333_v3 = vpop.f32.mrb[193].mxu0 }
 0x421   : > { %v3334_v52 = vadd.f32 %v5844_v19, %v3333_v3 }
 0x422   : > { %v3541_v37 = vadd.f32 %v3505_v46, %v3339_v35  ;;  %v3516_v46 = vld [vmem:[%s5839_s16 + $0x70] sm:$0xff] }
 0x423   : > { %v3540_v5 = vadd.f32 %v3504_v21, %v3334_v52 }
 0x424   : > { %v3577_v57 = vmax.f32 %v3541_v37, 0.0 }
 0x425   : > { %v3576_v9 = vmax.f32 %v3540_v5, 0.0 }
 0x426   : > { %3613 = vst [vmem:[%s5852_s13 + $0x18] sm:$0xff] %v3577_v57  ;;  %v3519_v57 = vld [vmem:[%s5839_s16 + $0x88] sm:$0xff] }
 0x427   : > { %3612 = vst [vmem:[%s5852_s13 + $0x10] sm:$0xff] %v3576_v9  ;;  %v4213_v56 = vpop.f32.mrb[194].mxu0 }
 0x428   : > { %v3349_v44 = vadd.f32 %v4213_v56, %v5844_v19  ;;  %v3343_v55 = vpop.f32.mrb[195].mxu0 }
 0x429   : > { %v3344_v33 = vadd.f32 %v5844_v19, %v3343_v55 }
 0x42a   : > { %v3543_v61 = vadd.f32 %v3507_v26, %v3349_v44  ;;  %v3518_v26 = vld [vmem:[%s5839_s16 + $0x80] sm:$0xff] }
 0x42b   : > { %v3542_v14 = vadd.f32 %v3506_v12, %v3344_v33 }
 0x42c   : > { %v3579_v59 = vmax.f32 %v3543_v61, 0.0 }
 0x42d   : > { %v3578_v34 = vmax.f32 %v3542_v14, 0.0 }
 0x42e   : > { %3615 = vst [vmem:[%s5852_s13 + $0x28] sm:$0xff] %v3579_v59  ;;  %v3521_v59 = vld [vmem:[%s5839_s16 + $0x98] sm:$0xff] }
 0x42f   : > { %3614 = vst [vmem:[%s5852_s13 + $0x20] sm:$0xff] %v3578_v34  ;;  %v4216_v54 = vpop.f32.mrb[196].mxu0 }
 0x430   : > { %v3359_v20 = vadd.f32 %v4216_v54, %v5844_v19  ;;  %v3353_v23 = vpop.f32.mrb[197].mxu0 }
 0x431   : > { %v3354_v38 = vadd.f32 %v5844_v19, %v3353_v23 }
 0x432   : > { %v3545_v7 = vadd.f32 %v3509_v28, %v3359_v20  ;;  %v3520_v28 = vld [vmem:[%s5839_s16 + $0x90] sm:$0xff] }
 0x433   : > { %v3544_v42 = vadd.f32 %v3508_v60, %v3354_v38 }
 0x434   : > { %v3581_v2 = vmax.f32 %v3545_v7, 0.0 }
 0x435   : > { %v3580_v6 = vmax.f32 %v3544_v42, 0.0 }
 0x436   : > { %3617 = vst [vmem:[%s5852_s13 + $0x38] sm:$0xff] %v3581_v2  ;;  %v3523_v2 = vld [vmem:[%s5839_s16 + $0xa8] sm:$0xff] }
 0x437   : > { %3616 = vst [vmem:[%s5852_s13 + $0x30] sm:$0xff] %v3580_v6  ;;  %v4219_v49 = vpop.f32.mrb[198].mxu0 }
 0x438   : > { %v3369_v25 = vadd.f32 %v4219_v49, %v5844_v19  ;;  %v3363_v0 = vpop.f32.mrb[199].mxu0 }
 0x439   : > { %v3364_v51 = vadd.f32 %v5844_v19, %v3363_v0 }
 0x43a   : > { %v3547_v63 = vadd.f32 %v3511_v41, %v3369_v25  ;;  %v3522_v41 = vld [vmem:[%s5839_s16 + $0xa0] sm:$0xff] }
 0x43b   : > { %v3546_v16 = vadd.f32 %v3510_v4, %v3364_v51 }
 0x43c   : > { %v3583_v36 = vmax.f32 %v3547_v63, 0.0 }
 0x43d   : > { %v3582_v24 = vmax.f32 %v3546_v16, 0.0 }
 0x43e   : > { %3619 = vst [vmem:[%s5852_s13 + $0x48] sm:$0xff] %v3583_v36  ;;  %v3525_v36 = vld [vmem:[%s5839_s16 + $0xb8] sm:$0xff] }
 0x43f   : > { %3618 = vst [vmem:[%s5852_s13 + $0x40] sm:$0xff] %v3582_v24  ;;  %v4222_v1 = vpop.f32.mrb[200].mxu0 }
 0x440   : > { %v3379_v62 = vadd.f32 %v4222_v1, %v5844_v19  ;;  %v3373_v13 = vpop.f32.mrb[201].mxu0 }
 0x441   : > { %v3374_v45 = vadd.f32 %v5844_v19, %v3373_v13 }
 0x442   : > { %v3549_v10 = vadd.f32 %v3513_v48, %v3379_v62  ;;  %v3524_v48 = vld [vmem:[%s5839_s16 + $0xb0] sm:$0xff] }
 0x443   : > { %v3548_v40 = vadd.f32 %v3512_v47, %v3374_v45 }
 0x444   : > { %v3585_v27 = vmax.f32 %v3549_v10, 0.0 }
 0x445   : > { %v3584_v11 = vmax.f32 %v3548_v40, 0.0 }
 0x446   : > { %3621 = vst [vmem:[%s5852_s13 + $0x58] sm:$0xff] %v3585_v27  ;;  %v3527_v27 = vld [vmem:[%s5839_s16 + $0xc8] sm:$0xff] }
 0x447   : > { %3620 = vst [vmem:[%s5852_s13 + $0x50] sm:$0xff] %v3584_v11  ;;  %v4225_v43 = vpop.f32.mrb[202].mxu0 }
 0x448   : > { %v3389_v30 = vadd.f32 %v4225_v43, %v5844_v19  ;;  %v3383_v18 = vpop.f32.mrb[203].mxu0 }
 0x449   : > { %v3384_v32 = vadd.f32 %v5844_v19, %v3383_v18 }
 0x44a   : > { %v3551_v17 = vadd.f32 %v3515_v8, %v3389_v30  ;;  %v3526_v8 = vld [vmem:[%s5839_s16 + $0xc0] sm:$0xff] }
 0x44b   : > { %v3550_v15 = vadd.f32 %v3514_v29, %v3384_v32 }
 0x44c   : > { %v3587_v39 = vmax.f32 %v3551_v17, 0.0 }
 0x44d   : > { %v3586_v22 = vmax.f32 %v3550_v15, 0.0 }
 0x44e   : > { %3623 = vst [vmem:[%s5852_s13 + $0x68] sm:$0xff] %v3587_v39  ;;  %v3529_v39 = vld [vmem:[%s5839_s16 + $0xd8] sm:$0xff] }
 0x44f   : > { %3622 = vst [vmem:[%s5852_s13 + $0x60] sm:$0xff] %v3586_v22  ;;  %v4228_v53 = vpop.f32.mrb[204].mxu0 }
 0x450   : > { %v3399_v50 = vadd.f32 %v4228_v53, %v5844_v19  ;;  %v3393_v31 = vpop.f32.mrb[205].mxu0 }
 0x451   : > { %v3394_v35 = vadd.f32 %v5844_v19, %v3393_v31 }
 0x452   : > { %v3553_v3 = vadd.f32 %v3517_v58, %v3399_v50  ;;  %v3528_v58 = vld [vmem:[%s5839_s16 + $0xd0] sm:$0xff] }
 0x453   : > { %v3552_v21 = vadd.f32 %v3516_v46, %v3394_v35 }
 0x454   : > { %v3589_v52 = vmax.f32 %v3553_v3, 0.0 }
 0x455   : > { %v3588_v37 = vmax.f32 %v3552_v21, 0.0 }
 0x456   : > { %3625 = vst [vmem:[%s5852_s13 + $0x78] sm:$0xff] %v3589_v52  ;;  %v3531_v52 = vld [vmem:[%s5839_s16 + $0xe8] sm:$0xff] }
 0x457   : > { %3624 = vst [vmem:[%s5852_s13 + $0x70] sm:$0xff] %v3588_v37  ;;  %v4231_v5 = vpop.f32.mrb[206].mxu0 }
 0x458   : > { %v3409_v9 = vadd.f32 %v4231_v5, %v5844_v19  ;;  %v3403_v56 = vpop.f32.mrb[207].mxu0 }
 0x459   : > { %v3404_v44 = vadd.f32 %v5844_v19, %v3403_v56 }
 0x45a   : > { %v3555_v55 = vadd.f32 %v3519_v57, %v3409_v9  ;;  %v3530_v57 = vld [vmem:[%s5839_s16 + $0xe0] sm:$0xff] }
 0x45b   : > { %v3554_v12 = vadd.f32 %v3518_v26, %v3404_v44 }
 0x45c   : > { %v3591_v33 = vmax.f32 %v3555_v55, 0.0 }
 0x45d   : > { %v3590_v61 = vmax.f32 %v3554_v12, 0.0 }
 0x45e   : > { %3627 = vst [vmem:[%s5852_s13 + $0x88] sm:$0xff] %v3591_v33  ;;  %v3533_v33 = vld [vmem:[%s5839_s16 + $0xf8] sm:$0xff] }
 0x45f   : > { %3626 = vst [vmem:[%s5852_s13 + $0x80] sm:$0xff] %v3590_v61  ;;  %v4234_v14 = vpop.f32.mrb[208].mxu0 }
 0x460   : > { %v3419_v34 = vadd.f32 %v4234_v14, %v5844_v19  ;;  %v3413_v54 = vpop.f32.mrb[209].mxu0 }
 0x461   : > { %v3414_v20 = vadd.f32 %v5844_v19, %v3413_v54 }
 0x462   : > { %v3557_v23 = vadd.f32 %v3521_v59, %v3419_v34  ;;  %v3532_v59 = vld [vmem:[%s5839_s16 + $0xf0] sm:$0xff] }
 0x463   : > { %v3556_v60 = vadd.f32 %v3520_v28, %v3414_v20 }
 0x464   : > { %v3593_v38 = vmax.f32 %v3557_v23, 0.0 }
 0x465   : > { %v3592_v7 = vmax.f32 %v3556_v60, 0.0 }
 0x466   : > { %3629 = vst [vmem:[%s5852_s13 + $0x98] sm:$0xff] %v3593_v38  ;;  %v3535_v38 = vld [vmem:[%s5839_s16 + $0x108] sm:$0xff] }
 0x467   : > { %3628 = vst [vmem:[%s5852_s13 + $0x90] sm:$0xff] %v3592_v7  ;;  %v4237_v42 = vpop.f32.mrb[210].mxu0 }
 0x468   : > { %v3429_v6 = vadd.f32 %v4237_v42, %v5844_v19  ;;  %v3423_v49 = vpop.f32.mrb[211].mxu0 }
 0x469   : > { %v3424_v25 = vadd.f32 %v5844_v19, %v3423_v49 }
 0x46a   : > { %v3559_v0 = vadd.f32 %v3523_v2, %v3429_v6  ;;  %v3534_v2 = vld [vmem:[%s5839_s16 + $0x100] sm:$0xff] }
 0x46b   : > { %v3558_v4 = vadd.f32 %v3522_v41, %v3424_v25 }
 0x46c   : > { %v3595_v51 = vmax.f32 %v3559_v0, 0.0 }
 0x46d   : > { %v3594_v63 = vmax.f32 %v3558_v4, 0.0 }
 0x46e   : > { %3631 = vst [vmem:[%s5852_s13 + $0xa8] sm:$0xff] %v3595_v51  ;;  %v3537_v51 = vld [vmem:[%s5839_s16 + $0x118] sm:$0xff] }
 0x46f   : > { %3630 = vst [vmem:[%s5852_s13 + $0xa0] sm:$0xff] %v3594_v63  ;;  %v4240_v16 = vpop.f32.mrb[212].mxu0 }
 0x470   : > { %v3439_v24 = vadd.f32 %v4240_v16, %v5844_v19  ;;  %v3433_v1 = vpop.f32.mrb[213].mxu0 }
 0x471   : > { %v3434_v62 = vadd.f32 %v5844_v19, %v3433_v1 }
 0x472   : > { %v3561_v13 = vadd.f32 %v3525_v36, %v3439_v24  ;;  %v3536_v36 = vld [vmem:[%s5839_s16 + $0x110] sm:$0xff] }
 0x473   : > { %v3560_v47 = vadd.f32 %v3524_v48, %v3434_v62 }
 0x474   : > { %v3597_v45 = vmax.f32 %v3561_v13, 0.0 }
 0x475   : > { %v3596_v10 = vmax.f32 %v3560_v47, 0.0 }
 0x476   : > { %3633 = vst [vmem:[%s5852_s13 + $0xb8] sm:$0xff] %v3597_v45 }
 0x477   : > { %3632 = vst [vmem:[%s5852_s13 + $0xb0] sm:$0xff] %v3596_v10  ;;  %v4243_v40 = vpop.f32.mrb[214].mxu0 }
 0x478   : > { %v3449_v11 = vadd.f32 %v4243_v40, %v5844_v19  ;;  %v3443_v43 = vpop.f32.mrb[215].mxu0 }
 0x479   : > { %v3444_v30 = vadd.f32 %v5844_v19, %v3443_v43 }
 0x47a   : > { %v3563_v18 = vadd.f32 %v3527_v27, %v3449_v11 }
 0x47b   : > { %v3562_v29 = vadd.f32 %v3526_v8, %v3444_v30 }
 0x47c   : > { %v3599_v32 = vmax.f32 %v3563_v18, 0.0 }
 0x47d   : > { %v3598_v17 = vmax.f32 %v3562_v29, 0.0 }
 0x47e   : > { %3635 = vst [vmem:[%s5852_s13 + $0xc8] sm:$0xff] %v3599_v32 }
 0x47f   : > { %3634 = vst [vmem:[%s5852_s13 + $0xc0] sm:$0xff] %v3598_v17  ;;  %v4246_v15 = vpop.f32.mrb[216].mxu0 }
 0x480   : > { %v3459_v22 = vadd.f32 %v4246_v15, %v5844_v19  ;;  %v3453_v53 = vpop.f32.mrb[217].mxu0 }
 0x481   : > { %v3454_v50 = vadd.f32 %v5844_v19, %v3453_v53 }
 0x482   : > { %v3565_v31 = vadd.f32 %v3529_v39, %v3459_v22 }
 0x483   : > { %v3564_v46 = vadd.f32 %v3528_v58, %v3454_v50 }
 0x484   : > { %v3601_v35 = vmax.f32 %v3565_v31, 0.0 }
 0x485   : > { %v3600_v3 = vmax.f32 %v3564_v46, 0.0 }
 0x486   : > { %3637 = vst [vmem:[%s5852_s13 + $0xd8] sm:$0xff] %v3601_v35 }
 0x487   : > { %3636 = vst [vmem:[%s5852_s13 + $0xd0] sm:$0xff] %v3600_v3  ;;  %v4249_v21 = vpop.f32.mrb[218].mxu0 }
 0x488   : > { %v3469_v37 = vadd.f32 %v4249_v21, %v5844_v19  ;;  %v3463_v5 = vpop.f32.mrb[219].mxu0 }
 0x489   : > { %v3464_v9 = vadd.f32 %v5844_v19, %v3463_v5 }
 0x48a   : > { %v3567_v56 = vadd.f32 %v3531_v52, %v3469_v37 }
 0x48b   : > { %v3566_v26 = vadd.f32 %v3530_v57, %v3464_v9 }
 0x48c   : > { %v3603_v44 = vmax.f32 %v3567_v56, 0.0 }
 0x48d   : > { %v3602_v55 = vmax.f32 %v3566_v26, 0.0 }
 0x48e   : > { %3639 = vst [vmem:[%s5852_s13 + $0xe8] sm:$0xff] %v3603_v44 }
 0x48f   : > { %3638 = vst [vmem:[%s5852_s13 + $0xe0] sm:$0xff] %v3602_v55  ;;  %v4252_v12 = vpop.f32.mrb[220].mxu0 }
 0x490   : > { %v3479_v61 = vadd.f32 %v4252_v12, %v5844_v19  ;;  %v3473_v14 = vpop.f32.mrb[221].mxu0 }
 0x491   : > { %v3474_v34 = vadd.f32 %v5844_v19, %v3473_v14 }
 0x492   : > { %v3569_v54 = vadd.f32 %v3533_v33, %v3479_v61 }
 0x493   : > { %v3568_v28 = vadd.f32 %v3532_v59, %v3474_v34 }
 0x494   : > { %v3605_v20 = vmax.f32 %v3569_v54, 0.0 }
 0x495   : > { %v3604_v23 = vmax.f32 %v3568_v28, 0.0 }
 0x496   : > { %3641 = vst [vmem:[%s5852_s13 + $0xf8] sm:$0xff] %v3605_v20 }
 0x497   : > { %3640 = vst [vmem:[%s5852_s13 + $0xf0] sm:$0xff] %v3604_v23  ;;  %v4255_v60 = vpop.f32.mrb[222].mxu0 }
 0x498   : > { %v3489_v7 = vadd.f32 %v4255_v60, %v5844_v19  ;;  %v3483_v42 = vpop.f32.mrb[223].mxu0 }
 0x499   : > { %v3484_v6 = vadd.f32 %v5844_v19, %v3483_v42 }
 0x49a   : > { %v3571_v49 = vadd.f32 %v3535_v38, %v3489_v7 }
 0x49b   : > { %v3570_v41 = vadd.f32 %v3534_v2, %v3484_v6 }
 0x49c   : > { %v3607_v25 = vmax.f32 %v3571_v49, 0.0 }
 0x49d   : > { %v3606_v0 = vmax.f32 %v3570_v41, 0.0 }
 0x49e   : > { %3643 = vst [vmem:[%s5852_s13 + $0x108] sm:$0xff] %v3607_v25 }
 0x49f   : > { %3642 = vst [vmem:[%s5852_s13 + $0x100] sm:$0xff] %v3606_v0  ;;  %v4258_v4 = vpop.f32.mrb[224].mxu0 }
 0x4a0   : > { %v3499_v63 = vadd.f32 %v4258_v4, %v5844_v19  ;;  %v3493_v16 = vpop.f32.mrb[225].mxu0 }
 0x4a1   : > { %v3494_v24 = vadd.f32 %v5844_v19, %v3493_v16 }
 0x4a2   : > { %v3573_v1 = vadd.f32 %v3537_v51, %v3499_v63 }
 0x4a3   : > { %v3572_v48 = vadd.f32 %v3536_v36, %v3494_v24 }
 0x4a4   : > { %v3609_v62 = vmax.f32 %v3573_v1, 0.0 }
 0x4a5   : > { %v3608_v13 = vmax.f32 %v3572_v48, 0.0 }
 0x4a6   : > { %3645 = vst [vmem:[%s5852_s13 + $0x118] sm:$0xff] %v3609_v62 }
 0x4a7   : > { %3644 = vst [vmem:[%s5852_s13 + $0x110] sm:$0xff] %v3608_v13 }
 0x4a8   : > { %4876 = shalt.err (!%p4873_p11)
}
 0x4a9   : > { %s4877_s15 = scalar_lea.hbm %s5961_s29, 4608  ;;  %s4881_s14 = scalar_lea.hbm %s6017_s7, 9216 }
 0x4aa   : > { %p4878_p13 = scmp.ne.s32.totalorder %s5961_s29, %s4877_s15  ;;  %p4882_p6 = scmp.lt.u32.totalorder %s5961_s29, %s6017_s7 }
 0x4ab   : > { %p4883_p9 = scmp.lt.u32.totalorder %s4881_s14, %s4877_s15  ;;  %p4885_p10 = scmp.lt.u32.totalorder %s4877_s15, %s5961_s29 }
 0x4ac   : > { %p4879_p5 = pnand %p4878_p13, %p6073_p1 }
 0x4ad   : > { %p4884_p12 = por %p4883_p9, %p4882_p6 }
 0x4ae   : > { %p4880_p0 = pneg %p4879_p5 }
 0x4af   : > { %p4886_p2 = por %p4885_p10, %p4884_p12 }
 0x4b1   : > { %p4887_p3 = pnand %p4886_p2, %p4880_p0 }
 0x4b3   : > { %4890 = shalt.err (!%p4887_p3)
}
 0x4b4   : > { %s4944_s20 = smov 128   ;;  %s4945_s22 = smov 8  }
 0x4b5   : > { %4747 = dma.vmem_to_hbm [thread:$0]  (%p6073_p1), %s5963_s21, 4608, %s5961_s29, %s5969_s28, %s4944_s20, %s4944_s20, %s4945_s22  }
 0x4b6 PF: > { %p4764_p4 = scmp.ge.s32.totalorder %s4933_s27, 2  ;;  %s3675_s23 = sand.u32 1, %s4921_s24  }
 0x4b7   : > { %p6074_p7 = scmp.ne.s32.totalorder %s6023_s12, 0  ;;  %s3676_s8 = scalar_lea.sflag [#allocation6], %s3675_s23 }
 0x4b9   : > { %p4757_p8 = pnand %p4764_p4, %p6074_p7 }
 0x4bb   : > { %4916 = dma.done.wait (!%p4757_p8), %s3676_s8, 4608  }
 0x4bc   : > { %4918 = vsyncadd (!%p4757_p8), %s3676_s8, 4294962688  ;;  %s6075_s9 = sld [smem:[#allocation13_spill]]  ;;  %p19_p11 = scmp.ge.s32.totalorder %s5011_s30, 4  }
 0x4bd   : > { %s6076_s24 = smov %s4925_s25  ;;  %s6077_s25 = smov %s4929_s26 }
 0x4be   : > { %s6079_s27 = smov %s5011_s30  ;;  %21 = sbr.rel (!%p19_p11) target bundleno = 5 (0x5), region = 95 }
 0x4c2   : > { %s6078_s26 = smov %s6075_s9 }
 0x4c5   :  { %3681 = vsyncpa [#allocation5], 1 }
 0x4c6   :  { %3683 = vsyncpa [#allocation5 + $0x1], 1 }
 0x4c7   :  { %3684 = vsyncpa [#allocation8], 1 }
 0x4c8   :  { %3685 = vsyncpa [#allocation6], 1 }
 0x4c9   :  { %3687 = vsyncpa [#allocation6 + $0x1], 1 }

</bundles_post_ra>
